<compile_context>
chip_gen: v5e
topology: v5e:2x2
jax: 0.10.0
libtpu: 0.0.40
codegen_flags: <defaults>
</compile_context>

<pallas_src>
import functools
from math import sqrt

import jax
import jax.numpy as jnp
from jax.experimental import pallas as pl
from jax.experimental.pallas import tpu as pltpu

N_EDGE_TYPES = 6
LANE = 128  # padded width of every feature / hidden / gate block (lane-dense)

_VMEM = pl.BlockSpec(memory_space=pltpu.MemorySpace.VMEM)


# ----------------------------- fused Pallas kernel -----------------------------

def _fused_gcn_kernel(
    feat_ref, hgru_ref, h0_ref, c0_ref,        # node states                  [N, P] f32
    mcat_ref, norm_ref,                        # graph: [N, 6N] bf16, [N, 1] f32
    wgcn_ref, bgcn_ref, eb_ref,                # GCN: [L,P,7P] bf16, [L,1,7P] f32, [L,N,P] f32
    lw_ref, lb_ref,                            # LSTM: [2P,4P] bf16, [1,4P] f32
    gw_ref, gb_ref,                            # GRU:  [2P,4P] bf16, [1,4P] f32
    hgru_out_ref, hlstm_out_ref, clstm_out_ref,  # outputs (aliased to inputs 1..3)
    *, n_pre, n_post,
):
    p = feat_ref.shape[1]                      # padded feature width (=LANE)
    mcat = mcat_ref[...]                       # loaded once, reused by all GCN layers
    norm_d = norm_ref[...]                     # [N, 1] f32 (dst-side norm)

    def gcn_layer(h, li):
        h_b = h.astype(jnp.bfloat16)
        # one fused matmul: [node-message (6 blocks) | self] — bf16 in, f32 accumulate
        fused = (jnp.dot(h_b, wgcn_ref[li], preferred_element_type=jnp.float32)
                 + bgcn_ref[li])                                      # [N, 7P]
        hnm_b = fused[:, :N_EDGE_TYPES * p].astype(jnp.bfloat16)      # cast once
        h_self = fused[:, N_EDGE_TYPES * p:]                          # includes b_self + bias
        # one K=6N contraction over (edge_type, src) instead of 6 small matmuls:
        hnm_stack = jnp.concatenate(
            [hnm_b[:, i * p:(i + 1) * p] for i in range(N_EDGE_TYPES)], axis=0)  # [6N, P]
        acc = jnp.dot(mcat, hnm_stack, preferred_element_type=jnp.float32)       # [N, P]
        # degrees/edge term is precomputed (f32) at pack time -> single add
        acc = acc + eb_ref[li]
        return jnp.maximum(acc * norm_d + h_self, 0.0)                # relu

    def lstm_cell(x, h, c):
        xh = jnp.concatenate([x.astype(jnp.bfloat16), h.astype(jnp.bfloat16)], axis=1)
        gates = jnp.dot(xh, lw_ref[...], preferred_element_type=jnp.float32) + lb_ref[...]
        i_g = jax.nn.sigmoid(gates[:, 0 * p:1 * p])   # gate slices on 128-lane boundaries
        f_g = jax.nn.sigmoid(gates[:, 1 * p:2 * p])
        g_g = jnp.tanh(gates[:, 2 * p:3 * p])
        o_g = jax.nn.sigmoid(gates[:, 3 * p:4 * p])
        c_new = f_g * c + i_g * g_g
        return o_g * jnp.tanh(c_new), c_new

    def gru_cell(x, h):
        xh = jnp.concatenate([x.astype(jnp.bfloat16), h.astype(jnp.bfloat16)], axis=1)
        # packed column blocks: [gi_r+gh_r, gi_z+gh_z, gi_n, gh_n]
        g = jnp.dot(xh, gw_ref[...], preferred_element_type=jnp.float32) + gb_ref[...]
        r = jax.nn.sigmoid(g[:, 0 * p:1 * p])
        z = jax.nn.sigmoid(g[:, 1 * p:2 * p])
        ng = jnp.tanh(g[:, 2 * p:3 * p] + r * g[:, 3 * p:4 * p])
        return (1.0 - z) * ng + z * h

    h = feat_ref[...]
    for li in range(n_pre):                          # pre-RNN GCN layers
        h = gcn_layer(h, li)
    h_lstm, c_lstm = lstm_cell(h, h0_ref[...], c0_ref[...])
    h = h_lstm
    for li in range(n_pre, n_pre + n_post):          # post-RNN GCN layers
        h = gcn_layer(h, li)
    h_gru = gru_cell(h, hgru_ref[...])

    hgru_out_ref[...] = h_gru
    hlstm_out_ref[...] = h_lstm
    clstm_out_ref[...] = c_lstm


# ----------------------------- one-time packing (runs ONCE, not per step) -----------------------------

def _pad2(x, rows, cols):
    return jnp.zeros((rows, cols), jnp.float32).at[:x.shape[0], :x.shape[1]].set(x)


def _pad_blocked(x, n_blocks, rows_pad, block_pad):
    """Pad a [rows, n_blocks*bw] matrix block-wise to [rows_pad, n_blocks*block_pad]."""
    rows, cols = x.shape
    bw = cols // n_blocks
    out = jnp.zeros((rows_pad, n_blocks * block_pad), jnp.float32)
    for i in range(n_blocks):
        out = out.at[:rows, i * block_pad:i * block_pad + bw].set(x[:, i * bw:(i + 1) * bw])
    return out


def _pack_gcn_stack(layers, d_agg):
    n = d_agg.shape[0]
    ws, bs, ebs = [], [], []
    for p_ in layers:
        wn = _pad_blocked(p_["w_node"], N_EDGE_TYPES, LANE, LANE)          # [P, 6P]
        wsf = _pad2(p_["w_self"], LANE, LANE)                              # [P, P]
        ws.append(jnp.concatenate([wn, wsf], axis=1))                      # [P, 7P]
        bn = _pad_blocked(p_["b_node"], N_EDGE_TYPES, 1, LANE)             # [1, 6P]
        bsf = _pad2(p_["b_self"] + p_["bias"], 1, LANE)                    # fold final bias in
        bs.append(jnp.concatenate([bn, bsf], axis=1))                      # [1, 7P]
        # degrees/edge term: d_agg @ W_edge^T, constant per (graph, layer) -> precompute in f32
        e = jnp.sum(d_agg[:, :, None] * p_["w_edge_t"][None, :, :], axis=1)  # [N, out]
        ebs.append(_pad2(e, n, LANE))
    return (jnp.stack(ws).astype(jnp.bfloat16), jnp.stack(bs), jnp.stack(ebs))


def _pack_lstm(p_):
    w = jnp.concatenate([_pad_blocked(p_["w_ih"], 4, LANE, LANE),
                         _pad_blocked(p_["w_hh"], 4, LANE, LANE)], axis=0)   # [2P, 4P]
    b = _pad_blocked(p_["b_ih"] + p_["b_hh"], 4, 1, LANE)                    # biases pre-summed
    return w.astype(jnp.bfloat16), b


def _pack_gru(p_):
    wih, whh, bih, bhh = p_["w_ih"], p_["w_hh"], p_["b_ih"], p_["b_hh"]
    in_f, hd = wih.shape[0], whh.shape[0]
    w = jnp.zeros((2 * LANE, 4 * LANE), jnp.float32)
    b = jnp.zeros((1, 4 * LANE), jnp.float32)
    # column blocks: 0 -> r (ih+hh), 1 -> z (ih+hh), 2 -> n (ih only), 3 -> n (hh only)
    w = w.at[:in_f, 0 * LANE:0 * LANE + hd].set(wih[:, 0 * hd:1 * hd])
    w = w.at[:in_f, 1 * LANE:1 * LANE + hd].set(wih[:, 1 * hd:2 * hd])
    w = w.at[:in_f, 2 * LANE:2 * LANE + hd].set(wih[:, 2 * hd:3 * hd])
    w = w.at[LANE:LANE + hd, 0 * LANE:0 * LANE + hd].set(whh[:, 0 * hd:1 * hd])
    w = w.at[LANE:LANE + hd, 1 * LANE:1 * LANE + hd].set(whh[:, 1 * hd:2 * hd])
    w = w.at[LANE:LANE + hd, 3 * LANE:3 * LANE + hd].set(whh[:, 2 * hd:3 * hd])
    b = b.at[:, 0 * LANE:0 * LANE + hd].set(bih[:, 0 * hd:1 * hd] + bhh[:, 0 * hd:1 * hd])
    b = b.at[:, 1 * LANE:1 * LANE + hd].set(bih[:, 1 * hd:2 * hd] + bhh[:, 1 * hd:2 * hd])
    b = b.at[:, 2 * LANE:2 * LANE + hd].set(bih[:, 2 * hd:3 * hd])
    b = b.at[:, 3 * LANE:3 * LANE + hd].set(bhh[:, 2 * hd:3 * hd])
    return w.astype(jnp.bfloat16), b


def prepare_packed(params, graph):
    """One-time packing of weights + graph into kernel-ready, device-resident arrays."""
    n = graph["norm"].shape[0]
    gcn_w, gcn_b, gcn_eb = _pack_gcn_stack(params["pre"] + params["post"], graph["d_agg"])
    lstm_w, lstm_b = _pack_lstm(params["lstm"])
    gru_w, gru_b = _pack_gru(params["gru"])
    # m: [edge_type, dst, src] (norm_src already folded in) -> m_cat[dst, i*N + src], bf16
    m_cat = jnp.transpose(graph["m"], (1, 0, 2)).reshape(n, N_EDGE_TYPES * n).astype(jnp.bfloat16)
    packed = {
        "m_cat": m_cat, "norm": graph["norm"],
        "gcn_w": gcn_w, "gcn_b": gcn_b, "gcn_eb": gcn_eb,
        "lstm_w": lstm_w, "lstm_b": lstm_b, "gru_w": gru_w, "gru_b": gru_b,
    }
    return jax.device_put(packed), len(params["pre"]), len(params["post"])


# ----------------------------- jitted per-step forward -----------------------------

@functools.partial(jax.jit, static_argnames=("n_pre", "n_post"))
def gcn_forward_packed(packed, features, hidden_gru, h0, c0, *, n_pre, n_post):
    n = features.shape[0]
    args = (
        _pad2(features, n, LANE), _pad2(hidden_gru, n, LANE),
        _pad2(h0, n, LANE), _pad2(c0, n, LANE),
        packed["m_cat"], packed["norm"],
        packed["gcn_w"], packed["gcn_b"], packed["gcn_eb"],
        packed["lstm_w"], packed["lstm_b"],
        packed["gru_w"], packed["gru_b"],
    )
    kernel = functools.partial(_fused_gcn_kernel, n_pre=n_pre, n_post=n_post)
    out_shape = tuple(jax.ShapeDtypeStruct((n, LANE), jnp.float32) for _ in range(3))
    h_gru, h_lstm, c_lstm = pl.pallas_call(
        kernel,
        out_shape=out_shape,
        in_specs=[_VMEM] * len(args),
        out_specs=(_VMEM,) * 3,
        # recurrent state buffers reused in place: hgru->out0, h0->out1, c0->out2
        input_output_aliases={1: 0, 2: 1, 3: 2},
        compiler_params=pltpu.CompilerParams(vmem_limit_bytes=64 << 20),
    )(*args)
    return (h_gru[:, :hidden_gru.shape[1]],
            (h_lstm[:, :h0.shape[1]], c_lstm[:, :c0.shape[1]]))


# ----------------------------- pure-JAX reference -----------------------------
# Mirrors the kernel's precision contract (bf16 MXU inputs, f32 accumulation) with the
# original per-edge-type loop structure and unpadded shapes.

def _mm(a, b):
    return jnp.dot(a.astype(jnp.bfloat16), b.astype(jnp.bfloat16),
                   preferred_element_type=jnp.float32)


def _gcn_layer_ref(h, p, g):
    f_out = p["w_self"].shape[1]
    hnm = _mm(h, p["w_node"]) + p["b_node"]
    h_self = _mm(h, p["w_self"]) + p["b_self"]
    acc = jnp.sum(g["d_agg"][:, :, None] * p["w_edge_t"][None, :, :], axis=1)
    for i in range(N_EDGE_TYPES):
        acc = acc + _mm(g["m"][i], hnm[:, i * f_out:(i + 1) * f_out])
    return jnp.maximum(acc * g["norm"] + h_self + p["bias"], 0.0)


def _lstm_ref(x, h, c, p):
    hd = h.shape[1]
    gates = _mm(x, p["w_ih"]) + p["b_ih"] + _mm(h, p["w_hh"]) + p["b_hh"]
    i = jax.nn.sigmoid(gates[:, :hd])
    f = jax.nn.sigmoid(gates[:, hd:2 * hd])
    g = jnp.tanh(gates[:, 2 * hd:3 * hd])
    o = jax.nn.sigmoid(gates[:, 3 * hd:])
    c_new = f * c + i * g
    return o * jnp.tanh(c_new), c_new


def _gru_ref(x, h, p):
    hd = h.shape[1]
    gi = _mm(x, p["w_ih"]) + p["b_ih"]
    gh = _mm(h, p["w_hh"]) + p["b_hh"]
    r = jax.nn.sigmoid(gi[:, :hd] + gh[:, :hd])
    z = jax.nn.sigmoid(gi[:, hd:2 * hd] + gh[:, hd:2 * hd])
    n = jnp.tanh(gi[:, 2 * hd:] + r * gh[:, 2 * hd:])
    return (1.0 - z) * n + z * h


def gcn_forward_ref(params, graph, features, hidden_gru, hidden_states):
    h = features
    for p in params["pre"]:
        h = _gcn_layer_ref(h, p, graph)
    h_lstm, c_lstm = _lstm_ref(h, hidden_states[0], hidden_states[1], params["lstm"])
    h = h_lstm
    for p in params["post"]:
        h = _gcn_layer_ref(h, p, graph)
    h_gru = _gru_ref(h, hidden_gru, params["gru"])
    return h_gru, (h_lstm, c_lstm)


# ----------------------------- params / graph construction -----------------------------

def _uniform(key, shape, bound):
    return jax.random.uniform(key, shape, jnp.float32, -bound, bound)


def init_gcn_layer_params(key, in_feats, out_feats):
    ks = jax.random.split(key, 6)
    b_lin = 1.0 / sqrt(in_feats)
    b_edge = 1.0 / sqrt(N_EDGE_TYPES)
    stdev = 1.0 / sqrt(out_feats)
    return {
        "w_self": _uniform(ks[0], (in_feats, out_feats), b_lin),
        "b_self": _uniform(ks[1], (1, out_feats), b_lin),
        "w_node": _uniform(ks[2], (in_feats, out_feats * N_EDGE_TYPES), b_lin),
        "b_node": _uniform(ks[3], (1, out_feats * N_EDGE_TYPES), b_lin),
        "w_edge_t": _uniform(ks[4], (N_EDGE_TYPES, out_feats), b_edge),  # linear_edge (no bias), transposed
        "bias": jax.random.normal(ks[5], (1, out_feats), jnp.float32) * 2 * stdev - stdev,
    }


def init_rnn_params(key, in_feats, hidden, n_gates):
    ks = jax.random.split(key, 4)
    bound = 1.0 / sqrt(hidden)
    return {
        "w_ih": _uniform(ks[0], (in_feats, n_gates * hidden), bound),
        "w_hh": _uniform(ks[1], (hidden, n_gates * hidden), bound),
        "b_ih": _uniform(ks[2], (1, n_gates * hidden), bound),
        "b_hh": _uniform(ks[3], (1, n_gates * hidden), bound),
    }


def build_graph(key, n_nodes):
    """Dense synthetic graph: edge data `degrees` [dst, src, 6] (0 where no edge), node `norm`."""
    k_adj, k_deg, k_norm = jax.random.split(key, 3)
    adj = (jax.random.uniform(k_adj, (n_nodes, n_nodes)) < 0.35).astype(jnp.float32)
    deg_vals = jax.random.randint(k_deg, (n_nodes, n_nodes, N_EDGE_TYPES), 0, 3).astype(jnp.float32)
    degrees = deg_vals * adj[:, :, None]                       # [dst, src, 6]
    norm = jax.random.uniform(k_norm, (n_nodes, 1), jnp.float32, 0.5, 1.5)
    norm_src = norm[:, 0]
    d_agg = jnp.einsum("dsk,s->dk", degrees, norm_src)         # [N, 6]
    m = jnp.transpose((degrees > 0).astype(jnp.float32), (2, 0, 1)) * norm_src[None, None, :]  # [6, dst, src]
    return {"d_agg": d_agg, "m": m, "norm": norm}


# ----------------------------- main -----------------------------

if __name__ == "__main__":
    N_NODES = 16
    IN_FEATS = 8
    N_HIDDEN_GCN = 16
    N_HIDDEN_LSTM = 16
    N_HIDDEN_GRU = 16
    N_LAYERS_PRE = 2
    N_LAYERS_POST = 2

    root = jax.random.PRNGKey(0)
    k_graph, k_feat, k_hgru, k_h0, k_c0, k_params = jax.random.split(root, 6)

    graph = build_graph(k_graph, N_NODES)
    features = jax.random.normal(k_feat, (N_NODES, IN_FEATS), jnp.float32)
    hidden_gru = jax.random.normal(k_hgru, (N_NODES, N_HIDDEN_GRU), jnp.float32)
    h0 = jax.random.normal(k_h0, (N_NODES, N_HIDDEN_LSTM), jnp.float32)
    c0 = jax.random.normal(k_c0, (N_NODES, N_HIDDEN_LSTM), jnp.float32)

    pkeys = jax.random.split(k_params, N_LAYERS_PRE + N_LAYERS_POST + 2)
    params = {
        "pre": [init_gcn_layer_params(pkeys[0], IN_FEATS, N_HIDDEN_GCN)]
               + [init_gcn_layer_params(pkeys[1 + i], N_HIDDEN_GCN, N_HIDDEN_GCN)
                  for i in range(N_LAYERS_PRE - 1)],
        "lstm": init_rnn_params(pkeys[N_LAYERS_PRE], N_HIDDEN_GCN, N_HIDDEN_LSTM, 4),
        "post": [init_gcn_layer_params(pkeys[N_LAYERS_PRE + 1], N_HIDDEN_LSTM, N_HIDDEN_GCN)]
                + [init_gcn_layer_params(pkeys[N_LAYERS_PRE + 2 + i], N_HIDDEN_GCN, N_HIDDEN_GCN)
                   for i in range(N_LAYERS_POST - 1)],
        "gru": init_rnn_params(pkeys[-1], N_HIDDEN_GCN, N_HIDDEN_GRU, 3),
    }

    # One-time packing (weights + graph), then the jitted per-step fused Pallas forward.
    packed, n_pre, n_post = prepare_packed(params, graph)
    out_gru, (out_h_lstm, out_c_lstm) = gcn_forward_packed(
        packed, features, hidden_gru, h0, c0, n_pre=n_pre, n_post=n_post)
    jax.block_until_ready((out_gru, out_h_lstm, out_c_lstm))

    # plain-JAX reference (same bf16-in / f32-accumulate precision contract)
    ref_gru, (ref_h_lstm, ref_c_lstm) = gcn_forward_ref(params, graph, features, hidden_gru, (h0, c0))

    assert jnp.allclose(out_gru, ref_gru, rtol=2e-3, atol=2e-3)
    assert jnp.allclose(out_h_lstm, ref_h_lstm, rtol=2e-3, atol=2e-3)
    assert jnp.allclose(out_c_lstm, ref_c_lstm, rtol=2e-3, atol=2e-3)

    print("KERNEL_OK")
</pallas_src>

<mosaic_0001>
module attributes {stable_mosaic.version = 11 : i64} {
  func.func @_fused_gcn_kernel(%arg0: memref<16x128xf32, #tpu.memory_space<vmem>>, %arg1: memref<16x128xf32, #tpu.memory_space<vmem>>, %arg2: memref<16x128xf32, #tpu.memory_space<vmem>>, %arg3: memref<16x128xf32, #tpu.memory_space<vmem>>, %arg4: memref<16x96xbf16, #tpu.memory_space<vmem>>, %arg5: memref<16x1xf32, #tpu.memory_space<vmem>>, %arg6: memref<4x128x896xbf16, #tpu.memory_space<vmem>>, %arg7: memref<4x1x896xf32, #tpu.memory_space<vmem>>, %arg8: memref<4x16x128xf32, #tpu.memory_space<vmem>>, %arg9: memref<256x512xbf16, #tpu.memory_space<vmem>>, %arg10: memref<1x512xf32, #tpu.memory_space<vmem>>, %arg11: memref<256x512xbf16, #tpu.memory_space<vmem>>, %arg12: memref<1x512xf32, #tpu.memory_space<vmem>>, %arg13: memref<16x128xf32, #tpu.memory_space<vmem>>, %arg14: memref<16x128xf32, #tpu.memory_space<vmem>>, %arg15: memref<16x128xf32, #tpu.memory_space<vmem>>) attributes {dimension_semantics = [], scalar_prefetch = 0 : i64, scratch_operands = 0 : i64, tpu.core_type = #tpu.core_type<tc>} {
    %c0 = arith.constant 0 : index
    %c0_0 = arith.constant 0 : index
    %0 = vector.load %arg4[%c0, %c0_0] : memref<16x96xbf16, #tpu.memory_space<vmem>>, vector<16x96xbf16>
    %c0_1 = arith.constant 0 : index
    %c0_2 = arith.constant 0 : index
    %1 = vector.load %arg5[%c0_1, %c0_2] : memref<16x1xf32, #tpu.memory_space<vmem>>, vector<16x1xf32>
    %c0_3 = arith.constant 0 : index
    %c0_4 = arith.constant 0 : index
    %2 = vector.load %arg0[%c0_3, %c0_4] : memref<16x128xf32, #tpu.memory_space<vmem>>, vector<16x128xf32>
    %3 = arith.truncf %2 : vector<16x128xf32> to vector<16x128xbf16>
    %c0_5 = arith.constant 0 : index
    %c0_6 = arith.constant 0 : index
    %c0_7 = arith.constant 0 : index
    %4 = vector.load %arg6[%c0_5, %c0_6, %c0_7] : memref<4x128x896xbf16, #tpu.memory_space<vmem>>, vector<1x128x896xbf16>
    %5 = vector.shape_cast %4 : vector<1x128x896xbf16> to vector<128x896xbf16>
    %cst = arith.constant dense<0.000000e+00> : vector<16x896xf32>
    %6 = tpu.matmul %3, %5, %cst {dimension_numbers = #tpu.dot_dimension_numbers<[1], [0], [0], [1], [0, 0, 1, 1], [], []>} : vector<16x128xbf16>, vector<128x896xbf16>, vector<16x896xf32> -> vector<16x896xf32>
    %c0_8 = arith.constant 0 : index
    %c0_9 = arith.constant 0 : index
    %c0_10 = arith.constant 0 : index
    %7 = vector.load %arg7[%c0_8, %c0_9, %c0_10] : memref<4x1x896xf32, #tpu.memory_space<vmem>>, vector<1x1x896xf32>
    %8 = vector.shape_cast %7 : vector<1x1x896xf32> to vector<1x896xf32>
    %9 = vector.broadcast %8 : vector<1x896xf32> to vector<16x896xf32>
    %10 = arith.addf %6, %9 : vector<16x896xf32>
    %11 = vector.extract_strided_slice %10 {offsets = [0, 0], sizes = [16, 768], strides = [1, 1]} : vector<16x896xf32> to vector<16x768xf32>
    %12 = arith.truncf %11 : vector<16x768xf32> to vector<16x768xbf16>
    %13 = vector.extract_strided_slice %10 {offsets = [0, 768], sizes = [16, 128], strides = [1, 1]} : vector<16x896xf32> to vector<16x128xf32>
    %14 = vector.extract_strided_slice %12 {offsets = [0, 0], sizes = [16, 128], strides = [1, 1]} : vector<16x768xbf16> to vector<16x128xbf16>
    %15 = vector.extract_strided_slice %12 {offsets = [0, 128], sizes = [16, 128], strides = [1, 1]} : vector<16x768xbf16> to vector<16x128xbf16>
    %16 = vector.extract_strided_slice %12 {offsets = [0, 256], sizes = [16, 128], strides = [1, 1]} : vector<16x768xbf16> to vector<16x128xbf16>
    %17 = vector.extract_strided_slice %12 {offsets = [0, 384], sizes = [16, 128], strides = [1, 1]} : vector<16x768xbf16> to vector<16x128xbf16>
    %18 = vector.extract_strided_slice %12 {offsets = [0, 512], sizes = [16, 128], strides = [1, 1]} : vector<16x768xbf16> to vector<16x128xbf16>
    %19 = vector.extract_strided_slice %12 {offsets = [0, 640], sizes = [16, 128], strides = [1, 1]} : vector<16x768xbf16> to vector<16x128xbf16>
    %20 = tpu.concatenate %14, %15, %16, %17, %18, %19 in 0 : vector<16x128xbf16>, vector<16x128xbf16>, vector<16x128xbf16>, vector<16x128xbf16>, vector<16x128xbf16>, vector<16x128xbf16> -> vector<96x128xbf16>
    %cst_11 = arith.constant dense<0.000000e+00> : vector<16x128xf32>
    %21 = tpu.matmul %0, %20, %cst_11 {dimension_numbers = #tpu.dot_dimension_numbers<[1], [0], [0], [1], [0, 0, 1, 1], [], []>} : vector<16x96xbf16>, vector<96x128xbf16>, vector<16x128xf32> -> vector<16x128xf32>
    %c0_12 = arith.constant 0 : index
    %c0_13 = arith.constant 0 : index
    %c0_14 = arith.constant 0 : index
    %22 = vector.load %arg8[%c0_12, %c0_13, %c0_14] : memref<4x16x128xf32, #tpu.memory_space<vmem>>, vector<1x16x128xf32>
    %23 = vector.shape_cast %22 : vector<1x16x128xf32> to vector<16x128xf32>
    %24 = arith.addf %21, %23 : vector<16x128xf32>
    %25 = vector.broadcast %1 : vector<16x1xf32> to vector<16x128xf32>
    %26 = arith.mulf %24, %25 : vector<16x128xf32>
    %27 = arith.addf %26, %13 : vector<16x128xf32>
    %cst_15 = arith.constant 0.000000e+00 : f32
    %28 = vector.broadcast %cst_15 : f32 to vector<16x128xf32>
    %29 = arith.maximumf %27, %28 : vector<16x128xf32>
    %30 = arith.truncf %29 : vector<16x128xf32> to vector<16x128xbf16>
    %c1 = arith.constant 1 : index
    %c0_16 = arith.constant 0 : index
    %c0_17 = arith.constant 0 : index
    %31 = vector.load %arg6[%c1, %c0_16, %c0_17] : memref<4x128x896xbf16, #tpu.memory_space<vmem>>, vector<1x128x896xbf16>
    %32 = vector.shape_cast %31 : vector<1x128x896xbf16> to vector<128x896xbf16>
    %cst_18 = arith.constant dense<0.000000e+00> : vector<16x896xf32>
    %33 = tpu.matmul %30, %32, %cst_18 {dimension_numbers = #tpu.dot_dimension_numbers<[1], [0], [0], [1], [0, 0, 1, 1], [], []>} : vector<16x128xbf16>, vector<128x896xbf16>, vector<16x896xf32> -> vector<16x896xf32>
    %c1_19 = arith.constant 1 : index
    %c0_20 = arith.constant 0 : index
    %c0_21 = arith.constant 0 : index
    %34 = vector.load %arg7[%c1_19, %c0_20, %c0_21] : memref<4x1x896xf32, #tpu.memory_space<vmem>>, vector<1x1x896xf32>
    %35 = vector.shape_cast %34 : vector<1x1x896xf32> to vector<1x896xf32>
    %36 = vector.broadcast %35 : vector<1x896xf32> to vector<16x896xf32>
    %37 = arith.addf %33, %36 : vector<16x896xf32>
    %38 = vector.extract_strided_slice %37 {offsets = [0, 0], sizes = [16, 768], strides = [1, 1]} : vector<16x896xf32> to vector<16x768xf32>
    %39 = arith.truncf %38 : vector<16x768xf32> to vector<16x768xbf16>
    %40 = vector.extract_strided_slice %37 {offsets = [0, 768], sizes = [16, 128], strides = [1, 1]} : vector<16x896xf32> to vector<16x128xf32>
    %41 = vector.extract_strided_slice %39 {offsets = [0, 0], sizes = [16, 128], strides = [1, 1]} : vector<16x768xbf16> to vector<16x128xbf16>
    %42 = vector.extract_strided_slice %39 {offsets = [0, 128], sizes = [16, 128], strides = [1, 1]} : vector<16x768xbf16> to vector<16x128xbf16>
    %43 = vector.extract_strided_slice %39 {offsets = [0, 256], sizes = [16, 128], strides = [1, 1]} : vector<16x768xbf16> to vector<16x128xbf16>
    %44 = vector.extract_strided_slice %39 {offsets = [0, 384], sizes = [16, 128], strides = [1, 1]} : vector<16x768xbf16> to vector<16x128xbf16>
    %45 = vector.extract_strided_slice %39 {offsets = [0, 512], sizes = [16, 128], strides = [1, 1]} : vector<16x768xbf16> to vector<16x128xbf16>
    %46 = vector.extract_strided_slice %39 {offsets = [0, 640], sizes = [16, 128], strides = [1, 1]} : vector<16x768xbf16> to vector<16x128xbf16>
    %47 = tpu.concatenate %41, %42, %43, %44, %45, %46 in 0 : vector<16x128xbf16>, vector<16x128xbf16>, vector<16x128xbf16>, vector<16x128xbf16>, vector<16x128xbf16>, vector<16x128xbf16> -> vector<96x128xbf16>
    %cst_22 = arith.constant dense<0.000000e+00> : vector<16x128xf32>
    %48 = tpu.matmul %0, %47, %cst_22 {dimension_numbers = #tpu.dot_dimension_numbers<[1], [0], [0], [1], [0, 0, 1, 1], [], []>} : vector<16x96xbf16>, vector<96x128xbf16>, vector<16x128xf32> -> vector<16x128xf32>
    %c1_23 = arith.constant 1 : index
    %c0_24 = arith.constant 0 : index
    %c0_25 = arith.constant 0 : index
    %49 = vector.load %arg8[%c1_23, %c0_24, %c0_25] : memref<4x16x128xf32, #tpu.memory_space<vmem>>, vector<1x16x128xf32>
    %50 = vector.shape_cast %49 : vector<1x16x128xf32> to vector<16x128xf32>
    %51 = arith.addf %48, %50 : vector<16x128xf32>
    %52 = vector.broadcast %1 : vector<16x1xf32> to vector<16x128xf32>
    %53 = arith.mulf %51, %52 : vector<16x128xf32>
    %54 = arith.addf %53, %40 : vector<16x128xf32>
    %cst_26 = arith.constant 0.000000e+00 : f32
    %55 = vector.broadcast %cst_26 : f32 to vector<16x128xf32>
    %56 = arith.maximumf %54, %55 : vector<16x128xf32>
    %c0_27 = arith.constant 0 : index
    %c0_28 = arith.constant 0 : index
    %57 = vector.load %arg2[%c0_27, %c0_28] : memref<16x128xf32, #tpu.memory_space<vmem>>, vector<16x128xf32>
    %c0_29 = arith.constant 0 : index
    %c0_30 = arith.constant 0 : index
    %58 = vector.load %arg3[%c0_29, %c0_30] : memref<16x128xf32, #tpu.memory_space<vmem>>, vector<16x128xf32>
    %59 = arith.truncf %56 : vector<16x128xf32> to vector<16x128xbf16>
    %60 = arith.truncf %57 : vector<16x128xf32> to vector<16x128xbf16>
    %61 = tpu.concatenate %59, %60 in 1 : vector<16x128xbf16>, vector<16x128xbf16> -> vector<16x256xbf16>
    %c0_31 = arith.constant 0 : index
    %c0_32 = arith.constant 0 : index
    %62 = vector.load %arg9[%c0_31, %c0_32] : memref<256x512xbf16, #tpu.memory_space<vmem>>, vector<256x512xbf16>
    %cst_33 = arith.constant dense<0.000000e+00> : vector<16x512xf32>
    %63 = tpu.matmul %61, %62, %cst_33 {dimension_numbers = #tpu.dot_dimension_numbers<[1], [0], [0], [1], [0, 0, 1, 1], [], []>} : vector<16x256xbf16>, vector<256x512xbf16>, vector<16x512xf32> -> vector<16x512xf32>
    %c0_34 = arith.constant 0 : index
    %c0_35 = arith.constant 0 : index
    %64 = vector.load %arg10[%c0_34, %c0_35] : memref<1x512xf32, #tpu.memory_space<vmem>>, vector<1x512xf32>
    %65 = vector.broadcast %64 : vector<1x512xf32> to vector<16x512xf32>
    %66 = arith.addf %63, %65 : vector<16x512xf32>
    %67 = vector.extract_strided_slice %66 {offsets = [0, 0], sizes = [16, 128], strides = [1, 1]} : vector<16x512xf32> to vector<16x128xf32>
    %68 = arith.negf %67 : vector<16x128xf32>
    %69 = math.exp %68 : vector<16x128xf32>
    %cst_36 = arith.constant 1.000000e+00 : f32
    %70 = vector.broadcast %cst_36 : f32 to vector<16x128xf32>
    %71 = arith.addf %70, %69 : vector<16x128xf32>
    %72 = arith.divf %70, %71 : vector<16x128xf32>
    %73 = vector.extract_strided_slice %66 {offsets = [0, 128], sizes = [16, 128], strides = [1, 1]} : vector<16x512xf32> to vector<16x128xf32>
    %74 = arith.negf %73 : vector<16x128xf32>
    %75 = math.exp %74 : vector<16x128xf32>
    %cst_37 = arith.constant 1.000000e+00 : f32
    %76 = vector.broadcast %cst_37 : f32 to vector<16x128xf32>
    %77 = arith.addf %76, %75 : vector<16x128xf32>
    %78 = arith.divf %76, %77 : vector<16x128xf32>
    %79 = vector.extract_strided_slice %66 {offsets = [0, 256], sizes = [16, 128], strides = [1, 1]} : vector<16x512xf32> to vector<16x128xf32>
    %80 = math.tanh %79 : vector<16x128xf32>
    %81 = vector.extract_strided_slice %66 {offsets = [0, 384], sizes = [16, 128], strides = [1, 1]} : vector<16x512xf32> to vector<16x128xf32>
    %82 = arith.negf %81 : vector<16x128xf32>
    %83 = math.exp %82 : vector<16x128xf32>
    %cst_38 = arith.constant 1.000000e+00 : f32
    %84 = vector.broadcast %cst_38 : f32 to vector<16x128xf32>
    %85 = arith.addf %84, %83 : vector<16x128xf32>
    %86 = arith.divf %84, %85 : vector<16x128xf32>
    %87 = arith.mulf %78, %58 : vector<16x128xf32>
    %88 = arith.mulf %72, %80 : vector<16x128xf32>
    %89 = arith.addf %87, %88 : vector<16x128xf32>
    %90 = math.tanh %89 : vector<16x128xf32>
    %91 = arith.mulf %86, %90 : vector<16x128xf32>
    %92 = arith.truncf %91 : vector<16x128xf32> to vector<16x128xbf16>
    %c2 = arith.constant 2 : index
    %c0_39 = arith.constant 0 : index
    %c0_40 = arith.constant 0 : index
    %93 = vector.load %arg6[%c2, %c0_39, %c0_40] : memref<4x128x896xbf16, #tpu.memory_space<vmem>>, vector<1x128x896xbf16>
    %94 = vector.shape_cast %93 : vector<1x128x896xbf16> to vector<128x896xbf16>
    %cst_41 = arith.constant dense<0.000000e+00> : vector<16x896xf32>
    %95 = tpu.matmul %92, %94, %cst_41 {dimension_numbers = #tpu.dot_dimension_numbers<[1], [0], [0], [1], [0, 0, 1, 1], [], []>} : vector<16x128xbf16>, vector<128x896xbf16>, vector<16x896xf32> -> vector<16x896xf32>
    %c2_42 = arith.constant 2 : index
    %c0_43 = arith.constant 0 : index
    %c0_44 = arith.constant 0 : index
    %96 = vector.load %arg7[%c2_42, %c0_43, %c0_44] : memref<4x1x896xf32, #tpu.memory_space<vmem>>, vector<1x1x896xf32>
    %97 = vector.shape_cast %96 : vector<1x1x896xf32> to vector<1x896xf32>
    %98 = vector.broadcast %97 : vector<1x896xf32> to vector<16x896xf32>
    %99 = arith.addf %95, %98 : vector<16x896xf32>
    %100 = vector.extract_strided_slice %99 {offsets = [0, 0], sizes = [16, 768], strides = [1, 1]} : vector<16x896xf32> to vector<16x768xf32>
    %101 = arith.truncf %100 : vector<16x768xf32> to vector<16x768xbf16>
    %102 = vector.extract_strided_slice %99 {offsets = [0, 768], sizes = [16, 128], strides = [1, 1]} : vector<16x896xf32> to vector<16x128xf32>
    %103 = vector.extract_strided_slice %101 {offsets = [0, 0], sizes = [16, 128], strides = [1, 1]} : vector<16x768xbf16> to vector<16x128xbf16>
    %104 = vector.extract_strided_slice %101 {offsets = [0, 128], sizes = [16, 128], strides = [1, 1]} : vector<16x768xbf16> to vector<16x128xbf16>
    %105 = vector.extract_strided_slice %101 {offsets = [0, 256], sizes = [16, 128], strides = [1, 1]} : vector<16x768xbf16> to vector<16x128xbf16>
    %106 = vector.extract_strided_slice %101 {offsets = [0, 384], sizes = [16, 128], strides = [1, 1]} : vector<16x768xbf16> to vector<16x128xbf16>
    %107 = vector.extract_strided_slice %101 {offsets = [0, 512], sizes = [16, 128], strides = [1, 1]} : vector<16x768xbf16> to vector<16x128xbf16>
    %108 = vector.extract_strided_slice %101 {offsets = [0, 640], sizes = [16, 128], strides = [1, 1]} : vector<16x768xbf16> to vector<16x128xbf16>
    %109 = tpu.concatenate %103, %104, %105, %106, %107, %108 in 0 : vector<16x128xbf16>, vector<16x128xbf16>, vector<16x128xbf16>, vector<16x128xbf16>, vector<16x128xbf16>, vector<16x128xbf16> -> vector<96x128xbf16>
    %cst_45 = arith.constant dense<0.000000e+00> : vector<16x128xf32>
    %110 = tpu.matmul %0, %109, %cst_45 {dimension_numbers = #tpu.dot_dimension_numbers<[1], [0], [0], [1], [0, 0, 1, 1], [], []>} : vector<16x96xbf16>, vector<96x128xbf16>, vector<16x128xf32> -> vector<16x128xf32>
    %c2_46 = arith.constant 2 : index
    %c0_47 = arith.constant 0 : index
    %c0_48 = arith.constant 0 : index
    %111 = vector.load %arg8[%c2_46, %c0_47, %c0_48] : memref<4x16x128xf32, #tpu.memory_space<vmem>>, vector<1x16x128xf32>
    %112 = vector.shape_cast %111 : vector<1x16x128xf32> to vector<16x128xf32>
    %113 = arith.addf %110, %112 : vector<16x128xf32>
    %114 = vector.broadcast %1 : vector<16x1xf32> to vector<16x128xf32>
    %115 = arith.mulf %113, %114 : vector<16x128xf32>
    %116 = arith.addf %115, %102 : vector<16x128xf32>
    %cst_49 = arith.constant 0.000000e+00 : f32
    %117 = vector.broadcast %cst_49 : f32 to vector<16x128xf32>
    %118 = arith.maximumf %116, %117 : vector<16x128xf32>
    %119 = arith.truncf %118 : vector<16x128xf32> to vector<16x128xbf16>
    %c3 = arith.constant 3 : index
    %c0_50 = arith.constant 0 : index
    %c0_51 = arith.constant 0 : index
    %120 = vector.load %arg6[%c3, %c0_50, %c0_51] : memref<4x128x896xbf16, #tpu.memory_space<vmem>>, vector<1x128x896xbf16>
    %121 = vector.shape_cast %120 : vector<1x128x896xbf16> to vector<128x896xbf16>
    %cst_52 = arith.constant dense<0.000000e+00> : vector<16x896xf32>
    %122 = tpu.matmul %119, %121, %cst_52 {dimension_numbers = #tpu.dot_dimension_numbers<[1], [0], [0], [1], [0, 0, 1, 1], [], []>} : vector<16x128xbf16>, vector<128x896xbf16>, vector<16x896xf32> -> vector<16x896xf32>
    %c3_53 = arith.constant 3 : index
    %c0_54 = arith.constant 0 : index
    %c0_55 = arith.constant 0 : index
    %123 = vector.load %arg7[%c3_53, %c0_54, %c0_55] : memref<4x1x896xf32, #tpu.memory_space<vmem>>, vector<1x1x896xf32>
    %124 = vector.shape_cast %123 : vector<1x1x896xf32> to vector<1x896xf32>
    %125 = vector.broadcast %124 : vector<1x896xf32> to vector<16x896xf32>
    %126 = arith.addf %122, %125 : vector<16x896xf32>
    %127 = vector.extract_strided_slice %126 {offsets = [0, 0], sizes = [16, 768], strides = [1, 1]} : vector<16x896xf32> to vector<16x768xf32>
    %128 = arith.truncf %127 : vector<16x768xf32> to vector<16x768xbf16>
    %129 = vector.extract_strided_slice %126 {offsets = [0, 768], sizes = [16, 128], strides = [1, 1]} : vector<16x896xf32> to vector<16x128xf32>
    %130 = vector.extract_strided_slice %128 {offsets = [0, 0], sizes = [16, 128], strides = [1, 1]} : vector<16x768xbf16> to vector<16x128xbf16>
    %131 = vector.extract_strided_slice %128 {offsets = [0, 128], sizes = [16, 128], strides = [1, 1]} : vector<16x768xbf16> to vector<16x128xbf16>
    %132 = vector.extract_strided_slice %128 {offsets = [0, 256], sizes = [16, 128], strides = [1, 1]} : vector<16x768xbf16> to vector<16x128xbf16>
    %133 = vector.extract_strided_slice %128 {offsets = [0, 384], sizes = [16, 128], strides = [1, 1]} : vector<16x768xbf16> to vector<16x128xbf16>
    %134 = vector.extract_strided_slice %128 {offsets = [0, 512], sizes = [16, 128], strides = [1, 1]} : vector<16x768xbf16> to vector<16x128xbf16>
    %135 = vector.extract_strided_slice %128 {offsets = [0, 640], sizes = [16, 128], strides = [1, 1]} : vector<16x768xbf16> to vector<16x128xbf16>
    %136 = tpu.concatenate %130, %131, %132, %133, %134, %135 in 0 : vector<16x128xbf16>, vector<16x128xbf16>, vector<16x128xbf16>, vector<16x128xbf16>, vector<16x128xbf16>, vector<16x128xbf16> -> vector<96x128xbf16>
    %cst_56 = arith.constant dense<0.000000e+00> : vector<16x128xf32>
    %137 = tpu.matmul %0, %136, %cst_56 {dimension_numbers = #tpu.dot_dimension_numbers<[1], [0], [0], [1], [0, 0, 1, 1], [], []>} : vector<16x96xbf16>, vector<96x128xbf16>, vector<16x128xf32> -> vector<16x128xf32>
    %c3_57 = arith.constant 3 : index
    %c0_58 = arith.constant 0 : index
    %c0_59 = arith.constant 0 : index
    %138 = vector.load %arg8[%c3_57, %c0_58, %c0_59] : memref<4x16x128xf32, #tpu.memory_space<vmem>>, vector<1x16x128xf32>
    %139 = vector.shape_cast %138 : vector<1x16x128xf32> to vector<16x128xf32>
    %140 = arith.addf %137, %139 : vector<16x128xf32>
    %141 = vector.broadcast %1 : vector<16x1xf32> to vector<16x128xf32>
    %142 = arith.mulf %140, %141 : vector<16x128xf32>
    %143 = arith.addf %142, %129 : vector<16x128xf32>
    %cst_60 = arith.constant 0.000000e+00 : f32
    %144 = vector.broadcast %cst_60 : f32 to vector<16x128xf32>
    %145 = arith.maximumf %143, %144 : vector<16x128xf32>
    %c0_61 = arith.constant 0 : index
    %c0_62 = arith.constant 0 : index
    %146 = vector.load %arg1[%c0_61, %c0_62] : memref<16x128xf32, #tpu.memory_space<vmem>>, vector<16x128xf32>
    %147 = arith.truncf %145 : vector<16x128xf32> to vector<16x128xbf16>
    %148 = arith.truncf %146 : vector<16x128xf32> to vector<16x128xbf16>
    %149 = tpu.concatenate %147, %148 in 1 : vector<16x128xbf16>, vector<16x128xbf16> -> vector<16x256xbf16>
    %c0_63 = arith.constant 0 : index
    %c0_64 = arith.constant 0 : index
    %150 = vector.load %arg11[%c0_63, %c0_64] : memref<256x512xbf16, #tpu.memory_space<vmem>>, vector<256x512xbf16>
    %cst_65 = arith.constant dense<0.000000e+00> : vector<16x512xf32>
    %151 = tpu.matmul %149, %150, %cst_65 {dimension_numbers = #tpu.dot_dimension_numbers<[1], [0], [0], [1], [0, 0, 1, 1], [], []>} : vector<16x256xbf16>, vector<256x512xbf16>, vector<16x512xf32> -> vector<16x512xf32>
    %c0_66 = arith.constant 0 : index
    %c0_67 = arith.constant 0 : index
    %152 = vector.load %arg12[%c0_66, %c0_67] : memref<1x512xf32, #tpu.memory_space<vmem>>, vector<1x512xf32>
    %153 = vector.broadcast %152 : vector<1x512xf32> to vector<16x512xf32>
    %154 = arith.addf %151, %153 : vector<16x512xf32>
    %155 = vector.extract_strided_slice %154 {offsets = [0, 0], sizes = [16, 128], strides = [1, 1]} : vector<16x512xf32> to vector<16x128xf32>
    %156 = arith.negf %155 : vector<16x128xf32>
    %157 = math.exp %156 : vector<16x128xf32>
    %cst_68 = arith.constant 1.000000e+00 : f32
    %158 = vector.broadcast %cst_68 : f32 to vector<16x128xf32>
    %159 = arith.addf %158, %157 : vector<16x128xf32>
    %160 = arith.divf %158, %159 : vector<16x128xf32>
    %161 = vector.extract_strided_slice %154 {offsets = [0, 128], sizes = [16, 128], strides = [1, 1]} : vector<16x512xf32> to vector<16x128xf32>
    %162 = arith.negf %161 : vector<16x128xf32>
    %163 = math.exp %162 : vector<16x128xf32>
    %cst_69 = arith.constant 1.000000e+00 : f32
    %164 = vector.broadcast %cst_69 : f32 to vector<16x128xf32>
    %165 = arith.addf %164, %163 : vector<16x128xf32>
    %166 = arith.divf %164, %165 : vector<16x128xf32>
    %167 = vector.extract_strided_slice %154 {offsets = [0, 256], sizes = [16, 128], strides = [1, 1]} : vector<16x512xf32> to vector<16x128xf32>
    %168 = vector.extract_strided_slice %154 {offsets = [0, 384], sizes = [16, 128], strides = [1, 1]} : vector<16x512xf32> to vector<16x128xf32>
    %169 = arith.mulf %160, %168 : vector<16x128xf32>
    %170 = arith.addf %167, %169 : vector<16x128xf32>
    %171 = math.tanh %170 : vector<16x128xf32>
    %cst_70 = arith.constant 1.000000e+00 : f32
    %172 = vector.broadcast %cst_70 : f32 to vector<16x128xf32>
    %173 = arith.subf %172, %166 : vector<16x128xf32>
    %174 = arith.mulf %173, %171 : vector<16x128xf32>
    %175 = arith.mulf %166, %146 : vector<16x128xf32>
    %176 = arith.addf %174, %175 : vector<16x128xf32>
    %c0_71 = arith.constant 0 : index
    %c0_72 = arith.constant 0 : index
    %177 = vector.load %arg13[%c0_71, %c0_72] : memref<16x128xf32, #tpu.memory_space<vmem>>, vector<16x128xf32>
    tpu.vector_store %arg13[%c0_71, %c0_72], %176 {strides = array<i32>} : memref<16x128xf32, #tpu.memory_space<vmem>>, vector<16x128xf32>,
    %c0_73 = arith.constant 0 : index
    %c0_74 = arith.constant 0 : index
    %178 = vector.load %arg14[%c0_73, %c0_74] : memref<16x128xf32, #tpu.memory_space<vmem>>, vector<16x128xf32>
    tpu.vector_store %arg14[%c0_73, %c0_74], %91 {strides = array<i32>} : memref<16x128xf32, #tpu.memory_space<vmem>>, vector<16x128xf32>,
    %c0_75 = arith.constant 0 : index
    %c0_76 = arith.constant 0 : index
    %179 = vector.load %arg15[%c0_75, %c0_76] : memref<16x128xf32, #tpu.memory_space<vmem>>, vector<16x128xf32>
    tpu.vector_store %arg15[%c0_75, %c0_76], %89 {strides = array<i32>} : memref<16x128xf32, #tpu.memory_space<vmem>>, vector<16x128xf32>,
    return
  }
}

</mosaic_0001>

<bundles_post_ra>
// kernel: gcn_forward_packed.1
= control target key start
LH: loop header
LB: loop body
LE: loop exit
PB: predicated region body
PF: predicated region fallthrough
CT: control target
= control target key end

     0   :  { %21 = vsyncpa [#allocation3], 0  ;;  %s5959_s0 = inlined_call_operand.vmem [shape: f32[16,128], index: 0, kind: input, shape index: {}]   ;;  %s5960_s1 = inlined_call_operand.vmem [shape: f32[16,128], index: 1, kind: input, shape index: {}, may-alias: {1,13}]   ;;  %s5961_s2 = inlined_call_operand.vmem [shape: f32[16,128], index: 2, kind: input, shape index: {}, may-alias: {2,14}]   ;;  %s5962_s3 = inlined_call_operand.vmem [shape: f32[16,128], index: 3, kind: input, shape index: {}, may-alias: {3,15}]   ;;  %s5963_s4 = inlined_call_operand.vmem [shape: bf16[16,96], index: 4, kind: input, shape index: {}]   ;;  %s5964_s5 = inlined_call_operand.vmem [shape: f32[16,1], index: 5, kind: input, shape index: {}]   ;;  %s5965_s6 = inlined_call_operand.hbm [shape: bf16[4,128,896], index: 6, kind: input, shape index: {}]   ;;  %s5966_s7 = inlined_call_operand.vmem [shape: f32[4,1,896], index: 7, kind: input, shape index: {}]   ;;  %s5967_s8 = inlined_call_operand.vmem [shape: f32[4,16,128], index: 8, kind: input, shape index: {}]   ;;  %s5968_s9 = inlined_call_operand.hbm [shape: bf16[256,512], index: 9, kind: input, shape index: {}]   ;;  %s5969_s10 = inlined_call_operand.vmem [shape: f32[1,512], index: 10, kind: input, shape index: {}]   ;;  %s5970_s11 = inlined_call_operand.hbm [shape: bf16[256,512], index: 11, kind: input, shape index: {}]   ;;  %s5971_s12 = inlined_call_operand.vmem [shape: f32[1,512], index: 12, kind: input, shape index: {}]   ;;  %s5972_s13 = inlined_call_operand.vmem [shape: f32[16,128], index: 13, kind: output, shape index: {0}, may-alias: {1,13}]   ;;  %s5973_s14 = inlined_call_operand.vmem [shape: f32[16,128], index: 14, kind: output, shape index: {1}, may-alias: {2,14}]   ;;  %s5974_s15 = inlined_call_operand.vmem [shape: f32[16,128], index: 15, kind: output, shape index: {2}, may-alias: {3,15}]  }
   0x1   :  { %22 = vsyncpa [#allocation5], 0  ;;  %s56_s20 = sshll.u32 %s5968_s9, 4  ;;  %s5441_s21 = smov [#allocation4]   ;;  %s57_s20 = int_to_ptr.hbm [resolvable:$true] %s56_s20 }
   0x2   :  { %s58_s22 = sshll.u32 %s5441_s21, 4  ;;  %s39_s25 = sshll.u32 %s5965_s6, 4  ;;  %s59_s22 = int_to_ptr.vmem [resolvable:$true] %s58_s22  ;;  %s40_s25 = int_to_ptr.hbm [resolvable:$true] %s39_s25 }
   0x3   :  { %s5442_s26 = smov 256   ;;  %s5443_s27 = smov 16  }
   0x4   :  { %64 = dma.hbm_to_vmem [thread:$0]  %s57_s20, 8192, %s59_s22, [#allocation5], %s5442_s26, %s5442_s26, %s5443_s27  }
   0x5   :  { %s5444_s28 = smov [#allocation2]   ;;  %s5445_s30 = smov 448  }
   0x6   :  { %s41_s29 = sshll.u32 %s5444_s28, 4  ;;  %s5446_s16 = smov 28   ;;  %s42_s29 = int_to_ptr.vmem [resolvable:$true] %s41_s29 }
   0x7   :  { %47 = dma.hbm_to_vmem [thread:$0]  %s40_s25, 28672, %s42_s29, [#allocation3], %s5445_s30, %s5445_s30, %s5446_s16  }
   0x8   :  { %s71_s18 = sshll.u32 %s5970_s11, 4  ;;  %s5447_s19 = smov [#allocation6]   ;;  %s72_s18 = int_to_ptr.hbm [resolvable:$true] %s71_s18 }
   0x9   :  { %s73_s21 = sshll.u32 %s5447_s19, 4  ;;  %s74_s21 = int_to_ptr.vmem [resolvable:$true] %s73_s21 }
   0xa   :  { %79 = dma.hbm_to_vmem [thread:$0]  %s72_s18, 8192, %s74_s21, [#allocation5], %s5442_s26, %s5442_s26, %s5443_s27  }
   0xb   :  { %5437 = dma.done.wait [#allocation3], 28672  }
   0xc   :  { %5438 = vsyncadd [#allocation3], 4294938624 }
   0xd   :  { %5439 = dma.done.wait [#allocation5], 16384  }
   0xe   :  { %5440 = vsyncadd [#allocation5], 4294950912  ;;  %v3713_v0 = vld [vmem:[#allocation2 + $0x188] sm:$0xf]  ;;  %v5003_v1 = vld [vmem:[#allocation2 + $0x1a0] sm:$0xf0] }
   0xf   :  { %v5000_v2 = vld [vmem:[#allocation2 + $0x18c] sm:$0xf]  ;;  %v3714_v3 = vor.u32 %v5003_v1, %v3713_v0  ;;  %v3715_v4 = vld [vmem:[#allocation2 + $0x1a4] sm:$0xf0]  ;;  %v3685_v5 = vld [vmem:[#allocation2 + $0x150] sm:$0xf] }
  0x10   :  { %v4996_v6 = vld [vmem:[#allocation2 + $0x168] sm:$0xf0]  ;;  %v3718_v7 = vor.u32 %v5000_v2, %v3715_v4  ;;  %v4993_v8 = vld [vmem:[#allocation2 + $0x154] sm:$0xf]  ;;  %v3687_v9 = vld [vmem:[#allocation2 + $0x16c] sm:$0xf0] }
  0x11   :  { %470 = vmatpush.bf16.msra.mxu0 %v3714_v3  ;;  %v3686_v10 = vor.u32 %v4996_v6, %v3685_v5  ;;  %v3690_v11 = vor.u32 %v4993_v8, %v3687_v9  ;;  %v3657_v12 = vld [vmem:[#allocation2 + $0x118] sm:$0xf]  ;;  %v4989_v13 = vld [vmem:[#allocation2 + $0x130] sm:$0xf0]  ;;  %v4986_v14 = vld [vmem:[#allocation2 + $0x11c] sm:$0xf] }
  0x12   :  { %484 = vmatpush.bf16.msra.mxu1 %v3718_v7  ;;  %v3659_v15 = vld [vmem:[#allocation2 + $0x134] sm:$0xf0]  ;;  %v3658_v16 = vor.u32 %v4989_v13, %v3657_v12  ;;  %v3629_v17 = vld [vmem:[#allocation2 + $0xe0] sm:$0xf]  ;;  %v4982_v18 = vld [vmem:[#allocation2 + $0xf8] sm:$0xf0] }
  0x13   :  { %v3662_v19 = vor.u32 %v4986_v14, %v3659_v15  ;;  %v3721_v20 = vld [vmem:[#allocation2 + $0x190] sm:$0xf]  ;;  %v5004_v21 = vld [vmem:[#allocation2 + $0x1a8] sm:$0xf0]  ;;  %v5001_v22 = vld [vmem:[#allocation2 + $0x194] sm:$0xf]  ;;  %v3630_v29 = vor.u32 %v4982_v18, %v3629_v17 }
  0x14   :  { %v4979_v23 = vld [vmem:[#allocation2 + $0xe4] sm:$0xf]  ;;  %v3631_v24 = vld [vmem:[#allocation2 + $0xfc] sm:$0xf0]  ;;  %v3722_v25 = vor.u32 %v5004_v21, %v3721_v20  ;;  %v3723_v26 = vld [vmem:[#allocation2 + $0x1ac] sm:$0xf0] }
  0x15   :  { %471 = vmatpush.bf16.msra.mxu0 %v3686_v10  ;;  %v3726_v27 = vor.u32 %v5001_v22, %v3723_v26  ;;  %v3693_v28 = vld [vmem:[#allocation2 + $0x158] sm:$0xf]  ;;  %v4997_v30 = vld [vmem:[#allocation2 + $0x170] sm:$0xf0]  ;;  %v4994_v31 = vld [vmem:[#allocation2 + $0x15c] sm:$0xf]  ;;  %v3634_v33 = vor.u32 %v4979_v23, %v3631_v24 }
  0x16   :  { %485 = vmatpush.bf16.msra.mxu1 %v3690_v11  ;;  %498 = vmatpush.bf16.msra.mxu2 %v3722_v25  ;;  %v3695_v32 = vld [vmem:[#allocation2 + $0x174] sm:$0xf0]  ;;  %v3601_v34 = vld [vmem:[#allocation2 + $0xa8] sm:$0xf]  ;;  %v4975_v35 = vld [vmem:[#allocation2 + $0xc0] sm:$0xf0]  ;;  %v3694_v36 = vor.u32 %v4997_v30, %v3693_v28 }
  0x17   :  { %512 = vmatpush.bf16.msra.mxu3 %v3726_v27  ;;  %v3698_v37 = vor.u32 %v4994_v31, %v3695_v32  ;;  %v4972_v38 = vld [vmem:[#allocation2 + $0xac] sm:$0xf]  ;;  %v3603_v39 = vld [vmem:[#allocation2 + $0xc4] sm:$0xf0]  ;;  %v3665_v40 = vld [vmem:[#allocation2 + $0x120] sm:$0xf]  ;;  %v3602_v41 = vor.u32 %v4975_v35, %v3601_v34 }
  0x18   :  { %v4990_v42 = vld [vmem:[#allocation2 + $0x138] sm:$0xf0]  ;;  %v4987_v43 = vld [vmem:[#allocation2 + $0x124] sm:$0xf]  ;;  %v3667_v44 = vld [vmem:[#allocation2 + $0x13c] sm:$0xf0]  ;;  %v3606_v45 = vor.u32 %v4972_v38, %v3603_v39 }
  0x19   :  { %472 = vmatpush.bf16.msra.mxu0 %v3658_v16  ;;  %v3573_v46 = vld [vmem:[#allocation2 + $0x70] sm:$0xf]  ;;  %v4968_v47 = vld [vmem:[#allocation2 + $0x88] sm:$0xf0]  ;;  %v4965_v48 = vld [vmem:[#allocation2 + $0x74] sm:$0xf]  ;;  %v3666_v49 = vor.u32 %v4990_v42, %v3665_v40  ;;  %v3670_v50 = vor.u32 %v4987_v43, %v3667_v44 }
  0x1a   :  { %486 = vmatpush.bf16.msra.mxu1 %v3662_v19  ;;  %499 = vmatpush.bf16.msra.mxu2 %v3694_v36  ;;  %v3575_v51 = vld [vmem:[#allocation2 + $0x8c] sm:$0xf0]  ;;  %v3637_v52 = vld [vmem:[#allocation2 + $0xe8] sm:$0xf]  ;;  %v4983_v53 = vld [vmem:[#allocation2 + $0x100] sm:$0xf0]  ;;  %v3574_v56 = vor.u32 %v4968_v47, %v3573_v46 }
  0x1b   :  { %513 = vmatpush.bf16.msra.mxu3 %v3698_v37  ;;  %v4980_v54 = vld [vmem:[#allocation2 + $0xec] sm:$0xf]  ;;  %v3639_v55 = vld [vmem:[#allocation2 + $0x104] sm:$0xf0]  ;;  %v3545_v57 = vld [vmem:[#allocation2 + $0x38] sm:$0xf]  ;;  %v3638_v59 = vor.u32 %v4983_v53, %v3637_v52  ;;  %v3578_v60 = vor.u32 %v4965_v48, %v3575_v51 }
  0x1c   :  { %v4961_v58 = vld [vmem:[#allocation2 + $0x50] sm:$0xf0]  ;;  %v4958_v61 = vld [vmem:[#allocation2 + $0x3c] sm:$0xf]  ;;  %v3547_v62 = vld [vmem:[#allocation2 + $0x54] sm:$0xf0]  ;;  %v3642_v63 = vor.u32 %v4980_v54, %v3639_v55 }
  0x1d   :  { %473 = vmatpush.bf16.msra.mxu0 %v3630_v29  ;;  %v3609_v0 = vld [vmem:[#allocation2 + $0xb0] sm:$0xf]  ;;  %v4976_v1 = vld [vmem:[#allocation2 + $0xc8] sm:$0xf0]  ;;  %v4973_v2 = vld [vmem:[#allocation2 + $0xb4] sm:$0xf]  ;;  %v3546_v4 = vor.u32 %v4961_v58, %v3545_v57  ;;  %v3550_v9 = vor.u32 %v4958_v61, %v3547_v62 }
  0x1e   :  { %487 = vmatpush.bf16.msra.mxu1 %v3634_v33  ;;  %500 = vmatpush.bf16.msra.mxu2 %v3666_v49  ;;  %v3611_v3 = vld [vmem:[#allocation2 + $0xcc] sm:$0xf0]  ;;  %v3517_v5 = vld [vmem:[#allocation2] sm:$0xf]  ;;  %v4954_v6 = vld [vmem:[#allocation2 + $0x18] sm:$0xf0]  ;;  %v3610_v8 = vor.u32 %v4976_v1, %v3609_v0 }
  0x1f   :  { %514 = vmatpush.bf16.msra.mxu3 %v3670_v50  ;;  %v4951_v7 = vld [vmem:[#allocation2 + $0x4] sm:$0xf]  ;;  %v3519_v10 = vld [vmem:[#allocation2 + $0x1c] sm:$0xf0]  ;;  %v3614_v11 = vor.u32 %v4973_v2, %v3611_v3  ;;  %v3581_v12 = vld [vmem:[#allocation2 + $0x78] sm:$0xf]  ;;  %v3518_v20 = vor.u32 %v4954_v6, %v3517_v5 }
  0x20   :  { %v4969_v13 = vld [vmem:[#allocation2 + $0x90] sm:$0xf0]  ;;  %v3729_v14 = vld [vmem:[#allocation2 + $0x198] sm:$0xf]  ;;  %v5002_v16 = vld [vmem:[#allocation2 + $0x19c] sm:$0xf]  ;;  %v3522_v24 = vor.u32 %v4951_v7, %v3519_v10 }
  0x21   :  { %474 = vmatpush.bf16.msra.mxu0 %v3602_v41  ;;  %v5005_v15 = vld [vmem:[#allocation2 + $0x1b0] sm:$0xf0]  ;;  %v3731_v17 = vld [vmem:[#allocation2 + $0x1b4] sm:$0xf0]  ;;  %v4966_v18 = vld [vmem:[#allocation2 + $0x7c] sm:$0xf]  ;;  %v3582_v23 = vor.u32 %v4969_v13, %v3581_v12 }
  0x22   :  { %488 = vmatpush.bf16.msra.mxu1 %v3606_v45  ;;  %501 = vmatpush.bf16.msra.mxu2 %v3638_v59  ;;  %v3583_v19 = vld [vmem:[#allocation2 + $0x94] sm:$0xf0]  ;;  %v99_v21 = vld [vmem:[%s5959_s0] sm:$0xff]  ;;  %v100_v22 = vld [vmem:[%s5959_s0 + $0x8] sm:$0xff]  ;;  %v3730_v25 = vor.u32 %v5005_v15, %v3729_v14  ;;  %v3734_v28 = vor.u32 %v5002_v16, %v3731_v17  ;;  %vm611_vm0 = vcmask 785408  }
  0x23   :  { %515 = vmatpush.bf16.msra.mxu3 %v3642_v63  ;;  %v3553_v26 = vld [vmem:[#allocation2 + $0x40] sm:$0xf]  ;;  %v4962_v27 = vld [vmem:[#allocation2 + $0x58] sm:$0xf0]  ;;  %v4995_v31 = vld [vmem:[#allocation2 + $0x164] sm:$0xf]  ;;  %v3586_v32 = vor.u32 %v4966_v18, %v3583_v19  ;;  %v5544_v34 = vpack.c.bf16 %v100_v22, %v99_v21 }
  0x24   :  { %v3701_v29 = vld [vmem:[#allocation2 + $0x160] sm:$0xf]  ;;  %v4998_v30 = vld [vmem:[#allocation2 + $0x178] sm:$0xf0]  ;;  %v4959_v35 = vld [vmem:[#allocation2 + $0x44] sm:$0xf]  ;;  %v3554_v37 = vor.u32 %v4962_v27, %v3553_v26 }
  0x25   :  { %475 = vmatpush.bf16.msra.mxu0 %v3574_v56  ;;  %v3703_v33 = vld [vmem:[#allocation2 + $0x17c] sm:$0xf0]  ;;  %v3702_v38 = vor.u32 %v4998_v30, %v3701_v29  ;;  %v3525_v39 = vld [vmem:[#allocation2 + $0x8] sm:$0xf]  ;;  %v4955_v40 = vld [vmem:[#allocation2 + $0x20] sm:$0xf0] }
  0x26   :  { %489 = vmatpush.bf16.msra.mxu1 %v3578_v60  ;;  %502 = vmatpush.bf16.msra.mxu2 %v3610_v8  ;;  %v3555_v36 = vld [vmem:[#allocation2 + $0x5c] sm:$0xf0]  ;;  %v3706_v41 = vor.u32 %v4995_v31, %v3703_v33  ;;  %v3673_v42 = vld [vmem:[#allocation2 + $0x128] sm:$0xf]  ;;  %v4991_v43 = vld [vmem:[#allocation2 + $0x140] sm:$0xf0]  ;;  %v3526_v49 = vor.u32 %v4955_v40, %v3525_v39 }
  0x27   :  { %516 = vmatpush.bf16.msra.mxu3 %v3614_v11  ;;  %v4988_v44 = vld [vmem:[#allocation2 + $0x12c] sm:$0xf]  ;;  %v3558_v45 = vor.u32 %v4959_v35, %v3555_v36  ;;  %v3675_v46 = vld [vmem:[#allocation2 + $0x144] sm:$0xf0]  ;;  %v3674_v50 = vor.u32 %v4991_v43, %v3673_v42  ;;  %v3645_v52 = vld [vmem:[#allocation2 + $0xf0] sm:$0xf] }
  0x28   :  { %v4952_v47 = vld [vmem:[#allocation2 + $0xc] sm:$0xf]  ;;  %v3527_v48 = vld [vmem:[#allocation2 + $0x24] sm:$0xf0]  ;;  %v3678_v51 = vor.u32 %v4988_v44, %v3675_v46  ;;  %v4981_v55 = vld [vmem:[#allocation2 + $0xf4] sm:$0xf] }
  0x29   :  { %476 = vmatpush.bf16.msra.mxu0 %v3546_v4  ;;  %v4984_v53 = vld [vmem:[#allocation2 + $0x108] sm:$0xf0]  ;;  %v3530_v54 = vor.u32 %v4952_v47, %v3527_v48  ;;  %v3647_v56 = vld [vmem:[#allocation2 + $0x10c] sm:$0xf0]  ;;  %v3617_v59 = vld [vmem:[#allocation2 + $0xb8] sm:$0xf] }
  0x2a   :  { %490 = vmatpush.bf16.msra.mxu1 %v3550_v9  ;;  %503 = vmatpush.bf16.msra.mxu2 %v3582_v23  ;;  %v3646_v57 = vor.u32 %v4984_v53, %v3645_v52  ;;  %v3650_v58 = vor.u32 %v4981_v55, %v3647_v56  ;;  %v4977_v60 = vld [vmem:[#allocation2 + $0xd0] sm:$0xf0]  ;;  %v4974_v61 = vld [vmem:[#allocation2 + $0xbc] sm:$0xf]  ;;  %v3619_v62 = vld [vmem:[#allocation2 + $0xd4] sm:$0xf0] }
  0x2b   :  { %517 = vmatpush.bf16.msra.mxu3 %v3586_v32  ;;  %v3618_v63 = vor.u32 %v4977_v60, %v3617_v59  ;;  %v3622_v0 = vor.u32 %v4974_v61, %v3619_v62  ;;  %v3589_v1 = vld [vmem:[#allocation2 + $0x80] sm:$0xf]  ;;  %v4970_v2 = vld [vmem:[#allocation2 + $0x98] sm:$0xf0]  ;;  %v4967_v3 = vld [vmem:[#allocation2 + $0x84] sm:$0xf] }
  0x2c   :  { %v3591_v4 = vld [vmem:[#allocation2 + $0x9c] sm:$0xf0]  ;;  %v3590_v5 = vor.u32 %v4970_v2, %v3589_v1  ;;  %v3561_v7 = vld [vmem:[#allocation2 + $0x48] sm:$0xf]  ;;  %v4963_v8 = vld [vmem:[#allocation2 + $0x60] sm:$0xf0] }
  0x2d   :  { %477 = vmatpush.bf16.msra.mxu0 %v3518_v20  ;;  %v3594_v6 = vor.u32 %v4967_v3, %v3591_v4  ;;  %v4960_v9 = vld [vmem:[#allocation2 + $0x4c] sm:$0xf]  ;;  %v3563_v10 = vld [vmem:[#allocation2 + $0x64] sm:$0xf0]  ;;  %v3562_v11 = vor.u32 %v4963_v8, %v3561_v7  ;;  %v3533_v13 = vld [vmem:[#allocation2 + $0x10] sm:$0xf] }
  0x2e   :  { %491 = vmatpush.bf16.msra.mxu1 %v3522_v24  ;;  %504 = vmatpush.bf16.msra.mxu2 %v3554_v37  ;;  %v3566_v12 = vor.u32 %v4960_v9, %v3563_v10  ;;  %v4956_v14 = vld [vmem:[#allocation2 + $0x28] sm:$0xf0]  ;;  %v4953_v15 = vld [vmem:[#allocation2 + $0x14] sm:$0xf]  ;;  %v3535_v16 = vld [vmem:[#allocation2 + $0x2c] sm:$0xf0] }
  0x2f   :  { %518 = vmatpush.bf16.msra.mxu3 %v3558_v45  ;;  %v3534_v17 = vor.u32 %v4956_v14, %v3533_v13  ;;  %v3538_v18 = vor.u32 %v4953_v15, %v3535_v16  ;;  %v3737_v19 = vld [vmem:[#allocation2 + $0x1a0] sm:$0xf]  ;;  %v5006_v20 = vld [vmem:[#allocation2 + $0x1b8] sm:$0xf0]  ;;  %v3709_v22 = vld [vmem:[#allocation2 + $0x168] sm:$0xf] }
  0x30   :  { %478 = vmatmul.bf16.vlgmr.msra.gmra.mxu0 %v5544_v34  ;;  %v3738_v21 = vor.u32 %v5006_v20, %v3737_v19  ;;  %v4999_v23 = vld [vmem:[#allocation2 + $0x180] sm:$0xf0]  ;;  %v4992_v26 = vld [vmem:[#allocation2 + $0x148] sm:$0xf0]  ;;  %v4985_v29 = vld [vmem:[#allocation2 + $0x110] sm:$0xf0] }
  0x31   :  { %526 = vmatpush.bf16.msrb.mxu0 %v3730_v25  ;;  %492 = vmatmul.bf16.vlgmr.msra.gmra.mxu1 %v5544_v34  ;;  %v3710_v24 = vor.u32 %v4999_v23, %v3709_v22  ;;  %v3681_v25 = vld [vmem:[#allocation2 + $0x130] sm:$0xf]  ;;  %v3625_v33 = vld [vmem:[#allocation2 + $0xc0] sm:$0xf]  ;;  %v4978_v35 = vld [vmem:[#allocation2 + $0xd8] sm:$0xf0] }
  0x32   :  { %540 = vmatpush.bf16.msrb.mxu1 %v3734_v28  ;;  %505 = vmatpush.bf16.msra.mxu2 %v3526_v49  ;;  %v3682_v27 = vor.u32 %v4992_v26, %v3681_v25  ;;  %v3653_v28 = vld [vmem:[#allocation2 + $0xf8] sm:$0xf]  ;;  %v3626_v36 = vor.u32 %v4978_v35, %v3625_v33  ;;  %v3597_v37 = vld [vmem:[#allocation2 + $0x88] sm:$0xf]  ;;  %v3569_v42 = vld [vmem:[#allocation2 + $0x50] sm:$0xf] }
  0x33   :  { %519 = vmatpush.bf16.msra.mxu3 %v3530_v54  ;;  %v3654_v30 = vor.u32 %v4985_v29, %v3653_v28  ;;  %v4964_v43 = vld [vmem:[#allocation2 + $0x68] sm:$0xf0]  ;;  %v3541_v45 = vld [vmem:[#allocation2 + $0x18] sm:$0xf]  ;;  %v4957_v46 = vld [vmem:[#allocation2 + $0x30] sm:$0xf0] }
  0x34   :  { %v3570_v44 = vor.u32 %v4964_v43, %v3569_v42  ;;  %v3542_v48 = vor.u32 %v4957_v46, %v3541_v45  ;;  %v5448_v3 = vmov 0   ;;  %v3945_v4 = vld [vmem:[#allocation2 + $0x364] sm:$0xf0]  ;;  %v3951_v8 = vld [vmem:[#allocation2 + $0x350] sm:$0xf] }
  0x35   :  { %527 = vmatpush.bf16.msrb.mxu0 %v3702_v38  ;;  %506 = vmatmul.bf16.vlgmr.msra.gmra.mxu2 %v5544_v34  ;;  %v4971_v38 = vld [vmem:[#allocation2 + $0xa0] sm:$0xf0]  ;;  %v5060_v9 = vld [vmem:[#allocation2 + $0x368] sm:$0xf0]  ;;  %v5049_v14 = vld [vmem:[#allocation2 + $0x314] sm:$0xf] }
  0x36   :  { %541 = vmatpush.bf16.msrb.mxu1 %v3706_v41  ;;  %520 = vmatmul.bf16.vlgmr.msra.gmra.mxu3 %v5544_v34  ;;  %v3598_v39 = vor.u32 %v4971_v38, %v3597_v37  ;;  %v3952_v13 = vor.u32 %v5060_v9, %v3951_v8  ;;  %v3917_v15 = vld [vmem:[#allocation2 + $0x32c] sm:$0xf0]  ;;  %v5053_v19 = vld [vmem:[#allocation2 + $0x330] sm:$0xf0]  ;;  %v3889_v25 = vld [vmem:[#allocation2 + $0x2f4] sm:$0xf0] }
  0x37   :  { %554 = vmatpush.bf16.msrb.mxu2 %v3738_v21  ;;  %5311 = vset.pattern.permute.xlu0 %v5448_v3  ;;  %v3895_v26 = vld [vmem:[#allocation2 + $0x2e0] sm:$0xf]  ;;  %v98_v33 = vld [vmem:[%s5964_s5 + $0x8] sm:$0xff]  ;;  %v5046_v35 = vld [vmem:[#allocation2 + $0x2f8] sm:$0xf0] }
  0x38   :  { %v3896_v38 = vor.u32 %v5046_v35, %v3895_v26  ;;  %v3861_v45 = vld [vmem:[#allocation2 + $0x2bc] sm:$0xf0]  ;;  %v3867_v46 = vld [vmem:[#allocation2 + $0x2a8] sm:$0xf]  ;;  %v3803_v26 = vld [vmem:[#allocation2 + $0x230] sm:$0xf] }
  0x39   :  { %528 = vmatpush.bf16.msrb.mxu0 %v3674_v50  ;;  %v3943_v9 = vld [vmem:[#allocation2 + $0x348] sm:$0xf]  ;;  %v5025_v35 = vld [vmem:[#allocation2 + $0x250] sm:$0xf0] }
  0x3a   :  { %542 = vmatpush.bf16.msrb.mxu1 %v3678_v51  ;;  %v5563_v51 = vld [vmem:[%s5966_s7] sm:$0xff] }
  0x3b   :  { %555 = vmatpush.bf16.msrb.mxu2 %v3710_v24  ;;  %v172_v53 = vperm.slane %v5563_v51, 4  ;;  %v173_v54 = vperm.slane %v5563_v51, 5  ;;  %v168_v16 = vperm.slane %v5563_v51, 0  ;;  %v169_v20 = vperm.slane %v5563_v51, 1  ;;  %v5042_v24 = vld [vmem:[#allocation2 + $0x2dc] sm:$0xf] }
  0x3d   :  { %529 = vmatpush.bf16.msrb.mxu0 %v3646_v57  ;;  %v170_v57 = vperm.slane %v5563_v51, 2 }
  0x3e   :  { %543 = vmatpush.bf16.msrb.mxu1 %v3650_v58  ;;  %v171_v58 = vperm.slane %v5563_v51, 3 }
  0x3f   :  { %556 = vmatpush.bf16.msrb.mxu2 %v3682_v27 }
  0x41   :  { %530 = vmatpush.bf16.msrb.mxu0 %v3618_v63 }
  0x42   :  { %544 = vmatpush.bf16.msrb.mxu1 %v3622_v0  ;;  %v97_v0 = vld [vmem:[%s5964_s5] sm:$0xff] }
  0x43   :  { %557 = vmatpush.bf16.msrb.mxu2 %v3654_v30  ;;  %631 = vperm.xlu0 %5311, %v97_v0   ;;  %v3925_v0 = vld [vmem:[#allocation2 + $0x334] sm:$0xf0] }
  0x45   :  { %531 = vmatpush.bf16.msrb.mxu0 %v3590_v5 }
  0x46   :  { %545 = vmatpush.bf16.msrb.mxu1 %v3594_v6 }
  0x47   :  { %558 = vmatpush.bf16.msrb.mxu2 %v3626_v36  ;;  %v3892_v36 = vor.u32 %v5042_v24, %v3889_v25  ;;  %v5031_v24 = vld [vmem:[#allocation2 + $0x280] sm:$0xf0] }
  0x49   :  { %532 = vmatpush.bf16.msrb.mxu0 %v3562_v11 }
  0x4a   :  { %546 = vmatpush.bf16.msrb.mxu1 %v3566_v12 }
  0x4b   :  { %559 = vmatpush.bf16.msrb.mxu2 %v3598_v39  ;;  %636 = vperm.xlu0 %5311, %v98_v33   ;;  %v3811_v33 = vld [vmem:[#allocation2 + $0x238] sm:$0xf] }
  0x4d   :  { %533 = vmatpush.bf16.msrb.mxu0 %v3534_v17  ;;  %v3920_v17 = vor.u32 %v5049_v14, %v3917_v15  ;;  %v5052_v14 = vld [vmem:[#allocation2 + $0x328] sm:$0xf0]  ;;  %v5585_v15 = vld [vmem:[%s5963_s4] sm:$0xff] }
  0x4e   :  { %547 = vmatpush.bf16.msrb.mxu1 %v3538_v18  ;;  %v3923_v18 = vld [vmem:[#allocation2 + $0x318] sm:$0xf] }
  0x4f   :  { %560 = vmatpush.bf16.msrb.mxu2 %v3570_v44  ;;  %v3924_v23 = vor.u32 %v5053_v19, %v3923_v18  ;;  %v5035_v44 = vld [vmem:[#allocation2 + $0x2a4] sm:$0xf]  ;;  %v5045_v18 = vld [vmem:[#allocation2 + $0x2f0] sm:$0xf0] }
  0x50   :  { %534 = vmatmul.bf16.vlgmr.msrb.gmra.mxu0 %v5544_v34 }
  0x51   :  { %548 = vmatmul.bf16.vlgmr.msrb.gmra.mxu1 %v5544_v34 }
  0x52   :  { %1044 = vmatpush.bf16.msra.mxu1 %v3952_v13  ;;  %v3915_v13 = vld [vmem:[#allocation2 + $0x310] sm:$0xf] }
  0x53   :  { %561 = vmatpush.bf16.msrb.mxu2 %v3542_v48 }
  0x56   :  { %562 = vmatmul.bf16.vlgmr.msrb.gmra.mxu2 %v5544_v34  ;;  %v5056_v34 = vld [vmem:[#allocation2 + $0x34c] sm:$0xf]  ;;  %1045 = vmatpush.bf16.msra.mxu1 %v3924_v23  ;;  %v3831_v23 = vld [vmem:[#allocation2 + $0x268] sm:$0xf] }
  0x57   :  { %v3948_v7 = vor.u32 %v5056_v34, %v3945_v4  ;;  %v3832_v25 = vor.u32 %v5031_v24, %v3831_v23  ;;  %v3903_v23 = vld [vmem:[#allocation2 + $0x2e8] sm:$0xf] }
  0x59   :  { %1030 = vmatpush.bf16.msra.mxu0 %v3948_v7 }
  0x5a   :  { %1046 = vmatpush.bf16.msra.mxu1 %v3896_v38  ;;  %v5043_v38 = vld [vmem:[#allocation2 + $0x2e4] sm:$0xf] }
  0x5d   :  { %1031 = vmatpush.bf16.msra.mxu0 %v3920_v17  ;;  %v3887_v17 = vld [vmem:[#allocation2 + $0x2d8] sm:$0xf] }
  0x5e   :  { %v3888_v19 = vor.u32 %v5045_v18, %v3887_v17  ;;  %v3939_v18 = vld [vmem:[#allocation2 + $0x328] sm:$0xf] }
  0x61   :  { %1032 = vmatpush.bf16.msra.mxu0 %v3892_v36 }
  0xad   :  { %v5552_v31 = vpop.f32.mrf.mxu0 }
  0xae   :  { %v5554_v32 = vpop.f32.mrf.mxu1  ;;  %v480_v39 = vadd.f32 %v5552_v31, %v168_v16 }
  0xaf   :  { %v494_v42 = vadd.f32 %v5554_v32, %v169_v20 }
  0xb1   :  { %v568_v32 = vpack.c.bf16 %v494_v42, %v480_v39  ;;  %v3897_v39 = vld [vmem:[#allocation2 + $0x2fc] sm:$0xf0]  ;;  %v3775_v42 = vld [vmem:[#allocation2 + $0x1f8] sm:$0xf] }
  0xb3   :  { %v580_v4 = vunpack.c.h.b16 %v568_v32  ;;  %v576_v7 = vunpack.c.l.b16 %v568_v32  ;;  %v5007_v32 = vld [vmem:[#allocation2 + $0x1c4] sm:$0xf] }
  0xb5   :  { %v5556_v40 = vpop.f32.mrf.mxu0 }
  0xb6   :  { %v5558_v41 = vpop.f32.mrf.mxu1  ;;  %v482_v43 = vadd.f32 %v5556_v40, %v168_v16  ;;  %v5028_v40 = vld [vmem:[#allocation2 + $0x26c] sm:$0xf]  ;;  %v3916_v16 = vor.u32 %v5052_v14, %v3915_v13  ;;  %v5051_v13 = vld [vmem:[#allocation2 + $0x324] sm:$0xf]  ;;  %v3933_v14 = vld [vmem:[#allocation2 + $0x33c] sm:$0xf0] }
  0xb7   :  { %v3936_v17 = vor.u32 %v5051_v13, %v3933_v14  ;;  %v3771_v13 = vld [vmem:[#allocation2 + $0x1d8] sm:$0xf]  ;;  %v5013_v14 = vld [vmem:[#allocation2 + $0x1f0] sm:$0xf0] }
  0xb8   :  { %v507_v47 = vpop.f32.mrf.mxu2 }
  0xb9   :  { %v521_v49 = vpop.f32.mrf.mxu3  ;;  %v508_v5 = vadd.f32 %v507_v47, %v170_v57  ;;  %v496_v47 = vadd.f32 %v5558_v41, %v169_v20  ;;  %v3859_v20 = vld [vmem:[#allocation2 + $0x2a0] sm:$0xf] }
  0xba   :  { %v522_v6 = vadd.f32 %v521_v49, %v171_v58 }
  0xbc   :  { %v569_v27 = vpack.c.bf16 %v522_v6, %v508_v5 }
  0xbe   :  { %v590_v49 = vunpack.c.h.b16 %v569_v27  ;;  %v586_v41 = vunpack.c.l.b16 %v569_v27  ;;  %v5024_v27 = vld [vmem:[#allocation2 + $0x248] sm:$0xf0] }
  0xc0   :  { %v509_v59 = vpop.f32.mrf.mxu2 }
  0xc1   :  { %v523_v61 = vpop.f32.mrf.mxu3  ;;  %v510_v10 = vadd.f32 %v509_v59, %v170_v57  ;;  %v3833_v57 = vld [vmem:[#allocation2 + $0x284] sm:$0xf0]  ;;  %v571_v59 = vpack.c.bf16 %v496_v47, %v482_v43  ;;  %v3900_v43 = vor.u32 %v5043_v38, %v3897_v39  ;;  %v3875_v38 = vld [vmem:[#allocation2 + $0x2b0] sm:$0xf] }
  0xc2   :  { %v524_v11 = vadd.f32 %v523_v61, %v171_v58  ;;  %v3839_v58 = vld [vmem:[#allocation2 + $0x270] sm:$0xf] }
  0xc3   :  { %v581_v5 = vunpack.c.h.b16 %v571_v59  ;;  %v577_v8 = vunpack.c.l.b16 %v571_v59  ;;  %v5011_v59 = vld [vmem:[#allocation2 + $0x1e0] sm:$0xf0] }
  0xc4   :  { %v572_v28 = vpack.c.bf16 %v524_v11, %v510_v10  ;;  %v5059_v10 = vld [vmem:[#allocation2 + $0x360] sm:$0xf0] }
  0xc5   :  { %v582_v6 = vpack.c.b16 %v581_v5, %v580_v4  ;;  %v3944_v11 = vor.u32 %v5059_v10, %v3943_v9  ;;  %v3967_v5 = vld [vmem:[#allocation2 + $0x360] sm:$0xf]  ;;  %v3813_v9 = vld [vmem:[#allocation2 + $0x254] sm:$0xf0] }
  0xc6   :  { %v587_v61 = vunpack.c.l.b16 %v572_v28  ;;  %v3931_v10 = vld [vmem:[#allocation2 + $0x320] sm:$0xf] }
  0xc8   :  { %v588_v34 = vpack.c.b16 %v587_v61, %v586_v41  ;;  %v5029_v61 = vld [vmem:[#allocation2 + $0x274] sm:$0xf] }
  0xcd   :  { %v535_v50 = vpop.f32.mrf.mxu0 }
  0xce   :  { %v549_v52 = vpop.f32.mrf.mxu1  ;;  %v536_v55 = vadd.f32 %v535_v50, %v172_v53  ;;  %v591_v50 = vunpack.c.h.b16 %v572_v28  ;;  %v5021_v28 = vld [vmem:[#allocation2 + $0x234] sm:$0xf] }
  0xcf   :  { %v550_v56 = vadd.f32 %v549_v52, %v173_v54  ;;  %v5039_v52 = vld [vmem:[#allocation2 + $0x2c0] sm:$0xf0] }
  0xd0   :  { %v3868_v31 = vor.u32 %v5039_v52, %v3867_v46  ;;  %v3777_v46 = vld [vmem:[#allocation2 + $0x214] sm:$0xf0] }
  0xd1   :  { %v570_v1 = vpack.c.bf16 %v550_v56, %v536_v55  ;;  %v3864_v55 = vor.u32 %v5035_v44, %v3861_v45  ;;  %v5017_v44 = vld [vmem:[#allocation2 + $0x210] sm:$0xf0]  ;;  %v5014_v45 = vld [vmem:[#allocation2 + $0x1fc] sm:$0xf] }
  0xd2   :  { %1047 = vmatpush.bf16.msra.mxu1 %v3868_v31  ;;  %v3776_v47 = vor.u32 %v5017_v44, %v3775_v42  ;;  %v5010_v31 = vld [vmem:[#allocation2 + $0x1d8] sm:$0xf0]  ;;  %v5040_v42 = vld [vmem:[#allocation2 + $0x2c8] sm:$0xf0]  ;;  %v3877_v44 = vld [vmem:[#allocation2 + $0x2cc] sm:$0xf0] }
  0xd3   :  { %v600_v21 = vunpack.c.h.b16 %v570_v1  ;;  %v596_v37 = vunpack.c.l.b16 %v570_v1  ;;  %1033 = vmatpush.bf16.msra.mxu0 %v3864_v55  ;;  %v3836_v1 = vor.u32 %v5028_v40, %v3833_v57  ;;  %v3749_v57 = vld [vmem:[#allocation2 + $0x1dc] sm:$0xf0] }
  0xd5   :  { %v537_v60 = vpop.f32.mrf.mxu0 }
  0xd6   :  { %v538_v62 = vadd.f32 %v537_v60, %v172_v53  ;;  %v551_v63 = vpop.f32.mrf.mxu1  ;;  %v5057_v53 = vld [vmem:[#allocation2 + $0x354] sm:$0xf]  ;;  %v592_v60 = vpack.c.b16 %v591_v50, %v590_v49  ;;  %v3783_v49 = vld [vmem:[#allocation2 + $0x200] sm:$0xf]  ;;  %v5018_v50 = vld [vmem:[#allocation2 + $0x218] sm:$0xf0] }
  0xd7   :  { %v552_v2 = vadd.f32 %v551_v63, %v173_v54  ;;  %v3953_v54 = vld [vmem:[#allocation2 + $0x36c] sm:$0xf0]  ;;  %v5050_v63 = vld [vmem:[#allocation2 + $0x31c] sm:$0xf]  ;;  %1034 = vmatpush.bf16.msra.mxu0 %v3836_v1  ;;  %v3784_v52 = vor.u32 %v5018_v50, %v3783_v49  ;;  %v5061_v1 = vld [vmem:[#allocation2 + $0x370] sm:$0xf0] }
  0xd8   :  { %v3956_v56 = vor.u32 %v5057_v53, %v3953_v54  ;;  %v5036_v53 = vld [vmem:[#allocation2 + $0x2ac] sm:$0xf]  ;;  %v3869_v54 = vld [vmem:[#allocation2 + $0x2c4] sm:$0xf0]  ;;  %v3847_v50 = vld [vmem:[#allocation2 + $0x278] sm:$0xf] }
  0xd9   :  { %v573_v12 = vpack.c.bf16 %v552_v2, %v538_v62  ;;  %v5032_v62 = vld [vmem:[#allocation2 + $0x288] sm:$0xf0]  ;;  %v3928_v2 = vor.u32 %v5050_v63, %v3925_v0  ;;  %v3872_v55 = vor.u32 %v5036_v53, %v3869_v54  ;;  %v3959_v63 = vld [vmem:[#allocation2 + $0x358] sm:$0xf]  ;;  %v5030_v53 = vld [vmem:[#allocation2 + $0x27c] sm:$0xf] }
  0xda   :  { %1058 = vmatpush.bf16.msra.mxu2 %v3956_v56  ;;  %v3840_v3 = vor.u32 %v5032_v62, %v3839_v58  ;;  %v3747_v56 = vld [vmem:[#allocation2 + $0x1c0] sm:$0xf]  ;;  %v3755_v58 = vld [vmem:[#allocation2 + $0x1c8] sm:$0xf]  ;;  %v3841_v62 = vld [vmem:[#allocation2 + $0x28c] sm:$0xf0] }
  0xdb   :  { %v601_v22 = vunpack.c.h.b16 %v573_v12  ;;  %v597_v30 = vunpack.c.l.b16 %v573_v12  ;;  %v578_v12 = vpack.c.b16 %v577_v8, %v576_v7  ;;  %v3748_v40 = vor.u32 %v5010_v31, %v3747_v56  ;;  %v5022_v8 = vld [vmem:[#allocation2 + $0x23c] sm:$0xf]  ;;  %v3855_v56 = vld [vmem:[#allocation2 + $0x280] sm:$0xf] }
  0xdc   :  { %1048 = vmatpush.bf16.msra.mxu1 %v3840_v3  ;;  %v3756_v41 = vor.u32 %v5011_v59, %v3755_v58  ;;  %v3844_v0 = vor.u32 %v5029_v61, %v3841_v62  ;;  %v3961_v3 = vld [vmem:[#allocation2 + $0x374] sm:$0xf0]  ;;  %v5034_v31 = vld [vmem:[#allocation2 + $0x298] sm:$0xf0]  ;;  %v5023_v59 = vld [vmem:[#allocation2 + $0x244] sm:$0xf] }
  0xdd   :  { %v602_v29 = vpack.c.b16 %v601_v22, %v600_v21  ;;  %v598_v48 = vpack.c.b16 %v597_v30, %v596_v37  ;;  %v5038_v21 = vld [vmem:[#allocation2 + $0x2b8] sm:$0xf0]  ;;  %v3805_v30 = vld [vmem:[#allocation2 + $0x24c] sm:$0xf0]  ;;  %v3812_v37 = vor.u32 %v5025_v35, %v3811_v33  ;;  %v5048_v33 = vld [vmem:[#allocation2 + $0x308] sm:$0xf0] }
  0xde   :  { %1059 = vmatpush.bf16.msra.mxu2 %v3928_v2  ;;  %v3860_v22 = vor.u32 %v5038_v21, %v3859_v20  ;;  %v3808_v36 = vor.u32 %v5021_v28, %v3805_v30  ;;  %v5058_v2 = vld [vmem:[#allocation2 + $0x35c] sm:$0xf]  ;;  %v5015_v21 = vld [vmem:[#allocation2 + $0x204] sm:$0xf]  ;;  %v3911_v30 = vld [vmem:[#allocation2 + $0x2f0] sm:$0xf] }
  0xdf   :  { %617 = vmatpush.bf16.msrb.mxu3 %v602_v29  ;;  %v3804_v29 = vor.u32 %v5024_v27, %v3803_v26  ;;  %v3964_v4 = vor.u32 %v5058_v2, %v3961_v3  ;;  %v5044_v26 = vld [vmem:[#allocation2 + $0x2ec] sm:$0xf]  ;;  %v3905_v27 = vld [vmem:[#allocation2 + $0x304] sm:$0xf0]  ;;  %v3912_v35 = vor.u32 %v5048_v33, %v3911_v30  ;;  %v5026_v58 = vld [vmem:[#allocation2 + $0x258] sm:$0xf0] }
  0xe0   :  { %1035 = vmatpush.bf16.msra.mxu0 %v3808_v36  ;;  %1049 = vmatpush.bf16.msra.mxu1 %v3812_v37  ;;  %v5008_v36 = vld [vmem:[#allocation2 + $0x1cc] sm:$0xf]  ;;  %v3757_v37 = vld [vmem:[#allocation2 + $0x1e4] sm:$0xf0]  ;;  %v5027_v61 = vld [vmem:[#allocation2 + $0x260] sm:$0xf0] }
  0xe1   :  { %v3760_v39 = vor.u32 %v5008_v36, %v3757_v37  ;;  %v5019_v2 = vld [vmem:[#allocation2 + $0x220] sm:$0xf0]  ;;  %v5016_v3 = vld [vmem:[#allocation2 + $0x20c] sm:$0xf] }
  0xe2   :  { %1060 = vmatpush.bf16.msra.mxu2 %v3900_v43  ;;  %v5037_v43 = vld [vmem:[#allocation2 + $0x2b4] sm:$0xf] }
  0xe3   :  { %618 = vmatpush.bf16.msrb.mxu3 %v598_v48  ;;  %v3780_v48 = vor.u32 %v5014_v45, %v3777_v46  ;;  %v3876_v45 = vor.u32 %v5040_v42, %v3875_v38  ;;  %v3880_v46 = vor.u32 %v5037_v43, %v3877_v44 }
  0xe4   :  { %1050 = vmatpush.bf16.msra.mxu1 %v3784_v52  ;;  %v5033_v52 = vld [vmem:[#allocation2 + $0x290] sm:$0xf0] }
  0xe5   :  { %1036 = vmatpush.bf16.msra.mxu0 %v3780_v48  ;;  %v5041_v48 = vld [vmem:[#allocation2 + $0x2d0] sm:$0xf0]  ;;  %v3848_v54 = vor.u32 %v5033_v52, %v3847_v50 }
  0xe6   :  { %1061 = vmatpush.bf16.msra.mxu2 %v3872_v55  ;;  %v3849_v55 = vld [vmem:[#allocation2 + $0x294] sm:$0xf0] }
  0xe7   :  { %619 = vmatpush.bf16.msrb.mxu3 %v592_v60  ;;  %v3752_v60 = vor.u32 %v5007_v32, %v3749_v57  ;;  %v3852_v32 = vor.u32 %v5030_v53, %v3849_v55  ;;  %v3819_v57 = vld [vmem:[#allocation2 + $0x240] sm:$0xf] }
  0xe8   :  { %1051 = vmatpush.bf16.msra.mxu1 %v3756_v41  ;;  %v3827_v41 = vld [vmem:[#allocation2 + $0x248] sm:$0xf]  ;;  %v3820_v62 = vor.u32 %v5026_v58, %v3819_v57  ;;  %v5123_v58 = vld [vmem:[#allocation4 + $0x1e4] sm:$0xf] }
  0xe9   :  { %1037 = vmatpush.bf16.msra.mxu0 %v3752_v60  ;;  %v3821_v60 = vld [vmem:[#allocation2 + $0x25c] sm:$0xf0] }
  0xea   :  { %1062 = vmatpush.bf16.msra.mxu2 %v3844_v0  ;;  %v3791_v0 = vld [vmem:[#allocation2 + $0x208] sm:$0xf] }
  0xeb   :  { %620 = vmatpush.bf16.msrb.mxu3 %v588_v34  ;;  %v3960_v34 = vor.u32 %v5061_v1, %v3959_v63  ;;  %v3824_v63 = vor.u32 %v5023_v59, %v3821_v60  ;;  %v3828_v1 = vor.u32 %v5027_v61, %v3827_v41  ;;  %v4216_v59 = vld [vmem:[#allocation4 + $0x1f0] sm:$0xf0]  ;;  %v4214_v60 = vld [vmem:[#allocation4 + $0x1e0] sm:$0xf] }
  0xed   :  { %1086 = vmatpush.bf16.msrb.mxu0 %v3964_v4  ;;  %v3799_v4 = vld [vmem:[#allocation2 + $0x210] sm:$0xf] }
  0xef   :  { %621 = vmatpush.bf16.msrb.mxu3 %v582_v6  ;;  %v5062_v6 = vld [vmem:[#allocation2 + $0x378] sm:$0xf0] }
  0xf0   :  { %v3968_v7 = vor.u32 %v5062_v6, %v3967_v5  ;;  %v5020_v5 = vld [vmem:[#allocation2 + $0x228] sm:$0xf0]  ;;  %v3792_v6 = vor.u32 %v5019_v2, %v3791_v0  ;;  %v5125_v0 = vld [vmem:[#allocation4 + $0x1ec] sm:$0xf0]  ;;  %v4200_v2 = vld [vmem:[#allocation4 + $0x1d0] sm:$0xf0] }
  0xf1   :  { %1087 = vmatpush.bf16.msrb.mxu0 %v3936_v17 }
  0xf2   :  { %1100 = vmatpush.bf16.msrb.mxu1 %v3968_v7 }
  0xf3   :  { %622 = vmatpush.bf16.msrb.mxu3 %v578_v12  ;;  %v5054_v12 = vld [vmem:[#allocation2 + $0x338] sm:$0xf0] }
  0xf6   :  { %3743 = vmatmul.msk.bf16.vlgmr.msrb.gmra.mxu3 %vm611_vm0, %v5585_v15 }
  0xf7   :  { %1016 = vmatpush.bf16.msra.mxu3 %v3944_v11  ;;  %v3816_v11 = vor.u32 %v5022_v8, %v3813_v9  ;;  %v3763_v8 = vld [vmem:[#allocation2 + $0x1d0] sm:$0xf]  ;;  %v3800_v9 = vor.u32 %v5020_v5, %v3799_v4  ;;  %v4215_v4 = vor.u32 %v5125_v0, %v4214_v60  ;;  %v5091_v5 = vld [vmem:[#allocation4 + $0xe4] sm:$0xf]  ;;  %v4152_v60 = vld [vmem:[#allocation4 + $0x170] sm:$0xf0] }
  0xf8   :  { %v5109_v0 = vld [vmem:[#allocation4 + $0x16c] sm:$0xf0] }
  0xf9   :  { %1063 = vmatpush.bf16.msra.mxu2 %v3816_v11  ;;  %v5009_v11 = vld [vmem:[#allocation2 + $0x1d4] sm:$0xf] }
  0xfb   :  { %1017 = vmatpush.bf16.msra.mxu3 %v3916_v16  ;;  %v3932_v16 = vor.u32 %v5054_v12, %v3931_v10  ;;  %v5012_v10 = vld [vmem:[#allocation2 + $0x1e8] sm:$0xf0]  ;;  %v3765_v12 = vld [vmem:[#allocation2 + $0x1ec] sm:$0xf0] }
  0xfc   :  { %v3764_v17 = vor.u32 %v5012_v10, %v3763_v8  ;;  %v4198_v10 = vld [vmem:[#allocation4 + $0x1c0] sm:$0xf] }
  0xff   :  { %1018 = vmatpush.bf16.msra.mxu3 %v3888_v19  ;;  %v5055_v19 = vld [vmem:[#allocation2 + $0x340] sm:$0xf0] }
 0x100   :  { %v3940_v20 = vor.u32 %v5055_v19, %v3939_v18  ;;  %v3768_v18 = vor.u32 %v5009_v11, %v3765_v12  ;;  %v3772_v19 = vor.u32 %v5013_v14, %v3771_v13  ;;  %v5121_v11 = vld [vmem:[#allocation4 + $0x1cc] sm:$0xf0]  ;;  %v5115_v14 = vld [vmem:[#allocation4 + $0x1a4] sm:$0xf] }
 0x101   :  { %v4199_v13 = vor.u32 %v5121_v11, %v4198_v10  ;;  %v4134_v10 = vld [vmem:[#allocation4 + $0x140] sm:$0xf]  ;;  %v5105_v11 = vld [vmem:[#allocation4 + $0x14c] sm:$0xf0] }
 0x102   :  { %1101 = vmatpush.bf16.msrb.mxu1 %v3940_v20  ;;  %v5589_v20 = vpop.permute.xlu0 %631 }
 0x103   :  { %1019 = vmatpush.bf16.msra.mxu3 %v3860_v22  ;;  %v3785_v22 = vld [vmem:[#allocation2 + $0x21c] sm:$0xf0] }
 0x104   :  { %v3788_v24 = vor.u32 %v5015_v21, %v3785_v22  ;;  %v604_v21 = vld [vmem:[%s5967_s8] sm:$0xff] }
 0x106   :  { %1064 = vmatpush.bf16.msra.mxu2 %v3788_v24  ;;  %1102 = vmatpush.bf16.msrb.mxu1 %v3912_v35 }
 0x107   :  { %1020 = vmatpush.bf16.msra.mxu3 %v3832_v25  ;;  %v5047_v25 = vld [vmem:[#allocation2 + $0x300] sm:$0xf0] }
 0x108   :  { %v3904_v28 = vor.u32 %v5047_v25, %v3903_v23  ;;  %v174_v23 = vperm.slane %v5563_v51, 6  ;;  %v605_v25 = vld [vmem:[%s5967_s8 + $0x8] sm:$0xff] }
 0x10a   :  { %1065 = vmatpush.bf16.msra.mxu2 %v3760_v39  ;;  %v5599_v33 = vpop.permute.xlu0 %636 }
 0x10b   :  { %1021 = vmatpush.bf16.msra.mxu3 %v3804_v29  ;;  %v3908_v29 = vor.u32 %v5044_v26, %v3905_v27 }
 0x10d   :  { %1088 = vmatpush.bf16.msrb.mxu0 %v3908_v29 }
 0x10f   :  { %1022 = vmatpush.bf16.msra.mxu3 %v3776_v47  ;;  %v3883_v47 = vld [vmem:[#allocation2 + $0x2b8] sm:$0xf] }
 0x110   :  { %v3884_v49 = vor.u32 %v5041_v48, %v3883_v47 }
 0x111   :  { %1089 = vmatpush.bf16.msrb.mxu0 %v3880_v46 }
 0x112   :  { %1103 = vmatpush.bf16.msrb.mxu1 %v3884_v49  ;;  %v5613_v49 = vld [vmem:[%s5966_s7 + $0x7] sm:$0xff] }
 0x113   :  { %1023 = vmatpush.bf16.msra.mxu3 %v3748_v40  ;;  %v3856_v40 = vor.u32 %v5034_v31, %v3855_v56  ;;  %v718_v53 = vperm.slane %v5613_v49, 4  ;;  %v717_v31 = vperm.slane %v5613_v49, 3 }
 0x115   :  { %1090 = vmatpush.bf16.msrb.mxu0 %v3852_v32 }
 0x116   :  { %1104 = vmatpush.bf16.msrb.mxu1 %v3856_v40 }
 0x117   :  { %1072 = vmatpush.bf16.msrb.mxu3 %v3960_v34  ;;  %v3793_v34 = vld [vmem:[#allocation2 + $0x224] sm:$0xf0] }
 0x118   :  { %v3796_v7 = vor.u32 %v5016_v3, %v3793_v34  ;;  %v716_v3 = vperm.slane %v5613_v49, 2 }
 0x119   :  { %1091 = vmatpush.bf16.msrb.mxu0 %v3824_v63  ;;  %v4219_v63 = vor.u32 %v5123_v58, %v4216_v59  ;;  %v5107_v59 = vld [vmem:[#allocation4 + $0x164] sm:$0xf] }
 0x11a   :  { %1105 = vmatpush.bf16.msrb.mxu1 %v3828_v1  ;;  %v5119_v1 = vld [vmem:[#allocation4 + $0x1c4] sm:$0xf] }
 0x11b   :  { %1073 = vmatpush.bf16.msrb.mxu3 %v3932_v16  ;;  %v563_v16 = vpop.f32.mrf.mxu2  ;;  %v4203_v8 = vor.u32 %v5119_v1, %v4200_v2 }
 0x11c   :  { %v564_v26 = vadd.f32 %v563_v16, %v174_v23  ;;  %v4184_v16 = vld [vmem:[#allocation4 + $0x1b0] sm:$0xf0] }
 0x11d   :  { %1092 = vmatpush.bf16.msrb.mxu0 %v3796_v7 }
 0x11e   :  { %1106 = vmatpush.bf16.msrb.mxu1 %v3800_v9  ;;  %v4088_v9 = vld [vmem:[#allocation4 + $0xf0] sm:$0xf0] }
 0x11f   :  { %1074 = vmatpush.bf16.msrb.mxu3 %v3904_v28  ;;  %v4091_v12 = vor.u32 %v5091_v5, %v4088_v9  ;;  %v5075_v5 = vld [vmem:[#allocation4 + $0x64] sm:$0xf] }
 0x121   :  { %1093 = vmatpush.bf16.msrb.mxu0 %v3768_v18 }
 0x122   :  { %1107 = vmatpush.bf16.msrb.mxu1 %v3772_v19 }
 0x123   :  { %1075 = vmatpush.bf16.msrb.mxu3 %v3876_v45  ;;  %v565_v28 = vpop.f32.mrf.mxu2 }
 0x124   :  { %v566_v36 = vadd.f32 %v565_v28, %v174_v23  ;;  %v4072_v23 = vld [vmem:[#allocation4 + $0xd0] sm:$0xf0] }
 0x127   :  { %1076 = vmatpush.bf16.msrb.mxu3 %v3848_v54  ;;  %v719_v54 = vperm.slane %v5613_v49, 5 }
 0x12b   :  { %1077 = vmatpush.bf16.msrb.mxu3 %v3820_v62 }
 0x12f   :  { %1078 = vmatpush.bf16.msrb.mxu3 %v3792_v6 }
 0x133   :  { %1079 = vmatpush.bf16.msrb.mxu3 %v3764_v17 }
 0x179   :  { %v624_v22 = vpop.f32.mrf.mxu3 }
 0x17a   :  { %v625_v24 = vadd.f32 %v624_v22, %v604_v21  ;;  %v5087_v22 = vld [vmem:[#allocation4 + $0xc4] sm:$0xf] }
 0x17c   :  { %v639_v27 = vmul.f32 %v5589_v20, %v625_v24 }
 0x17e   :  { %v641_v35 = vadd.f32 %v639_v27, %v564_v26  ;;  %v4182_v26 = vld [vmem:[#allocation4 + $0x1a0] sm:$0xf]  ;;  %v5117_v27 = vld [vmem:[#allocation4 + $0x1ac] sm:$0xf0] }
 0x180   :  { %v643_v51 = vmax.f32 %v641_v35, 0.0  ;;  %v4187_v35 = vor.u32 %v5115_v14, %v4184_v16  ;;  %v5071_v16 = vld [vmem:[#allocation4 + $0x44] sm:$0xf] }
 0x181   :  { %v626_v29 = vpop.f32.mrf.mxu3 }
 0x182   :  { %v627_v30 = vadd.f32 %v626_v29, %v605_v25  ;;  %v4075_v25 = vor.u32 %v5087_v22, %v4072_v23 }
 0x184   :  { %v640_v37 = vmul.f32 %v5599_v33, %v627_v30 }
 0x186   :  { %v642_v38 = vadd.f32 %v640_v37, %v566_v36  ;;  %v5111_v36 = vld [vmem:[#allocation4 + $0x184] sm:$0xf]  ;;  %v4183_v37 = vor.u32 %v5117_v27, %v4182_v26  ;;  %v4086_v26 = vld [vmem:[#allocation4 + $0xe0] sm:$0xf]  ;;  %v5093_v27 = vld [vmem:[#allocation4 + $0xec] sm:$0xf0] }
 0x188   :  { %v644_v39 = vmax.f32 %v642_v38, 0.0  ;;  %v4168_v38 = vld [vmem:[#allocation4 + $0x190] sm:$0xf0] }
 0x18a   :  { %v645_v42 = vpack.c.bf16 %v644_v39, %v643_v51  ;;  %v5083_v51 = vld [vmem:[#allocation4 + $0xa4] sm:$0xf]  ;;  %v4056_v39 = vld [vmem:[#allocation4 + $0xb0] sm:$0xf0] }
 0x18c   :  { %1024 = vmatmul.bf16.vlgmr.msra.gmra.mxu3 %v645_v42  ;;  %1038 = vmatmul.bf16.vlgmr.msra.gmra.mxu0 %v645_v42 }
 0x18d   :  { %1052 = vmatmul.bf16.vlgmr.msra.gmra.mxu1 %v645_v42  ;;  %1066 = vmatmul.bf16.vlgmr.msra.gmra.mxu2 %v645_v42 }
 0x18e   :  { %1629 = vmatpush.bf16.msra.mxu1 %v4219_v63  ;;  %1601 = vmatpush.bf16.msra.mxu3 %v4215_v4  ;;  %v4150_v63 = vld [vmem:[#allocation4 + $0x160] sm:$0xf]  ;;  %v4155_v4 = vor.u32 %v5107_v59, %v4152_v60  ;;  %v5069_v60 = vld [vmem:[#allocation4 + $0x2c] sm:$0xf0] }
 0x18f   :  { %1615 = vmatpush.bf16.msra.mxu0 %v4091_v12  ;;  %v3990_v59 = vld [vmem:[#allocation4 + $0x20] sm:$0xf] }
 0x192   :  { %1630 = vmatpush.bf16.msra.mxu1 %v4203_v8  ;;  %1602 = vmatpush.bf16.msra.mxu3 %v4199_v13  ;;  %v4136_v8 = vld [vmem:[#allocation4 + $0x150] sm:$0xf0] }
 0x193   :  { %1616 = vmatpush.bf16.msra.mxu0 %v4075_v25 }
 0x196   :  { %1631 = vmatpush.bf16.msra.mxu1 %v4187_v35  ;;  %1603 = vmatpush.bf16.msra.mxu3 %v4183_v37  ;;  %v5089_v37 = vld [vmem:[#allocation4 + $0xcc] sm:$0xf0] }
 0x19c   :  { %1080 = vmatmul.bf16.vlgmr.msrb.gmra.mxu3 %v645_v42  ;;  %1094 = vmatmul.bf16.vlgmr.msrb.gmra.mxu0 %v645_v42 }
 0x19d   :  { %1108 = vmatmul.bf16.vlgmr.msrb.gmra.mxu1 %v645_v42  ;;  %v714_v42 = vperm.slane %v5613_v49, 0 }
 0x209   :  { %v5602_v43 = vpop.f32.mrf.mxu0 }
 0x20a   :  { %v1053_v50 = vpop.f32.mrf.mxu1 }
 0x20b   :  { %v1054_v24 = vadd.f32 %v1053_v50, %v716_v3  ;;  %v4166_v50 = vld [vmem:[#allocation4 + $0x180] sm:$0xf] }
 0x20f   :  { %v5604_v44 = vpop.f32.mrf.mxu3 }
 0x210   :  { %v1067_v48 = vpop.f32.mrf.mxu2 }
 0x211   :  { %v5606_v45 = vpop.f32.mrf.mxu0  ;;  %v1068_v17 = vadd.f32 %v1067_v48, %v717_v31 }
 0x212   :  { %v1055_v34 = vpop.f32.mrf.mxu1 }
 0x213   :  { %v1056_v18 = vadd.f32 %v1055_v34, %v716_v3 }
 0x217   :  { %v5608_v46 = vpop.f32.mrf.mxu3 }
 0x218   :  { %v1069_v40 = vpop.f32.mrf.mxu2 }
 0x219   :  { %v1095_v47 = vpop.f32.mrf.mxu0  ;;  %v1070_v6 = vadd.f32 %v1069_v40, %v717_v31  ;;  %v5079_v40 = vld [vmem:[#allocation4 + $0x84] sm:$0xf] }
 0x21a   :  { %v1096_v32 = vadd.f32 %v1095_v47, %v719_v54  ;;  %v1115_v47 = vpack.c.bf16 %v1068_v17, %v1054_v24  ;;  %v4008_v17 = vld [vmem:[#allocation4 + $0x50] sm:$0xf0] }
 0x21b   :  { %v1118_v28 = vpack.c.bf16 %v1070_v6, %v1056_v18  ;;  %v4024_v6 = vld [vmem:[#allocation4 + $0x70] sm:$0xf0]  ;;  %v4135_v18 = vor.u32 %v5105_v11, %v4134_v10  ;;  %v4011_v23 = vor.u32 %v5071_v16, %v4008_v17  ;;  %v5094_v16 = vld [vmem:[#allocation4 + $0xf4] sm:$0xf0]  ;;  %v5092_v17 = vld [vmem:[#allocation4 + $0xec] sm:$0xf] }
 0x21d   :  { %v1133_v3 = vunpack.c.l.b16 %v1118_v28 }
 0x21f   :  { %v1081_v52 = vpop.f32.mrf.mxu3 }
 0x220   :  { %v1082_v55 = vadd.f32 %v1081_v52, %v718_v53  ;;  %v5113_v52 = vld [vmem:[#allocation4 + $0x18c] sm:$0xf0] }
 0x221   :  { %v1097_v56 = vpop.f32.mrf.mxu0  ;;  %v4167_v58 = vor.u32 %v5113_v52, %v4166_v50  ;;  %v4022_v52 = vld [vmem:[#allocation4 + $0x60] sm:$0xf] }
 0x222   :  { %v1116_v41 = vpack.c.bf16 %v1096_v32, %v1082_v55  ;;  %v1098_v61 = vadd.f32 %v1097_v56, %v719_v54  ;;  %v4059_v54 = vor.u32 %v5083_v51, %v4056_v39  ;;  %v1028_v55 = vadd.f32 %v5608_v46, %v714_v42  ;;  %v4054_v51 = vld [vmem:[#allocation4 + $0xa0] sm:$0xf]  ;;  %v5085_v39 = vld [vmem:[#allocation4 + $0xac] sm:$0xf0] }
 0x223   :  { %v1137_v56 = vunpack.c.h.b16 %v1118_v28  ;;  %v4171_v32 = vor.u32 %v5111_v36, %v4168_v38  ;;  %1604 = vmatpush.bf16.msra.mxu3 %v4167_v58  ;;  %v4070_v36 = vld [vmem:[#allocation4 + $0xc0] sm:$0xf] }
 0x224   :  { %v1146_v19 = vunpack.c.h.b16 %v1116_v41  ;;  %v1142_v48 = vunpack.c.l.b16 %v1116_v41  ;;  %v1026_v41 = vadd.f32 %v5604_v44, %v714_v42  ;;  %1617 = vmatpush.bf16.msra.mxu0 %v4059_v54  ;;  %v5103_v44 = vld [vmem:[#allocation4 + $0x144] sm:$0xf]  ;;  %v4071_v38 = vor.u32 %v5089_v37, %v4070_v36 }
 0x225   :  { %1632 = vmatpush.bf16.msra.mxu1 %v4171_v32  ;;  %v4139_v14 = vor.u32 %v5103_v44, %v4136_v8  ;;  %v4055_v42 = vor.u32 %v5085_v39, %v4054_v51  ;;  %v4118_v32 = vld [vmem:[#allocation4 + $0x120] sm:$0xf]  ;;  %v3976_v8 = vld [vmem:[#allocation4 + $0x10] sm:$0xf0]  ;;  %v1174_v51 = vld [vmem:[%s5961_s2 + $0x8] sm:$0xff] }
 0x226   :  { %v4190_v39 = vld [vmem:[#allocation4 + $0x1a8] sm:$0xf] }
 0x227   :  { %v1083_v57 = vpop.f32.mrf.mxu3 }
 0x228   :  { %v1084_v62 = vadd.f32 %v1083_v57, %v718_v53  ;;  %v715_v53 = vperm.slane %v5613_v49, 1  ;;  %v4040_v57 = vld [vmem:[#allocation4 + $0x90] sm:$0xf0] }
 0x229   :  { %v4043_v1 = vor.u32 %v5079_v40, %v4040_v57  ;;  %1633 = vmatpush.bf16.msra.mxu1 %v4155_v4  ;;  %v5101_v40 = vld [vmem:[#allocation4 + $0x12c] sm:$0xf0]  ;;  %v5095_v57 = vld [vmem:[#allocation4 + $0x104] sm:$0xf] }
 0x22a   :  { %v1119_v7 = vpack.c.bf16 %v1098_v61, %v1084_v62  ;;  %v1136_v61 = vunpack.c.h.b16 %v1115_v47  ;;  %v1042_v62 = vadd.f32 %v5606_v45, %v715_v53  ;;  %v1040_v46 = vadd.f32 %v5602_v43, %v715_v53  ;;  %v5077_v53 = vld [vmem:[#allocation4 + $0x6c] sm:$0xf0] }
 0x22b   :  { %v1132_v45 = vunpack.c.l.b16 %v1115_v47  ;;  %1618 = vmatpush.bf16.msra.mxu0 %v4043_v1  ;;  %v4027_v43 = vor.u32 %v5075_v5, %v4024_v6  ;;  %v4038_v47 = vld [vmem:[#allocation4 + $0x80] sm:$0xf]  ;;  %v4023_v54 = vor.u32 %v5077_v53, %v4022_v52  ;;  %v4119_v58 = vor.u32 %v5101_v40, %v4118_v32  ;;  %v4224_v1 = vld [vmem:[#allocation4 + $0x1f8] sm:$0xf0]  ;;  %v5065_v6 = vld [vmem:[#allocation4 + $0xc] sm:$0xf0] }
 0x22c   :  { %v1147_v21 = vunpack.c.h.b16 %v1119_v7  ;;  %v1143_v29 = vunpack.c.l.b16 %v1119_v7  ;;  %v1117_v2 = vpack.c.bf16 %v1042_v62, %v1028_v55  ;;  %v1138_v34 = vpack.c.b16 %v1137_v56, %v1136_v61  ;;  %v4006_v55 = vld [vmem:[#allocation4 + $0x40] sm:$0xf]  ;;  %v5073_v56 = vld [vmem:[#allocation4 + $0x4c] sm:$0xf0]  ;;  %v5067_v62 = vld [vmem:[#allocation4 + $0x24] sm:$0xf] }
 0x22d   :  { %v4151_v7 = vor.u32 %v5109_v0, %v4150_v63  ;;  %v1114_v9 = vpack.c.bf16 %v1040_v46, %v1026_v41  ;;  %v1134_v13 = vpack.c.b16 %v1133_v3, %v1132_v45  ;;  %1634 = vmatpush.bf16.msra.mxu1 %v4139_v14  ;;  %v3991_v61 = vor.u32 %v5069_v60, %v3990_v59  ;;  %v3992_v63 = vld [vmem:[#allocation4 + $0x30] sm:$0xf0]  ;;  %v5124_v0 = vld [vmem:[#allocation4 + $0x1ec] sm:$0xf]  ;;  %v4102_v3 = vld [vmem:[#allocation4 + $0x100] sm:$0xf] }
 0x22e   :  { %v1148_v30 = vpack.c.b16 %v1147_v21, %v1146_v19  ;;  %v1144_v31 = vpack.c.b16 %v1143_v29, %v1142_v48  ;;  %v1127_v12 = vunpack.c.h.b16 %v1117_v2  ;;  %v5099_v19 = vld [vmem:[#allocation4 + $0x124] sm:$0xf]  ;;  %v4120_v21 = vld [vmem:[#allocation4 + $0x130] sm:$0xf0]  ;;  %v1123_v24 = vunpack.c.l.b16 %v1117_v2  ;;  %v5081_v48 = vld [vmem:[#allocation4 + $0x8c] sm:$0xf0] }
 0x22f   :  { %1605 = vmatpush.bf16.msra.mxu3 %v4151_v7  ;;  %v1126_v22 = vunpack.c.h.b16 %v1114_v9  ;;  %1619 = vmatpush.bf16.msra.mxu0 %v4027_v43  ;;  %v4123_v28 = vor.u32 %v5099_v19, %v4120_v21  ;;  %v1122_v29 = vunpack.c.l.b16 %v1114_v9  ;;  %v4039_v50 = vor.u32 %v5081_v48, %v4038_v47  ;;  %v3974_v5 = vld [vmem:[#allocation4] sm:$0xf]  ;;  %v5063_v7 = vld [vmem:[#allocation4 + $0x4] sm:$0xf]  ;;  %v4222_v9 = vld [vmem:[#allocation4 + $0x1e8] sm:$0xf] }
 0x230   :  { %1155 = vmatpush.bf16.msrb.mxu2 %v1148_v30  ;;  %v4087_v30 = vor.u32 %v5093_v27, %v4086_v26  ;;  %v3995_v46 = vor.u32 %v5067_v62, %v3992_v63  ;;  %v4227_v2 = vor.u32 %v5124_v0, %v4224_v1  ;;  %v3975_v44 = vor.u32 %v5065_v6, %v3974_v5  ;;  %v5126_v45 = vld [vmem:[#allocation4 + $0x1f4] sm:$0xf0]  ;;  %v5120_v43 = vld [vmem:[#allocation4 + $0x1cc] sm:$0xf]  ;;  %v4192_v26 = vld [vmem:[#allocation4 + $0x1b8] sm:$0xf0] }
 0x231   :  { %v1128_v25 = vpack.c.b16 %v1127_v12, %v1126_v22  ;;  %v1124_v35 = vpack.c.b16 %v1123_v24, %v1122_v29  ;;  %1635 = vmatpush.bf16.msra.mxu1 %v4123_v28  ;;  %v3979_v10 = vor.u32 %v5063_v7, %v3976_v8  ;;  %v4223_v11 = vor.u32 %v5126_v45, %v4222_v9  ;;  %v4208_v12 = vld [vmem:[#allocation4 + $0x1d8] sm:$0xf0]  ;;  %v4206_v22 = vld [vmem:[#allocation4 + $0x1c8] sm:$0xf]  ;;  %v5090_v29 = vld [vmem:[#allocation4 + $0xd4] sm:$0xf0] }
 0x232   :  { %v4211_v14 = vor.u32 %v5120_v43, %v4208_v12  ;;  %v4078_v27 = vld [vmem:[#allocation4 + $0xc8] sm:$0xf]  ;;  %v5112_v47 = vld [vmem:[#allocation4 + $0x18c] sm:$0xf]  ;;  %v4176_v53 = vld [vmem:[#allocation4 + $0x198] sm:$0xf0] }
 0x233   :  { %1606 = vmatpush.bf16.msra.mxu3 %v4135_v18  ;;  %1620 = vmatpush.bf16.msra.mxu0 %v4011_v23  ;;  %v4096_v18 = vld [vmem:[#allocation4 + $0xf8] sm:$0xf0]  ;;  %v5122_v23 = vld [vmem:[#allocation4 + $0x1d4] sm:$0xf0]  ;;  %v4079_v36 = vor.u32 %v5090_v29, %v4078_v27  ;;  %v5084_v32 = vld [vmem:[#allocation4 + $0xac] sm:$0xf] }
 0x234   :  { %1156 = vmatpush.bf16.msrb.mxu2 %v1144_v31  ;;  %v4007_v31 = vor.u32 %v5073_v56, %v4006_v55  ;;  %v4099_v21 = vor.u32 %v5092_v17, %v4096_v18  ;;  %v4207_v24 = vor.u32 %v5122_v23, %v4206_v22  ;;  %v5086_v55 = vld [vmem:[#allocation4 + $0xb4] sm:$0xf0]  ;;  %v4179_v56 = vor.u32 %v5112_v47, %v4176_v53  ;;  %v4064_v40 = vld [vmem:[#allocation4 + $0xb8] sm:$0xf0]  ;;  %v4174_v60 = vld [vmem:[#allocation4 + $0x188] sm:$0xf] }
 0x235   :  { %v4160_v63 = vld [vmem:[#allocation4 + $0x178] sm:$0xf0]  ;;  %v4046_v0 = vld [vmem:[#allocation4 + $0x88] sm:$0xf]  ;;  %v5110_v6 = vld [vmem:[#allocation4 + $0x174] sm:$0xf0] }
 0x236   :  { %v4158_v5 = vld [vmem:[#allocation4 + $0x168] sm:$0xf]  ;;  %v5104_v7 = vld [vmem:[#allocation4 + $0x14c] sm:$0xf]  ;;  %v4144_v8 = vld [vmem:[#allocation4 + $0x158] sm:$0xf0] }
 0x237   :  { %1607 = vmatpush.bf16.msra.mxu3 %v4119_v58  ;;  %1621 = vmatpush.bf16.msra.mxu0 %v3995_v46  ;;  %v5082_v46 = vld [vmem:[#allocation4 + $0x94] sm:$0xf0]  ;;  %v4030_v9 = vld [vmem:[#allocation4 + $0x68] sm:$0xf]  ;;  %v5076_v43 = vld [vmem:[#allocation4 + $0x6c] sm:$0xf] }
 0x238   :  { %1157 = vmatpush.bf16.msrb.mxu2 %v1138_v34  ;;  %v5097_v34 = vld [vmem:[#allocation4 + $0x10c] sm:$0xf0]  ;;  %v5078_v45 = vld [vmem:[#allocation4 + $0x74] sm:$0xf0]  ;;  %v4032_v12 = vld [vmem:[#allocation4 + $0x78] sm:$0xf0] }
 0x239   :  { %v4103_v4 = vor.u32 %v5097_v34, %v4102_v3  ;;  %v5080_v3 = vld [vmem:[#allocation4 + $0x8c] sm:$0xf]  ;;  %v4048_v34 = vld [vmem:[#allocation4 + $0x98] sm:$0xf0]  ;;  %v5074_v22 = vld [vmem:[#allocation4 + $0x54] sm:$0xf0] }
 0x23a   :  { %v5100_v17 = vld [vmem:[#allocation4 + $0x12c] sm:$0xf]  ;;  %v4128_v18 = vld [vmem:[#allocation4 + $0x138] sm:$0xf0]  ;;  %v5102_v27 = vld [vmem:[#allocation4 + $0x134] sm:$0xf0] }
 0x23b   :  { %1608 = vmatpush.bf16.msra.mxu3 %v4103_v4  ;;  %1622 = vmatpush.bf16.msra.mxu0 %v3979_v10  ;;  %v4051_v4 = vor.u32 %v5080_v3, %v4048_v34  ;;  %v4147_v10 = vor.u32 %v5104_v7, %v4144_v8  ;;  %v5072_v23 = vld [vmem:[#allocation4 + $0x4c] sm:$0xf]  ;;  %v3969_v47 = vld [vmem:[%s5967_s8 + $0x10] sm:$0xff] }
 0x23c   :  { %1158 = vmatpush.bf16.msrb.mxu2 %v1134_v13  ;;  %v4094_v13 = vld [vmem:[#allocation4 + $0xe8] sm:$0xf] }
 0x23d   :  { %v4095_v19 = vor.u32 %v5094_v16, %v4094_v13  ;;  %v4142_v13 = vld [vmem:[#allocation4 + $0x148] sm:$0xf]  ;;  %v5106_v16 = vld [vmem:[#allocation4 + $0x154] sm:$0xf0] }
 0x23f   :  { %1657 = vmatpush.bf16.msrb.mxu3 %v4223_v11  ;;  %1671 = vmatpush.bf16.msrb.mxu0 %v4099_v21  ;;  %v4031_v11 = vor.u32 %v5078_v45, %v4030_v9  ;;  %v4014_v21 = vld [vmem:[#allocation4 + $0x48] sm:$0xf] }
 0x240   :  { %1159 = vmatpush.bf16.msrb.mxu2 %v1128_v25  ;;  %v5116_v25 = vld [vmem:[#allocation4 + $0x1ac] sm:$0xf]  ;;  %v4433_v45 = vld [vmem:[#allocation2 + $0x508] sm:$0xf] }
 0x241   :  { %v4195_v28 = vor.u32 %v5116_v25, %v4192_v26  ;;  %v4016_v25 = vld [vmem:[#allocation4 + $0x58] sm:$0xf0]  ;;  %v4126_v26 = vld [vmem:[#allocation4 + $0x128] sm:$0xf] }
 0x242   :  { %v4019_v29 = vor.u32 %v5072_v23, %v4016_v25  ;;  %v4413_v23 = vld [vmem:[#allocation2 + $0x4d8] sm:$0xf]  ;;  %v5173_v25 = vld [vmem:[#allocation2 + $0x4f0] sm:$0xf0] }
 0x243   :  { %1658 = vmatpush.bf16.msrb.mxu3 %v4207_v24  ;;  %v4131_v24 = vor.u32 %v5100_v17, %v4128_v18  ;;  %v4405_v17 = vld [vmem:[#allocation2 + $0x4d0] sm:$0xf]  ;;  %v5172_v18 = vld [vmem:[#allocation2 + $0x4e8] sm:$0xf0] }
 0x244   :  { %1160 = vmatpush.bf16.msrb.mxu2 %v1124_v35  ;;  %v4080_v35 = vld [vmem:[#allocation4 + $0xd8] sm:$0xf0] }
 0x247   :  { %3971 = vmatmul.msk.bf16.vlgmr.msrb.gmra.mxu2 %vm611_vm0, %v5585_v15  ;;  %v4104_v15 = vld [vmem:[#allocation4 + $0x110] sm:$0xf0] }
 0x248   :  { %1587 = vmatpush.bf16.msra.mxu2 %v4087_v30  ;;  %v4107_v41 = vor.u32 %v5095_v57, %v4104_v15  ;;  %v5088_v30 = vld [vmem:[#allocation4 + $0xcc] sm:$0xf]  ;;  %v4067_v15 = vor.u32 %v5084_v32, %v4064_v40  ;;  %v3984_v40 = vld [vmem:[#allocation4 + $0x18] sm:$0xf0] }
 0x249   :  { %v4083_v37 = vor.u32 %v5088_v30, %v4080_v35  ;;  %v5096_v30 = vld [vmem:[#allocation4 + $0x10c] sm:$0xf]  ;;  %v4112_v35 = vld [vmem:[#allocation4 + $0x118] sm:$0xf0] }
 0x24a   :  { %1636 = vmatpush.bf16.msra.mxu1 %v4107_v41  ;;  %v5114_v41 = vld [vmem:[#allocation4 + $0x194] sm:$0xf0]  ;;  %v5064_v32 = vld [vmem:[#allocation4 + $0xc] sm:$0xf] }
 0x24b   :  { %1672 = vmatpush.bf16.msrb.mxu0 %v4083_v37  ;;  %v4175_v62 = vor.u32 %v5114_v41, %v4174_v60  ;;  %v5070_v37 = vld [vmem:[#allocation4 + $0x34] sm:$0xf0] }
 0x24c   :  { %1588 = vmatpush.bf16.msra.mxu2 %v4071_v38  ;;  %v1173_v38 = vld [vmem:[%s5961_s2] sm:$0xff] }
 0x24d   :  { %v1179_v48 = vpack.c.bf16 %v1173_v38, %v1173_v38  ;;  %v5068_v38 = vld [vmem:[#allocation4 + $0x2c] sm:$0xf] }
 0x24e   :  { %1685 = vmatpush.bf16.msrb.mxu1 %v4227_v2  ;;  %v4047_v2 = vor.u32 %v5082_v46, %v4046_v0 }
 0x24f   :  { %v1189_v57 = vunpack.c.l.b16 %v1179_v48  ;;  %1673 = vmatpush.bf16.msrb.mxu0 %v4067_v15  ;;  %v4115_v48 = vor.u32 %v5096_v30, %v4112_v35  ;;  %v5162_v30 = vld [vmem:[#allocation2 + $0x49c] sm:$0xf] }
 0x250   :  { %1589 = vmatpush.bf16.msra.mxu2 %v4055_v42  ;;  %v5118_v42 = vld [vmem:[#allocation4 + $0x1b4] sm:$0xf0] }
 0x251   :  { %v4191_v52 = vor.u32 %v5118_v42, %v4190_v39  ;;  %v4127_v39 = vor.u32 %v5102_v27, %v4126_v26  ;;  %v1109_v42 = vpop.f32.mrf.mxu1  ;;  %v5651_v26 = vld [vmem:[%s5969_s10] sm:$0xf]  ;;  %v4414_v27 = vor.u32 %v5173_v25, %v4413_v23 }
 0x252   :  { %1686 = vmatpush.bf16.msrb.mxu1 %v4211_v14  ;;  %v4035_v14 = vor.u32 %v5076_v43, %v4032_v12  ;;  %v4435_v43 = vld [vmem:[#allocation2 + $0x524] sm:$0xf0]  ;;  %v4441_v12 = vld [vmem:[#allocation2 + $0x510] sm:$0xf]  ;;  %v4387_v23 = vld [vmem:[#allocation2 + $0x4bc] sm:$0xf0] }
 0x253   :  { %1659 = vmatpush.bf16.msrb.mxu3 %v4191_v52  ;;  %1674 = vmatpush.bf16.msrb.mxu0 %v4051_v4  ;;  %v5098_v52 = vld [vmem:[#allocation4 + $0x114] sm:$0xf0] }
 0x254   :  { %1590 = vmatpush.bf16.msra.mxu2 %v4039_v50  ;;  %v1180_v50 = vpack.c.bf16 %v1174_v51, %v1174_v51  ;;  %v4000_v51 = vld [vmem:[#allocation4 + $0x38] sm:$0xf0] }
 0x256   :  { %1687 = vmatpush.bf16.msrb.mxu1 %v4195_v28  ;;  %v1190_v58 = vunpack.c.l.b16 %v1180_v50  ;;  %v4015_v28 = vor.u32 %v5074_v22, %v4014_v21  ;;  %v4110_v50 = vld [vmem:[#allocation4 + $0x108] sm:$0xf]  ;;  %v5169_v21 = vld [vmem:[#allocation2 + $0x4d4] sm:$0xf]  ;;  %v4407_v22 = vld [vmem:[#allocation2 + $0x4ec] sm:$0xf0] }
 0x257   :  { %1660 = vmatpush.bf16.msrb.mxu3 %v4175_v62  ;;  %1675 = vmatpush.bf16.msrb.mxu0 %v4035_v14  ;;  %v4111_v15 = vor.u32 %v5098_v52, %v4110_v50  ;;  %v5180_v14 = vld [vmem:[#allocation2 + $0x528] sm:$0xf0]  ;;  %v4349_v50 = vld [vmem:[#allocation2 + $0x460] sm:$0xf]  ;;  %v5158_v52 = vld [vmem:[#allocation2 + $0x478] sm:$0xf0] }
 0x258   :  { %1591 = vmatpush.bf16.msra.mxu2 %v4023_v54  ;;  %v4062_v54 = vld [vmem:[#allocation4 + $0xa8] sm:$0xf]  ;;  %v5633_v59 = vpack.c.b16 %v1190_v58, %v1189_v57  ;;  %v720_v57 = vperm.slane %v5613_v49, 6 }
 0x259   :  { %v1111_v49 = vpop.f32.mrf.mxu1 }
 0x25a   :  { %1688 = vmatpush.bf16.msrb.mxu1 %v4179_v56  ;;  %1609 = vmatmul.bf16.vlgmr.msra.gmra.mxu3 %v5633_v59  ;;  %v1110_v62 = vadd.f32 %v1109_v42, %v720_v57 }
 0x25b   :  { %1637 = vmatmul.bf16.vlgmr.msra.gmra.mxu1 %v5633_v59  ;;  %1676 = vmatpush.bf16.msrb.mxu0 %v4019_v29  ;;  %v5165_v29 = vld [vmem:[#allocation2 + $0x4b0] sm:$0xf0] }
 0x25c   :  { %1592 = vmatpush.bf16.msra.mxu2 %v4007_v31  ;;  %v4063_v31 = vor.u32 %v5086_v55, %v4062_v54  ;;  %v4003_v54 = vor.u32 %v5068_v38, %v4000_v51  ;;  %v3982_v55 = vld [vmem:[#allocation4 + $0x8] sm:$0xf]  ;;  %v5166_v38 = vld [vmem:[#allocation2 + $0x4b8] sm:$0xf0] }
 0x25f   :  { %1677 = vmatpush.bf16.msrb.mxu0 %v4003_v54 }
 0x260   :  { %1593 = vmatpush.bf16.msra.mxu2 %v3991_v61  ;;  %v5108_v61 = vld [vmem:[#allocation4 + $0x16c] sm:$0xf] }
 0x261   :  { %v4163_v1 = vor.u32 %v5108_v61, %v4160_v63  ;;  %v3987_v61 = vor.u32 %v5064_v32, %v3984_v40  ;;  %v3970_v63 = vld [vmem:[%s5967_s8 + $0x18] sm:$0xff]  ;;  %v5159_v40 = vld [vmem:[#allocation2 + $0x480] sm:$0xf0] }
 0x263   :  { %1689 = vmatpush.bf16.msrb.mxu1 %v4163_v1  ;;  %1678 = vmatpush.bf16.msrb.mxu0 %v3987_v61 }
 0x264   :  { %1594 = vmatpush.bf16.msra.mxu2 %v3975_v44  ;;  %v4159_v44 = vor.u32 %v5110_v6, %v4158_v5 }
 0x266   :  { %1661 = vmatpush.bf16.msrb.mxu3 %v4159_v44 }
 0x267   :  { %1690 = vmatpush.bf16.msrb.mxu1 %v4147_v10  ;;  %v5179_v10 = vld [vmem:[#allocation2 + $0x520] sm:$0xf0] }
 0x268   :  { %1643 = vmatpush.bf16.msrb.mxu2 %v4095_v19  ;;  %v4143_v19 = vor.u32 %v5106_v16, %v4142_v13  ;;  %v4442_v16 = vor.u32 %v5180_v14, %v4441_v12 }
 0x26a   :  { %1662 = vmatpush.bf16.msrb.mxu3 %v4143_v19  ;;  %v4406_v19 = vor.u32 %v5172_v18, %v4405_v17  ;;  %v4301_v17 = vld [vmem:[#allocation2 + $0x3f8] sm:$0xf]  ;;  %v5145_v18 = vld [vmem:[#allocation2 + $0x410] sm:$0xf0] }
 0x26b   :  { %1691 = vmatpush.bf16.msrb.mxu1 %v4131_v24  ;;  %v4410_v24 = vor.u32 %v5169_v21, %v4407_v22  ;;  %v4302_v21 = vor.u32 %v5145_v18, %v4301_v17  ;;  %v5163_v22 = vld [vmem:[#allocation2 + $0x4a4] sm:$0xf]  ;;  %v4451_v18 = vld [vmem:[#allocation2 + $0x534] sm:$0xf0] }
 0x26c   :  { %1644 = vmatpush.bf16.msrb.mxu2 %v4079_v36  ;;  %v3998_v36 = vld [vmem:[#allocation4 + $0x28] sm:$0xf] }
 0x26d   :  { %v3999_v53 = vor.u32 %v5070_v37, %v3998_v36  ;;  %v4379_v36 = vld [vmem:[#allocation2 + $0x4b4] sm:$0xf0]  ;;  %v4385_v37 = vld [vmem:[#allocation2 + $0x4a0] sm:$0xf] }
 0x26e   :  { %1663 = vmatpush.bf16.msrb.mxu3 %v4127_v39  ;;  %v4382_v39 = vor.u32 %v5162_v30, %v4379_v36  ;;  %v4386_v42 = vor.u32 %v5166_v38, %v4385_v37  ;;  %v5137_v30 = vld [vmem:[#allocation2 + $0x3d0] sm:$0xf0] }
 0x26f   :  { %1692 = vmatpush.bf16.msrb.mxu1 %v4115_v48 }
 0x270   :  { %1645 = vmatpush.bf16.msrb.mxu2 %v4063_v31  ;;  %v5066_v31 = vld [vmem:[#allocation4 + $0x14] sm:$0xf0] }
 0x271   :  { %v3983_v41 = vor.u32 %v5066_v31, %v3982_v55  ;;  %v4350_v55 = vor.u32 %v5158_v52, %v4349_v50  ;;  %v4357_v31 = vld [vmem:[#allocation2 + $0x468] sm:$0xf]  ;;  %v5138_v50 = vld [vmem:[#allocation2 + $0x3d8] sm:$0xf0]  ;;  %v5156_v52 = vld [vmem:[#allocation2 + $0x46c] sm:$0xf] }
 0x272   :  { %1693 = vmatmul.bf16.vlgmr.msrb.gmra.mxu1 %v5633_v59  ;;  %1664 = vmatpush.bf16.msrb.mxu3 %v4111_v15 }
 0x274   :  { %1646 = vmatpush.bf16.msrb.mxu2 %v4047_v2  ;;  %v1112_v2 = vadd.f32 %v1111_v49, %v720_v57  ;;  %v5177_v57 = vld [vmem:[#allocation2 + $0x514] sm:$0xf] }
 0x275   :  { %1665 = vmatmul.bf16.vlgmr.msrb.gmra.mxu3 %v5633_v59  ;;  %v5176_v59 = vld [vmem:[#allocation2 + $0x50c] sm:$0xf] }
 0x276   :  { %v4438_v13 = vor.u32 %v5176_v59, %v4435_v43  ;;  %v5144_v59 = vld [vmem:[#allocation2 + $0x408] sm:$0xf0]  ;;  %v5141_v43 = vld [vmem:[#allocation2 + $0x3f4] sm:$0xf] }
 0x278   :  { %1647 = vmatpush.bf16.msrb.mxu2 %v4031_v11  ;;  %v4434_v11 = vor.u32 %v5179_v10, %v4433_v45  ;;  %2210 = vmatpush.bf16.msra.mxu3 %v4438_v13 }
 0x27c   :  { %1648 = vmatpush.bf16.msrb.mxu2 %v4015_v28  ;;  %2211 = vmatpush.bf16.msra.mxu3 %v4410_v24  ;;  %v4377_v28 = vld [vmem:[#allocation2 + $0x498] sm:$0xf] }
 0x27d   :  { %v4378_v35 = vor.u32 %v5165_v29, %v4377_v28  ;;  %v4390_v28 = vor.u32 %v5163_v22, %v4387_v23  ;;  %v4265_v29 = vld [vmem:[#allocation2 + $0x3b8] sm:$0xf] }
 0x27e   :  { %v4266_v38 = vor.u32 %v5137_v30, %v4265_v29 }
 0x280   :  { %1649 = vmatpush.bf16.msrb.mxu2 %v3999_v53  ;;  %2212 = vmatpush.bf16.msra.mxu3 %v4382_v39  ;;  %v5155_v53 = vld [vmem:[#allocation2 + $0x464] sm:$0xf]  ;;  %v4273_v39 = vld [vmem:[#allocation2 + $0x3c0] sm:$0xf] }
 0x284   :  { %1650 = vmatpush.bf16.msrb.mxu2 %v3983_v41  ;;  %v4358_v41 = vor.u32 %v5159_v40, %v4357_v31  ;;  %v4237_v40 = vld [vmem:[#allocation2 + $0x380] sm:$0xf] }
 0x2ca   :  { %v1162_v56 = vpop.f32.mrf.mxu2 }
 0x2cb   :  { %v1163_v58 = vadd.f32 %v3969_v47, %v1162_v56  ;;  %v1260_v47 = vperm.slane %v5651_v26, 1  ;;  %v4351_v56 = vld [vmem:[#allocation2 + $0x47c] sm:$0xf0] }
 0x2cc   :  { %v4354_v32 = vor.u32 %v5155_v53, %v4351_v56  ;;  %v4359_v56 = vld [vmem:[#allocation2 + $0x484] sm:$0xf0] }
 0x2cd   :  { %v1167_v60 = vmul.f32 %v1163_v58, %v5589_v20  ;;  %v4443_v58 = vld [vmem:[#allocation2 + $0x52c] sm:$0xf0] }
 0x2ce   :  { %v4446_v61 = vor.u32 %v5177_v57, %v4443_v58  ;;  %2213 = vmatpush.bf16.msra.mxu3 %v4354_v32 }
 0x2cf   :  { %v1169_v0 = vadd.f32 %v1167_v60, %v1110_v62  ;;  %v1259_v60 = vperm.slane %v5651_v26, 0  ;;  %v4321_v62 = vld [vmem:[#allocation2 + $0x428] sm:$0xf] }
 0x2d0   :  { %2238 = vmatpush.bf16.msra.mxu1 %v4446_v61  ;;  %v5127_v61 = vld [vmem:[#allocation2 + $0x384] sm:$0xf] }
 0x2d1   :  { %v1171_v3 = vmax.f32 %v1169_v0, 0.0  ;;  %v5148_v0 = vld [vmem:[#allocation2 + $0x42c] sm:$0xf] }
 0x2d2   :  { %v1164_v46 = vpop.f32.mrf.mxu2 }
 0x2d3   :  { %v1165_v1 = vadd.f32 %v3970_v63, %v1164_v46  ;;  %v1177_v5 = vpack.c.bf16 %v1171_v3, %v1171_v3  ;;  %v5151_v63 = vld [vmem:[#allocation2 + $0x440] sm:$0xf0]  ;;  %v4329_v3 = vld [vmem:[#allocation2 + $0x430] sm:$0xf] }
 0x2d5   :  { %v1168_v34 = vmul.f32 %v1165_v1, %v5599_v33  ;;  %v1183_v44 = vunpack.c.l.b16 %v1177_v5  ;;  %v4322_v1 = vor.u32 %v5151_v63, %v4321_v62  ;;  %v4239_v62 = vld [vmem:[#allocation2 + $0x39c] sm:$0xf0] }
 0x2d7   :  { %v1170_v4 = vadd.f32 %v1168_v34, %v1112_v2  ;;  %v4323_v2 = vld [vmem:[#allocation2 + $0x444] sm:$0xf0] }
 0x2d8   :  { %v1638_v51 = vpop.f32.mrf.mxu1  ;;  %v4326_v5 = vor.u32 %v5148_v0, %v4323_v2  ;;  %v4242_v0 = vor.u32 %v5127_v61, %v4239_v62 }
 0x2d9   :  { %v1172_v6 = vmax.f32 %v1170_v4, 0.0 }
 0x2da   :  { %2214 = vmatpush.bf16.msra.mxu3 %v4326_v5  ;;  %v4331_v5 = vld [vmem:[#allocation2 + $0x44c] sm:$0xf0] }
 0x2db   :  { %v1178_v7 = vpack.c.bf16 %v1172_v6, %v1172_v6  ;;  %v5152_v6 = vld [vmem:[#allocation2 + $0x448] sm:$0xf0] }
 0x2dd   :  { %v1184_v8 = vunpack.c.l.b16 %v1178_v7  ;;  %v1610_v49 = vpop.f32.mrf.mxu3  ;;  %v5170_v7 = vld [vmem:[#allocation2 + $0x4dc] sm:$0xf] }
 0x2df   :  { %v1185_v9 = vpack.c.b16 %v1184_v8, %v1183_v44  ;;  %v4415_v44 = vld [vmem:[#allocation2 + $0x4f4] sm:$0xf0] }
 0x2e0   :  { %v1640_v34 = vpop.f32.mrf.mxu1  ;;  %v4418_v45 = vor.u32 %v5170_v7, %v4415_v44  ;;  %v4449_v44 = vld [vmem:[#allocation2 + $0x518] sm:$0xf] }
 0x2e1   :  { %1595 = vmatmul.bf16.vlgmr.msra.gmra.mxu2 %v1185_v9  ;;  %1623 = vmatmul.bf16.vlgmr.msra.gmra.mxu0 %v1185_v9 }
 0x2e2   :  { %2196 = vmatpush.bf16.msra.mxu2 %v4434_v11  ;;  %2224 = vmatpush.bf16.msra.mxu0 %v4442_v16  ;;  %v4293_v11 = vld [vmem:[#allocation2 + $0x3f0] sm:$0xf] }
 0x2e3   :  { %2239 = vmatpush.bf16.msra.mxu1 %v4418_v45  ;;  %v4294_v14 = vor.u32 %v5144_v59, %v4293_v11  ;;  %v4295_v16 = vld [vmem:[#allocation2 + $0x40c] sm:$0xf0] }
 0x2e5   :  { %v1612_v53 = vpop.f32.mrf.mxu3 }
 0x2e6   :  { %2197 = vmatpush.bf16.msra.mxu2 %v4406_v19  ;;  %2225 = vmatpush.bf16.msra.mxu0 %v4414_v27  ;;  %v4298_v19 = vor.u32 %v5141_v43, %v4295_v16  ;;  %v1262_v27 = vperm.slane %v5651_v26, 3 }
 0x2e7   :  { %2240 = vmatpush.bf16.msra.mxu1 %v4390_v28 }
 0x2e8   :  { %2215 = vmatpush.bf16.msra.mxu3 %v4298_v19  ;;  %v4457_v19 = vld [vmem:[#allocation2 + $0x520] sm:$0xf] }
 0x2ea   :  { %2198 = vmatpush.bf16.msra.mxu2 %v4378_v35  ;;  %2226 = vmatpush.bf16.msra.mxu0 %v4386_v42  ;;  %v5134_v35 = vld [vmem:[#allocation2 + $0x3bc] sm:$0xf] }
 0x2ee   :  { %2199 = vmatpush.bf16.msra.mxu2 %v4350_v55  ;;  %2227 = vmatpush.bf16.msra.mxu0 %v4358_v41  ;;  %v4274_v55 = vor.u32 %v5138_v50, %v4273_v39  ;;  %v5130_v41 = vld [vmem:[#allocation2 + $0x398] sm:$0xf0]  ;;  %v4401_v39 = vld [vmem:[#allocation2 + $0x4b0] sm:$0xf] }
 0x2ef   :  { %v1694_v31 = vpop.f32.mrf.mxu1  ;;  %v4238_v63 = vor.u32 %v5130_v41, %v4237_v40 }
 0x2f1   :  { %1651 = vmatmul.bf16.vlgmr.msrb.gmra.mxu2 %v1185_v9  ;;  %1679 = vmatmul.bf16.vlgmr.msrb.gmra.mxu0 %v1185_v9  ;;  %v4330_v9 = vor.u32 %v5152_v6, %v4329_v3 }
 0x2f2   :  { %2200 = vmatpush.bf16.msra.mxu2 %v4322_v1 }
 0x2f3   :  { %2228 = vmatpush.bf16.msra.mxu0 %v4330_v9 }
 0x2f6   :  { %2201 = vmatpush.bf16.msra.mxu2 %v4294_v14  ;;  %v5178_v14 = vld [vmem:[#allocation2 + $0x51c] sm:$0xf] }
 0x2f7   :  { %2229 = vmatpush.bf16.msra.mxu0 %v4302_v21  ;;  %v5182_v21 = vld [vmem:[#allocation2 + $0x538] sm:$0xf0] }
 0x2f8   :  { %v1666_v30 = vpop.f32.mrf.mxu3 }
 0x2fa   :  { %2202 = vmatpush.bf16.msra.mxu2 %v4266_v38 }
 0x2fb   :  { %2230 = vmatpush.bf16.msra.mxu0 %v4274_v55 }
 0x2fe   :  { %2203 = vmatpush.bf16.msra.mxu2 %v4238_v63 }
 0x35e   :  { %v1624_v48 = vpop.f32.mrf.mxu0 }
 0x35f   :  { %v1625_v54 = vadd.f32 %v1624_v48, %v1260_v47 }
 0x361   :  { %v1639_v15 = vadd.f32 %v1638_v51, %v1625_v54  ;;  %v4267_v51 = vld [vmem:[#allocation2 + $0x3d4] sm:$0xf0] }
 0x362   :  { %v4270_v48 = vor.u32 %v5134_v35, %v4267_v51  ;;  %v1696_v51 = vpop.f32.mrf.mxu1 }
 0x363   :  { %v4230_v46 = vmul.f32 -1.442695, %v1639_v15  ;;  %v4362_v15 = vor.u32 %v5156_v52, %v4359_v56 }
 0x364   :  { %v1596_v4 = vpop.f32.mrf.mxu2  ;;  %2216 = vmatpush.bf16.msra.mxu3 %v4270_v48  ;;  %v4458_v48 = vor.u32 %v5182_v21, %v4457_v19  ;;  %v1668_v21 = vpop.f32.mrf.mxu3 }
 0x365   :  { %5312 = vpow2.f32 %v4230_v46  ;;  %v1597_v8 = vadd.f32 %v1596_v4, %v1259_v60  ;;  %v5131_v46 = vld [vmem:[#allocation2 + $0x3a0] sm:$0xf0]  ;;  %2241 = vmatpush.bf16.msra.mxu1 %v4362_v15  ;;  %v5149_v4 = vld [vmem:[#allocation2 + $0x434] sm:$0xf] }
 0x366   :  { %v1626_v10 = vpop.f32.mrf.mxu0  ;;  %v4334_v7 = vor.u32 %v5149_v4, %v4331_v5  ;;  %v4429_v4 = vld [vmem:[#allocation2 + $0x4e8] sm:$0xf]  ;;  %v1175_v5 = vld [vmem:[%s5962_s3] sm:$0xff] }
 0x367   :  { %v1611_v12 = vadd.f32 %v1610_v49, %v1597_v8  ;;  %v1627_v13 = vadd.f32 %v1626_v10, %v1260_v47  ;;  %v4245_v49 = vld [vmem:[#allocation2 + $0x388] sm:$0xf]  ;;  %v5181_v8 = vld [vmem:[#allocation2 + $0x530] sm:$0xf0] }
 0x368   :  { %2217 = vmatpush.bf16.msra.mxu3 %v4242_v0  ;;  %v4450_v11 = vor.u32 %v5181_v8, %v4449_v44  ;;  %v5175_v8 = vld [vmem:[#allocation2 + $0x500] sm:$0xf0] }
 0x369   :  { %v4228_v24 = vmul.f32 -1.442695, %v1611_v12  ;;  %v1641_v25 = vadd.f32 %v1640_v34, %v1627_v13  ;;  %v4246_v34 = vor.u32 %v5131_v46, %v4245_v49  ;;  %2242 = vmatpush.bf16.msra.mxu1 %v4334_v7 }
 0x36a   :  { %2252 = vmatpush.bf16.msrb.mxu2 %v4450_v11  ;;  %v5135_v11 = vld [vmem:[#allocation2 + $0x3c4] sm:$0xf] }
 0x36b   :  { %v5313_v36 = vpop.eup %5312  ;;  %5314 = vpow2.f32 %v4228_v24  ;;  %v4231_v37 = vmul.f32 -1.442695, %v1641_v25  ;;  %2231 = vmatpush.bf16.msra.mxu0 %v4246_v34  ;;  %v5142_v24 = vld [vmem:[#allocation2 + $0x3fc] sm:$0xf]  ;;  %v4303_v25 = vld [vmem:[#allocation2 + $0x414] sm:$0xf0] }
 0x36c   :  { %v5658_v42 = vadd.f32 1.0, %v5313_v36  ;;  %v1598_v47 = vpop.f32.mrf.mxu2  ;;  %v4421_v36 = vld [vmem:[#allocation2 + $0x4e0] sm:$0xf] }
 0x36d   :  { %5316 = vpow2.f32 %v4231_v37  ;;  %v1599_v54 = vadd.f32 %v1598_v47, %v1259_v60  ;;  %v1261_v60 = vperm.slane %v5651_v26, 2  ;;  %v5174_v37 = vld [vmem:[#allocation2 + $0x4f8] sm:$0xf0]  ;;  %v4454_v47 = vor.u32 %v5178_v14, %v4451_v18  ;;  %v4423_v34 = vld [vmem:[#allocation2 + $0x4fc] sm:$0xf0] }
 0x36e   :  { %5318 = vrcp.f32 %v5658_v42  ;;  %v1680_v32 = vpop.f32.mrf.mxu0  ;;  %v1756_v45 = vand.u32 2147483648, %v5658_v42  ;;  %v1754_v13 = vand.u32 2147483647, %v5658_v42  ;;  %vm1750_vm1 = vweird.f32 %v5658_v42  ;;  %v5154_v14 = vld [vmem:[#allocation2 + $0x458] sm:$0xf0] }
 0x36f   :  { %v1613_v57 = vadd.f32 %v1612_v53, %v1599_v54  ;;  %v1681_v58 = vadd.f32 %v1680_v32, %v1262_v27  ;;  %2266 = vmatpush.bf16.msrb.mxu3 %v4454_v47  ;;  %2280 = vmatpush.bf16.msrb.mxu0 %v4458_v48  ;;  %v4422_v32 = vor.u32 %v5174_v37, %v4421_v36  ;;  %v5168_v47 = vld [vmem:[#allocation2 + $0x4c8] sm:$0xf0] }
 0x370   :  { %v1757_v29 = vor.u32 1.1754944e-38, %v1756_v45  ;;  %vm5685_vm2 = vcmp.eq.f32.partialorder %v1754_v13, 8.507059e+37  ;;  %v4402_v62 = vor.u32 %v5168_v47, %v4401_v39 }
 0x371   :  { %v5315_v1 = vpop.eup %5314  ;;  %v4229_v2 = vmul.f32 -1.442695, %v1613_v57  ;;  %v1695_v3 = vadd.f32 %v1694_v31, %v1681_v58  ;;  %v4306_v31 = vor.u32 %v5142_v24, %v4303_v25  ;;  %2253 = vmatpush.bf16.msrb.mxu2 %v4422_v32  ;;  %v4247_v58 = vld [vmem:[#allocation2 + $0x3a4] sm:$0xf0]  ;;  %v5139_v32 = vld [vmem:[#allocation2 + $0x3e0] sm:$0xf0] }
 0x372   :  { %v5666_v6 = vadd.f32 1.0, %v5315_v1 }
 0x373   :  { %v5317_v9 = vpop.eup %5316  ;;  %5320 = vpow2.f32 %v4229_v2  ;;  %v4232_v10 = vmul.f32 -1.442695, %v1695_v3  ;;  %2243 = vmatpush.bf16.msra.mxu1 %v4306_v31  ;;  %v5171_v3 = vld [vmem:[#allocation2 + $0x4e4] sm:$0xf] }
 0x374   :  { %v5669_v59 = vpop.eup %5318  ;;  %5322 = vrcp.f32 %v5666_v6  ;;  %v5672_v43 = vadd.f32 1.0, %v5317_v9  ;;  %v1652_v12 = vpop.f32.mrf.mxu2  ;;  %v1716_v22 = vand.u32 2147483647, %v5666_v6  ;;  %vm1712_vm4 = vweird.f32 %v5666_v6 }
 0x375   :  { %v1746_v16 = vmul.f32 %v5669_v59, %v5658_v42  ;;  %5324 = vpow2.f32 %v4232_v10  ;;  %v1653_v17 = vadd.f32 %v1652_v12, %v1261_v60  ;;  %vm1751_vm3 = vweird.f32 %v5669_v59 }
 0x376   :  { %5326 = vrcp.f32 %v5672_v43  ;;  %v1682_v23 = vpop.f32.mrf.mxu0  ;;  %v1771_v38 = vand.u32 2147483648, %v5672_v43  ;;  %v1718_v56 = vand.u32 2147483648, %v5666_v6  ;;  %vm5699_vm5 = vcmp.eq.f32.partialorder %v1716_v22, 8.507059e+37  ;;  %vm5710_vm6 = vmor %vm1750_vm1, %vm1751_vm3  ;;  %v4393_v22 = vld [vmem:[#allocation2 + $0x4a8] sm:$0xf] }
 0x377   :  { %v1747_v28 = vsub.f32 1.0, %v1746_v16  ;;  %v1683_v35 = vadd.f32 %v1682_v23, %v1262_v27  ;;  %v1667_v53 = vadd.f32 %v1666_v30, %v1653_v17  ;;  %vm1765_vm7 = vweird.f32 %v5672_v43  ;;  %v5167_v23 = vld [vmem:[#allocation2 + $0x4c0] sm:$0xf0]  ;;  %v5164_v30 = vld [vmem:[#allocation2 + $0x4ac] sm:$0xf] }
 0x378   :  { %v5715_v63 = vor.u32 1.1754944e-38, %v1771_v38  ;;  %v1769_v49 = vand.u32 2147483647, %v5672_v43  ;;  %v1719_v7 = vor.u32 1.1754944e-38, %v1718_v56  ;;  %v4426_v25 = vor.u32 %v5171_v3, %v4423_v34 }
 0x379   :  { %v5321_v50 = vpop.eup %5320  ;;  %v1748_v52 = vmul.f32 %v5669_v59, %v1747_v28  ;;  %v1697_v27 = vadd.f32 %v1696_v51, %v1683_v35  ;;  %v4430_v28 = vor.u32 %v5175_v8, %v4429_v4  ;;  %v4395_v35 = vld [vmem:[#allocation2 + $0x4c4] sm:$0xf0]  ;;  %v5157_v4 = vld [vmem:[#allocation2 + $0x474] sm:$0xf] }
 0x37a   :  { %v5692_v54 = vpop.eup %5322  ;;  %v5694_v55 = vadd.f32 1.0, %v5321_v50  ;;  %vm5739_vm10 = vcmp.eq.f32.partialorder %v1769_v49, 8.507059e+37  ;;  %2267 = vmatpush.bf16.msrb.mxu3 %v4426_v25  ;;  %v4365_v49 = vld [vmem:[#allocation2 + $0x470] sm:$0xf] }
 0x37b   :  { %v5325_v40 = vpop.eup %5324  ;;  %v1708_v57 = vmul.f32 %v5692_v54, %v5666_v6  ;;  %v1749_v15 = vadd.f32 %v5669_v59, %v1748_v52  ;;  %v4233_v41 = vmul.f32 -1.442695, %v1697_v27  ;;  %vm1713_vm8 = vweird.f32 %v5692_v54  ;;  %2281 = vmatpush.bf16.msrb.mxu0 %v4430_v28  ;;  %v4317_v6 = vld [vmem:[#allocation2 + $0x408] sm:$0xf] }
 0x37c   :  { %v5704_v61 = vpop.eup %5326  ;;  %5328 = vrcp.f32 %v5694_v55  ;;  %v5718_v0 = vadd.f32 1.0, %v5325_v40  ;;  %v1654_v2 = vpop.f32.mrf.mxu2  ;;  %v1731_v44 = vand.u32 2147483647, %v5694_v55  ;;  %vm5752_vm11 = vmor %vm1712_vm4, %vm1713_vm8  ;;  %v1733_v51 = vand.u32 2147483648, %v5694_v55 }
 0x37d   :  { %v1709_v46 = vsub.f32 1.0, %v1708_v57  ;;  %v1761_v42 = vmul.f32 %v5704_v61, %v5672_v43  ;;  %v1753_v1 = vsel %vm5710_vm6, %v5669_v59, %v1749_v15  ;;  %5330 = vtanh.f32 %v1667_v53  ;;  %v4275_v59 = vld [vmem:[#allocation2 + $0x3dc] sm:$0xf0]  ;;  %v5128_v57 = vld [vmem:[#allocation2 + $0x38c] sm:$0xf] }
 0x37e   :  { %5332 = vrcp.f32 %v5718_v0  ;;  %v1758_v10 = vsel %vm5685_vm2, %v1757_v29, %v1753_v1  ;;  %vm1766_vm9 = vweird.f32 %v5704_v61  ;;  %v1794_v12 = vand.u32 2147483647, %v5718_v0 }
 0x37f   :  { %v1762_v9 = vsub.f32 1.0, %v1761_v42  ;;  %v1710_v45 = vmul.f32 %v5692_v54, %v1709_v46  ;;  %5334 = vpow2.f32 %v4233_v41  ;;  %v1655_v13 = vadd.f32 %v1654_v2, %v1261_v60  ;;  %vm5776_vm14 = vmor %vm1765_vm7, %vm1766_vm9  ;;  %v5160_v46 = vld [vmem:[#allocation2 + $0x488] sm:$0xf0]  ;;  %2282 = vmatpush.bf16.msrb.mxu0 %v4402_v62 }
 0x380   :  { %v1796_v17 = vand.u32 2147483648, %v5718_v0  ;;  %v1815_v19 = vmul.f32 %v1758_v10, %v1175_v5  ;;  %v4278_v29 = vor.u32 %v5135_v11, %v4275_v59  ;;  %vm5761_vm12 = vcmp.eq.f32.partialorder %v1731_v44, 8.507059e+37  ;;  %v1176_v2 = vld [vmem:[%s5962_s3 + $0x8] sm:$0xff]  ;;  %v4367_v5 = vld [vmem:[#allocation2 + $0x48c] sm:$0xf0] }
 0x381   :  { %v1763_v16 = vmul.f32 %v5704_v61, %v1762_v9  ;;  %v1711_v18 = vadd.f32 %v5692_v54, %v1710_v45  ;;  %v1669_v60 = vadd.f32 %v1668_v21, %v1655_v13  ;;  %v4394_v53 = vor.u32 %v5167_v23, %v4393_v22  ;;  %v4337_v44 = vld [vmem:[#allocation2 + $0x438] sm:$0xf]  ;;  %v5153_v9 = vld [vmem:[#allocation2 + $0x450] sm:$0xf0]  ;;  %v5150_v45 = vld [vmem:[#allocation2 + $0x43c] sm:$0xf] }
 0x382   :  { %v5746_v24 = vpop.eup %5328  ;;  %vm5782_vm15 = vcmp.eq.f32.partialorder %v1794_v12, 8.507059e+37  ;;  %2244 = vmatpush.bf16.msra.mxu1 %v4278_v29  ;;  %v4398_v41 = vor.u32 %v5164_v30, %v4395_v35  ;;  %vm1790_vm1 = vweird.f32 %v5718_v0  ;;  %vm1727_vm2 = vweird.f32 %v5694_v55  ;;  %v4339_v10 = vld [vmem:[#allocation2 + $0x454] sm:$0xf0]  ;;  %v4345_v13 = vld [vmem:[#allocation2 + $0x440] sm:$0xf] }
 0x383   :  { %v5331_v36 = vpop.eup %5330  ;;  %v1723_v37 = vmul.f32 %v5746_v24, %v5694_v55  ;;  %v1715_v38 = vsel %vm5752_vm11, %v5692_v54, %v1711_v18  ;;  %vm1728_vm13 = vweird.f32 %v5746_v24  ;;  %v1764_v52 = vadd.f32 %v5704_v61, %v1763_v16  ;;  %2254 = vmatpush.bf16.msrb.mxu2 %v4394_v53  ;;  %v4309_v35 = vld [vmem:[#allocation2 + $0x400] sm:$0xf] }
 0x384   :  { %v5766_v48 = vpop.eup %5332  ;;  %v1720_v50 = vsel %vm5699_vm5, %v1719_v7, %v1715_v38  ;;  %5336 = vtanh.f32 %v1669_v60  ;;  %2268 = vmatpush.bf16.msrb.mxu3 %v4398_v41  ;;  %v5161_v7 = vld [vmem:[#allocation2 + $0x490] sm:$0xf0]  ;;  %vm1729_vm4 = vmor %vm1727_vm2, %vm1728_vm13  ;;  %v1734_v55 = vor.u32 1.1754944e-38, %v1733_v51  ;;  %v4250_v59 = vor.u32 %v5128_v57, %v4247_v58  ;;  %v4311_v38 = vld [vmem:[#allocation2 + $0x41c] sm:$0xf0] }
 0x385   :  { %v5335_v27 = vpop.eup %5334  ;;  %v1724_v56 = vsub.f32 1.0, %v1723_v37  ;;  %v1786_v31 = vmul.f32 %v5766_v48, %v5718_v0  ;;  %v1817_v40 = vmul.f32 %v5331_v36, %v1720_v50  ;;  %v1768_v43 = vsel %vm5776_vm14, %v5704_v61, %v1764_v52  ;;  %v4373_v61 = vld [vmem:[#allocation2 + $0x478] sm:$0xf]  ;;  %v5146_v36 = vld [vmem:[#allocation2 + $0x418] sm:$0xf0] }
 0x386   :  { %v5786_v15 = vadd.f32 1.0, %v5335_v27  ;;  %v1773_v34 = vsel %vm5739_vm10, %v5715_v63, %v1768_v43  ;;  %vm1791_vm3 = vweird.f32 %v5766_v48  ;;  %v4366_v12 = vor.u32 %v5160_v46, %v4365_v49  ;;  %2245 = vmatpush.bf16.msra.mxu1 %v4250_v59  ;;  %v5143_v37 = vld [vmem:[#allocation2 + $0x404] sm:$0xf]  ;;  %v4281_v27 = vld [vmem:[#allocation2 + $0x3c8] sm:$0xf] }
 0x387   :  { %v1787_v42 = vsub.f32 1.0, %v1786_v31  ;;  %v1819_v1 = vadd.f32 %v1817_v40, %v1815_v19  ;;  %v1725_v3 = vmul.f32 %v5746_v24, %v1724_v56  ;;  %v1816_v11 = vmul.f32 %v1773_v34, %v1176_v2  ;;  %vm5815_vm5 = vmor %vm1790_vm1, %vm1791_vm3  ;;  %v5147_v51 = vld [vmem:[#allocation2 + $0x420] sm:$0xf0]  ;;  %v5136_v40 = vld [vmem:[#allocation2 + $0x3cc] sm:$0xf] }
 0x388   :  { %5338 = vrcp.f32 %v5786_v15  ;;  %v4370_v21 = vor.u32 %v5157_v4, %v4367_v5  ;;  %v4374_v22 = vor.u32 %v5161_v7, %v4373_v61  ;;  %v1797_v26 = vor.u32 1.1754944e-38, %v1796_v17  ;;  %2255 = vmatpush.bf16.msrb.mxu2 %v4366_v12  ;;  %v4283_v57 = vld [vmem:[#allocation2 + $0x3e4] sm:$0xf0]  ;;  %v4289_v58 = vld [vmem:[#allocation2 + $0x3d0] sm:$0xf] }
 0x389   :  { %v1788_v8 = vmul.f32 %v5766_v48, %v1787_v42  ;;  %5340 = vtanh.f32 %v1819_v1  ;;  %3499 = vst [vmem:[%s5974_s15] sm:$0xff] %v1819_v1  ;;  %v1726_v63 = vadd.f32 %v5746_v24, %v1725_v3  ;;  %v4338_v25 = vor.u32 %v5153_v9, %v4337_v44  ;;  %v5140_v43 = vld [vmem:[#allocation2 + $0x3e8] sm:$0xf0]  ;;  %v4253_v2 = vld [vmem:[#allocation2 + $0x390] sm:$0xf]  ;;  %v5129_v61 = vld [vmem:[#allocation2 + $0x394] sm:$0xf] }
 0x38a   :  { %v5337_v16 = vpop.eup %5336  ;;  %2269 = vmatpush.bf16.msrb.mxu3 %v4370_v21  ;;  %2283 = vmatpush.bf16.msrb.mxu0 %v4374_v22  ;;  %v4346_v30 = vor.u32 %v5154_v14, %v4345_v13  ;;  %v4310_v53 = vor.u32 %v5146_v36, %v4309_v35  ;;  %v4314_v56 = vor.u32 %v5143_v37, %v4311_v38  ;;  %v1809_v62 = vand.u32 2147483647, %v5786_v15  ;;  %v5132_v3 = vld [vmem:[#allocation2 + $0x3a8] sm:$0xf0]  ;;  %v5133_v9 = vld [vmem:[#allocation2 + $0x3b0] sm:$0xf0] }
 0x38b   :  { %v1789_v18 = vadd.f32 %v5766_v48, %v1788_v8  ;;  %v1730_v19 = vsel %vm1729_vm4, %v5746_v24, %v1726_v63  ;;  %v4342_v24 = vor.u32 %v5150_v45, %v4339_v10  ;;  %v4318_v31 = vor.u32 %v5147_v51, %v4317_v6  ;;  %v4255_v8 = vld [vmem:[#allocation2 + $0x3ac] sm:$0xf0]  ;;  %v4261_v63 = vld [vmem:[#allocation2 + $0x398] sm:$0xf]  ;;  %v5232_v36 = vld [vmem:[#allocation2 + $0x6cc] sm:$0xf] }
 0x38c   :  { %v1735_v60 = vsel %vm5761_vm12, %v1734_v55, %v1730_v19  ;;  %2256 = vmatpush.bf16.msrb.mxu2 %v4338_v25  ;;  %v4282_v49 = vor.u32 %v5139_v32, %v4281_v27  ;;  %vm1805_vm7 = vweird.f32 %v5786_v15  ;;  %v4286_v42 = vor.u32 %v5136_v40, %v4283_v57  ;;  %v4663_v38 = vld [vmem:[#allocation2 + $0x6e4] sm:$0xf0]  ;;  %v4669_v6 = vld [vmem:[#allocation2 + $0x6d0] sm:$0xf]  ;;  %v5236_v51 = vld [vmem:[#allocation2 + $0x6e8] sm:$0xf0] }
 0x38d   :  { %v1793_v28 = vsel %vm5815_vm5, %v5766_v48, %v1789_v18  ;;  %v1818_v29 = vmul.f32 %v5337_v16, %v1735_v60  ;;  %v1811_v48 = vand.u32 2147483648, %v5786_v15  ;;  %v4290_v1 = vor.u32 %v5140_v43, %v4289_v58  ;;  %v5848_v18 = vld [vmem:[%s5966_s7 + $0xe] sm:$0xff] }
 0x38e   :  { %v5339_v0 = vpop.eup %5338  ;;  %v1798_v17 = vsel %vm5782_vm15, %v1797_v26, %v1793_v28  ;;  %2270 = vmatpush.bf16.msrb.mxu3 %v4342_v24  ;;  %2284 = vmatpush.bf16.msrb.mxu0 %v4346_v30  ;;  %vm1810_vm9 = vcmp.eq.f32.partialorder %v1809_v62, 8.507059e+37  ;;  %v4254_v44 = vor.u32 %v5132_v3, %v4253_v2  ;;  %v4258_v10 = vor.u32 %v5129_v61, %v4255_v8  ;;  %v4635_v27 = vld [vmem:[#allocation2 + $0x6ac] sm:$0xf0]  ;;  %v4607_v62 = vld [vmem:[#allocation2 + $0x674] sm:$0xf0] }
 0x38f   :  { %v5341_v39 = vpop.eup %5340  ;;  %v1801_v47 = vmul.f32 %v5339_v0, %v5786_v15  ;;  %v1820_v50 = vadd.f32 %v1818_v29, %v1816_v11  ;;  %vm1806_vm6 = vweird.f32 %v5339_v0  ;;  %v1812_v34 = vor.u32 1.1754944e-38, %v1811_v48  ;;  %v5222_v2 = vld [vmem:[#allocation2 + $0x678] sm:$0xf0]  ;;  %v4579_v8 = vld [vmem:[#allocation2 + $0x63c] sm:$0xf0] }
 0x390   :  { %v1823_v52 = vmul.f32 %v5341_v39, %v1798_v17  ;;  %2257 = vmatpush.bf16.msrb.mxu2 %v4310_v53  ;;  %vm1807_vm8 = vmor %vm1805_vm7, %vm1806_vm6  ;;  %v4262_v55 = vor.u32 %v5133_v9, %v4261_v63  ;;  %v1898_v22 = vperm.slane %v5848_v18, 4  ;;  %v1899_v23 = vperm.slane %v5848_v18, 5  ;;  %v4585_v63 = vld [vmem:[#allocation2 + $0x628] sm:$0xf] }
 0x391   :  { %v1802_v54 = vsub.f32 1.0, %v1801_v47  ;;  %5342 = vtanh.f32 %v1820_v50  ;;  %3500 = vst [vmem:[%s5974_s15 + $0x8] sm:$0xff] %v1820_v50  ;;  %v1896_v28 = vperm.slane %v5848_v18, 2  ;;  %v1897_v29 = vperm.slane %v5848_v18, 3  ;;  %v5225_v50 = vld [vmem:[#allocation2 + $0x694] sm:$0xf] }
 0x392   :  { %3497 = vst [vmem:[%s5973_s14] sm:$0xff] %v1823_v52  ;;  %2271 = vmatpush.bf16.msrb.mxu3 %v4314_v56  ;;  %2285 = vmatpush.bf16.msrb.mxu0 %v4318_v31  ;;  %v4666_v39 = vor.u32 %v5232_v36, %v4663_v38  ;;  %v4670_v47 = vor.u32 %v5236_v51, %v4669_v6  ;;  %v5229_v56 = vld [vmem:[#allocation2 + $0x6b0] sm:$0xf0]  ;;  %v1895_v61 = vperm.slane %v5848_v18, 1  ;;  %v4643_v36 = vld [vmem:[#allocation2 + $0x6b4] sm:$0xf0] }
 0x393   :  { %v1803_v41 = vmul.f32 %v5339_v0, %v1802_v54  ;;  %v4641_v54 = vld [vmem:[#allocation2 + $0x698] sm:$0xf]  ;;  %v4638_v31 = vor.u32 %v5225_v50, %v4635_v27  ;;  %v4523_v6 = vld [vmem:[#allocation2 + $0x5cc] sm:$0xf0]  ;;  %v5201_v50 = vld [vmem:[#allocation2 + $0x5d0] sm:$0xf0] }
 0x394   :  { %2258 = vmatpush.bf16.msrb.mxu2 %v4282_v49  ;;  %v4642_v32 = vor.u32 %v5229_v56, %v4641_v54  ;;  %v4613_v49 = vld [vmem:[#allocation2 + $0x660] sm:$0xf]  ;;  %v4529_v51 = vld [vmem:[#allocation2 + $0x5b8] sm:$0xf] }
 0x395   :  { %v1804_v46 = vadd.f32 %v5339_v0, %v1803_v41  ;;  %v5218_v41 = vld [vmem:[#allocation2 + $0x65c] sm:$0xf]  ;;  %v4530_v27 = vor.u32 %v5201_v50, %v4529_v51 }
 0x396   :  { %2272 = vmatpush.bf16.msrb.mxu3 %v4286_v42  ;;  %2286 = vmatpush.bf16.msrb.mxu0 %v4290_v1  ;;  %v4610_v3 = vor.u32 %v5218_v41, %v4607_v62  ;;  %v5235_v41 = vld [vmem:[#allocation2 + $0x6e0] sm:$0xf0]  ;;  %v5194_v62 = vld [vmem:[#allocation2 + $0x598] sm:$0xf0] }
 0x397   :  { %v5343_v4 = vpop.eup %5342  ;;  %v1808_v5 = vsel %vm1807_vm8, %v5339_v0, %v1804_v46  ;;  %v5238_v50 = vld [vmem:[#allocation2 + $0x6f8] sm:$0xf0] }
 0x398   :  { %v1813_v7 = vsel %vm1810_vm9, %v1812_v34, %v1808_v5  ;;  %2259 = vmatpush.bf16.msrb.mxu2 %v4254_v44  ;;  %v4614_v34 = vor.u32 %v5222_v2, %v4613_v49  ;;  %v1894_v5 = vperm.slane %v5848_v18, 0  ;;  %v5211_v44 = vld [vmem:[#allocation2 + $0x624] sm:$0xf] }
 0x399   :  { %v1824_v45 = vmul.f32 %v5343_v4, %v1813_v7 }
 0x39a   :  { %2273 = vmatpush.bf16.msrb.mxu3 %v4258_v10  ;;  %2287 = vmatpush.bf16.msrb.mxu0 %v4262_v55  ;;  %v5215_v55 = vld [vmem:[#allocation2 + $0x640] sm:$0xf0] }
 0x39b   :  { %v1825_v15 = vpack.c.bf16 %v1824_v45, %v1823_v52  ;;  %3498 = vst [vmem:[%s5973_s14 + $0x8] sm:$0xff] %v1824_v45 }
 0x39d   :  { %2204 = vmatmul.bf16.vlgmr.msra.gmra.mxu2 %v1825_v15  ;;  %2218 = vmatmul.bf16.vlgmr.msra.gmra.mxu3 %v1825_v15 }
 0x39e   :  { %2232 = vmatmul.bf16.vlgmr.msra.gmra.mxu0 %v1825_v15  ;;  %2246 = vmatmul.bf16.vlgmr.msra.gmra.mxu1 %v1825_v15 }
 0x39f   :  { %2738 = vmatpush.bf16.msra.mxu2 %v4666_v39  ;;  %2752 = vmatpush.bf16.msra.mxu3 %v4670_v47 }
 0x3a3   :  { %2739 = vmatpush.bf16.msra.mxu2 %v4638_v31  ;;  %2753 = vmatpush.bf16.msra.mxu3 %v4642_v32  ;;  %v5190_v31 = vld [vmem:[#allocation2 + $0x57c] sm:$0xf]  ;;  %v4495_v32 = vld [vmem:[#allocation2 + $0x594] sm:$0xf0] }
 0x3a4   :  { %v4498_v49 = vor.u32 %v5190_v31, %v4495_v32  ;;  %v5227_v31 = vld [vmem:[#allocation2 + $0x6a4] sm:$0xf]  ;;  %v4651_v32 = vld [vmem:[#allocation2 + $0x6bc] sm:$0xf0] }
 0x3a7   :  { %2740 = vmatpush.bf16.msra.mxu2 %v4610_v3  ;;  %2754 = vmatpush.bf16.msra.mxu3 %v4614_v34  ;;  %v4633_v3 = vld [vmem:[#allocation2 + $0x690] sm:$0xf]  ;;  %v5228_v34 = vld [vmem:[#allocation2 + $0x6a8] sm:$0xf0] }
 0x3ad   :  { %2260 = vmatmul.bf16.vlgmr.msrb.gmra.mxu2 %v1825_v15  ;;  %2274 = vmatmul.bf16.vlgmr.msrb.gmra.mxu3 %v1825_v15 }
 0x3ae   :  { %2288 = vmatmul.bf16.vlgmr.msrb.gmra.mxu0 %v1825_v15 }
 0x41b   :  { %v2233_v14 = vpop.f32.mrf.mxu0  ;;  %v2247_v16 = vpop.f32.mrf.mxu1 }
 0x41c   :  { %v2234_v40 = vadd.f32 %v2233_v14, %v1896_v28  ;;  %v2248_v57 = vadd.f32 %v2247_v16, %v1897_v29  ;;  %v5233_v14 = vld [vmem:[#allocation2 + $0x6d4] sm:$0xf]  ;;  %v4671_v16 = vld [vmem:[#allocation2 + $0x6ec] sm:$0xf0] }
 0x41e   :  { %v2295_v4 = vpack.c.bf16 %v2248_v57, %v2234_v40  ;;  %v4501_v40 = vld [vmem:[#allocation2 + $0x580] sm:$0xf] }
 0x420   :  { %v5841_v11 = vpop.f32.mrf.mxu2  ;;  %v5843_v59 = vpop.f32.mrf.mxu3  ;;  %v2312_v38 = vunpack.c.l.b16 %v2295_v4 }
 0x423   :  { %v2235_v25 = vpop.f32.mrf.mxu0  ;;  %v2249_v24 = vpop.f32.mrf.mxu1 }
 0x424   :  { %v2236_v52 = vadd.f32 %v2235_v25, %v1896_v28  ;;  %v2250_v48 = vadd.f32 %v2249_v24, %v1897_v29  ;;  %v5204_v25 = vld [vmem:[#allocation2 + $0x5ec] sm:$0xf]  ;;  %v4551_v24 = vld [vmem:[#allocation2 + $0x604] sm:$0xf0] }
 0x426   :  { %v2298_v46 = vpack.c.bf16 %v2250_v48, %v2236_v52  ;;  %v5219_v52 = vld [vmem:[#allocation2 + $0x664] sm:$0xf]  ;;  %v4615_v48 = vld [vmem:[#allocation2 + $0x67c] sm:$0xf0] }
 0x427   :  { %v4618_v54 = vor.u32 %v5219_v52, %v4615_v48  ;;  %v5198_v48 = vld [vmem:[#allocation2 + $0x5bc] sm:$0xf] }
 0x428   :  { %v2207_v12 = vpop.f32.mrf.mxu2  ;;  %v2221_v13 = vpop.f32.mrf.mxu3  ;;  %v2317_v9 = vunpack.c.h.b16 %v2298_v46 }
 0x429   :  { %v2208_v45 = vadd.f32 %v2207_v12, %v1894_v5  ;;  %v2222_v15 = vadd.f32 %v2221_v13, %v1895_v61  ;;  %v4557_v12 = vld [vmem:[#allocation2 + $0x5f0] sm:$0xf]  ;;  %v2313_v13 = vunpack.c.l.b16 %v2298_v46  ;;  %v4502_v46 = vor.u32 %v5194_v62, %v4501_v40  ;;  %v5191_v62 = vld [vmem:[#allocation2 + $0x584] sm:$0xf] }
 0x42b   :  { %v2297_v28 = vpack.c.bf16 %v2222_v15, %v2208_v45  ;;  %v2314_v47 = vpack.c.b16 %v2313_v13, %v2312_v38  ;;  %v4549_v45 = vld [vmem:[#allocation2 + $0x5e8] sm:$0xf]  ;;  %v5207_v15 = vld [vmem:[#allocation2 + $0x600] sm:$0xf0] }
 0x42d   :  { %v2307_v39 = vunpack.c.h.b16 %v2297_v28  ;;  %v2303_v57 = vunpack.c.l.b16 %v2297_v28  ;;  %v4467_v28 = vld [vmem:[#allocation2 + $0x55c] sm:$0xf0] }
 0x430   :  { %v2261_v19 = vpop.f32.mrf.mxu2  ;;  %v2275_v21 = vpop.f32.mrf.mxu3 }
 0x431   :  { %v2262_v26 = vadd.f32 %v2261_v19, %v1898_v22  ;;  %v2276_v60 = vadd.f32 %v2275_v21, %v1899_v23  ;;  %v4582_v19 = vor.u32 %v5211_v44, %v4579_v8  ;;  %v4586_v21 = vor.u32 %v5215_v55, %v4585_v63  ;;  %v4577_v8 = vld [vmem:[#allocation2 + $0x620] sm:$0xf]  ;;  %v5214_v63 = vld [vmem:[#allocation2 + $0x638] sm:$0xf0]  ;;  %v4521_v55 = vld [vmem:[#allocation2 + $0x5b0] sm:$0xf] }
 0x433   :  { %v2296_v37 = vpack.c.bf16 %v2276_v60, %v2262_v26  ;;  %v2206_v26 = vadd.f32 %v5841_v11, %v1894_v5  ;;  %v2220_v60 = vadd.f32 %v5843_v59, %v1895_v61  ;;  %2741 = vmatpush.bf16.msra.mxu2 %v4582_v19  ;;  %2755 = vmatpush.bf16.msra.mxu3 %v4586_v21  ;;  %v5197_v59 = vld [vmem:[#allocation2 + $0x5b4] sm:$0xf]  ;;  %v4605_v5 = vld [vmem:[#allocation2 + $0x658] sm:$0xf] }
 0x434   :  { %v5221_v61 = vld [vmem:[#allocation2 + $0x670] sm:$0xf0]  ;;  %v4493_v19 = vld [vmem:[#allocation2 + $0x578] sm:$0xf] }
 0x435   :  { %v2326_v58 = vunpack.c.h.b16 %v2296_v37  ;;  %v2322_v7 = vunpack.c.l.b16 %v2296_v37  ;;  %v4554_v37 = vor.u32 %v5204_v25, %v4551_v24  ;;  %v2294_v11 = vpack.c.bf16 %v2220_v60, %v2206_v26  ;;  %v5193_v21 = vld [vmem:[#allocation2 + $0x590] sm:$0xf0]  ;;  %v4587_v26 = vld [vmem:[#allocation2 + $0x644] sm:$0xf0]  ;;  %v4465_v25 = vld [vmem:[#allocation2 + $0x540] sm:$0xf] }
 0x436   :  { %v4606_v44 = vor.u32 %v5221_v61, %v4605_v5  ;;  %v5186_v24 = vld [vmem:[#allocation2 + $0x558] sm:$0xf0]  ;;  %v4629_v5 = vld [vmem:[#allocation2 + $0x670] sm:$0xf]  ;;  %v5224_v61 = vld [vmem:[#allocation2 + $0x688] sm:$0xf0] }
 0x437   :  { %2742 = vmatpush.bf16.msra.mxu2 %v4554_v37  ;;  %v2306_v56 = vunpack.c.h.b16 %v2294_v11  ;;  %v4466_v13 = vor.u32 %v5186_v24, %v4465_v25  ;;  %v5205_v37 = vld [vmem:[#allocation2 + $0x5f4] sm:$0xf]  ;;  %v4567_v25 = vld [vmem:[#allocation2 + $0x614] sm:$0xf0]  ;;  %v4573_v24 = vld [vmem:[#allocation2 + $0x600] sm:$0xf] }
 0x438   :  { %v2263_v30 = vpop.f32.mrf.mxu2  ;;  %v2277_v35 = vpop.f32.mrf.mxu3 }
 0x439   :  { %v2264_v0 = vadd.f32 %v2263_v30, %v1898_v22  ;;  %v2278_v17 = vadd.f32 %v2277_v35, %v1899_v23  ;;  %v4674_v22 = vor.u32 %v5233_v14, %v4671_v16  ;;  %v2316_v23 = vunpack.c.h.b16 %v2295_v4  ;;  %v5208_v30 = vld [vmem:[#allocation2 + $0x608] sm:$0xf0]  ;;  %v5226_v35 = vld [vmem:[#allocation2 + $0x69c] sm:$0xf] }
 0x43a   :  { %v4634_v4 = vor.u32 %v5228_v34, %v4633_v3  ;;  %v5200_v14 = vld [vmem:[#allocation2 + $0x5c8] sm:$0xf0]  ;;  %v4623_v3 = vld [vmem:[#allocation2 + $0x684] sm:$0xf0] }
 0x43b   :  { %v2299_v53 = vpack.c.bf16 %v2278_v17, %v2264_v0  ;;  %2766 = vmatpush.bf16.msra.mxu0 %v4674_v22  ;;  %v2318_v29 = vpack.c.b16 %v2317_v9, %v2316_v23  ;;  %v4558_v0 = vor.u32 %v5208_v30, %v4557_v12  ;;  %v4646_v17 = vor.u32 %v5226_v35, %v4643_v36  ;;  %v5212_v23 = vld [vmem:[#allocation2 + $0x62c] sm:$0xf]  ;;  %v5183_v12 = vld [vmem:[#allocation2 + $0x544] sm:$0xf] }
 0x43c   :  { %v4578_v9 = vor.u32 %v5214_v63, %v4577_v8  ;;  %v4522_v16 = vor.u32 %v5200_v14, %v4521_v55  ;;  %v4494_v22 = vor.u32 %v5193_v21, %v4493_v19  ;;  %v4590_v60 = vor.u32 %v5212_v23, %v4587_v26  ;;  %v5187_v30 = vld [vmem:[#allocation2 + $0x560] sm:$0xf0]  ;;  %v5184_v8 = vld [vmem:[#allocation2 + $0x54c] sm:$0xf]  ;;  %v4475_v63 = vld [vmem:[#allocation2 + $0x564] sm:$0xf0] }
 0x43d   :  { %v2327_v43 = vunpack.c.h.b16 %v2299_v53  ;;  %v2323_v42 = vunpack.c.l.b16 %v2299_v53  ;;  %2756 = vmatpush.bf16.msra.mxu3 %v4558_v0  ;;  %v4526_v53 = vor.u32 %v5197_v59, %v4523_v6  ;;  %v4470_v35 = vor.u32 %v5183_v12, %v4467_v28  ;;  %v4559_v0 = vld [vmem:[#allocation2 + $0x60c] sm:$0xf0]  ;;  %v5234_v59 = vld [vmem:[#allocation2 + $0x6dc] sm:$0xf]  ;;  %v4679_v6 = vld [vmem:[#allocation2 + $0x6f4] sm:$0xf0] }
 0x43e   :  { %v4562_v38 = vor.u32 %v5205_v37, %v4559_v0  ;;  %v4595_v55 = vld [vmem:[#allocation2 + $0x64c] sm:$0xf0]  ;;  %v4601_v19 = vld [vmem:[#allocation2 + $0x638] sm:$0xf]  ;;  %v5217_v21 = vld [vmem:[#allocation2 + $0x650] sm:$0xf0] }
 0x43f   :  { %v2328_v1 = vpack.c.b16 %v2327_v43, %v2326_v58  ;;  %v2324_v10 = vpack.c.b16 %v2323_v42, %v2322_v7  ;;  %2767 = vmatpush.bf16.msra.mxu0 %v4646_v17  ;;  %v2308_v58 = vpack.c.b16 %v2307_v39, %v2306_v56  ;;  %v4661_v43 = vld [vmem:[#allocation2 + $0x6c8] sm:$0xf]  ;;  %2743 = vmatpush.bf16.msra.mxu2 %v4526_v53  ;;  %v2302_v42 = vunpack.c.l.b16 %v2294_v11  ;;  %v5861_v7 = vld [vmem:[%s5963_s4] sm:$0xff]  ;;  %v4677_v17 = vld [vmem:[#allocation2 + $0x6d8] sm:$0xf] }
 0x440   :  { %v5237_v11 = vld [vmem:[#allocation2 + $0x6f0] sm:$0xf0]  ;;  %v4682_v39 = vor.u32 %v5234_v59, %v4679_v6  ;;  %v4531_v53 = vld [vmem:[#allocation2 + $0x5d4] sm:$0xf0]  ;;  %v5230_v56 = vld [vmem:[#allocation2 + $0x6b8] sm:$0xf0] }
 0x441   :  { %2335 = vmatpush.bf16.msrb.mxu1 %v2328_v1  ;;  %2757 = vmatpush.bf16.msra.mxu3 %v4530_v27  ;;  %v4662_v1 = vor.u32 %v5235_v41, %v4661_v43  ;;  %v2304_v2 = vpack.c.b16 %v2303_v57, %v2302_v42  ;;  %v4678_v51 = vor.u32 %v5237_v11, %v4677_v17  ;;  %v4649_v27 = vld [vmem:[#allocation2 + $0x6a0] sm:$0xf]  ;;  %v5231_v43 = vld [vmem:[#allocation2 + $0x6c0] sm:$0xf0]  ;;  %v4565_v23 = vld [vmem:[#allocation2 + $0x5f8] sm:$0xf] }
 0x442   :  { %v4650_v40 = vor.u32 %v5230_v56, %v4649_v27  ;;  %v4654_v57 = vor.u32 %v5227_v31, %v4651_v32  ;;  %v5209_v26 = vld [vmem:[#allocation2 + $0x610] sm:$0xf0]  ;;  %v5210_v12 = vld [vmem:[#allocation2 + $0x618] sm:$0xf0]  ;;  %v4539_v37 = vld [vmem:[#allocation2 + $0x5dc] sm:$0xf0] }
 0x443   :  { %2768 = vmatpush.bf16.msra.mxu0 %v4618_v54  ;;  %2744 = vmatpush.bf16.msra.mxu2 %v4498_v49  ;;  %v4534_v54 = vor.u32 %v5198_v48, %v4531_v53  ;;  %v4503_v49 = vld [vmem:[#allocation2 + $0x59c] sm:$0xf0]  ;;  %v4545_v0 = vld [vmem:[#allocation2 + $0x5c8] sm:$0xf]  ;;  %v5203_v17 = vld [vmem:[#allocation2 + $0x5e0] sm:$0xf0]  ;;  %v2289_v48 = vpop.f32.mrf.mxu0 }
 0x444   :  { %v4506_v42 = vor.u32 %v5191_v62, %v4503_v49  ;;  %v4509_v59 = vld [vmem:[#allocation2 + $0x588] sm:$0xf]  ;;  %v4546_v6 = vor.u32 %v5203_v17, %v4545_v0  ;;  %v5188_v31 = vld [vmem:[#allocation2 + $0x568] sm:$0xf0]  ;;  %v5185_v32 = vld [vmem:[#allocation2 + $0x554] sm:$0xf] }
 0x445   :  { %2336 = vmatpush.bf16.msrb.mxu1 %v2324_v10  ;;  %2758 = vmatpush.bf16.msra.mxu3 %v4502_v46  ;;  %v4550_v10 = vor.u32 %v5207_v15, %v4549_v45  ;;  %v4621_v46 = vld [vmem:[#allocation2 + $0x668] sm:$0xf]  ;;  %v4478_v45 = vor.u32 %v5184_v8, %v4475_v63  ;;  %v5216_v15 = vld [vmem:[#allocation2 + $0x648] sm:$0xf0]  ;;  %v4806_v17 = vld [vmem:[#allocation6 + $0xf0] sm:$0xf0] }
 0x447   :  { %2769 = vmatpush.bf16.msra.mxu0 %v4590_v60  ;;  %2745 = vmatpush.bf16.msra.mxu2 %v4470_v35  ;;  %v5206_v60 = vld [vmem:[#allocation2 + $0x5fc] sm:$0xf] }
 0x448   :  { %v4570_v28 = vor.u32 %v5206_v60, %v4567_v25  ;;  %v5202_v35 = vld [vmem:[#allocation2 + $0x5d8] sm:$0xf0] }
 0x449   :  { %2337 = vmatpush.bf16.msrb.mxu1 %v2318_v29  ;;  %v4473_v29 = vld [vmem:[#allocation2 + $0x548] sm:$0xf] }
 0x44a   :  { %v4474_v36 = vor.u32 %v5187_v30, %v4473_v29  ;;  %v4537_v29 = vld [vmem:[#allocation2 + $0x5c0] sm:$0xf]  ;;  %v4574_v30 = vor.u32 %v5210_v12, %v4573_v24 }
 0x44b   :  { %2770 = vmatpush.bf16.msra.mxu0 %v4562_v38  ;;  %2794 = vmatpush.bf16.msrb.mxu2 %v4682_v39  ;;  %v4538_v38 = vor.u32 %v5202_v35, %v4537_v29  ;;  %v5192_v39 = vld [vmem:[#allocation2 + $0x58c] sm:$0xf]  ;;  %v5267_v35 = vld [vmem:[#allocation6 + $0xe4] sm:$0xf] }
 0x44c   :  { %2759 = vmatpush.bf16.msra.mxu3 %v4474_v36  ;;  %v5199_v36 = vld [vmem:[#allocation2 + $0x5c4] sm:$0xf] }
 0x44d   :  { %2338 = vmatpush.bf16.msrb.mxu1 %v2314_v47  ;;  %v4685_v47 = vld [vmem:[#allocation2 + $0x6e0] sm:$0xf]  ;;  %v4542_v11 = vor.u32 %v5199_v36, %v4539_v37 }
 0x44e   :  { %v4686_v52 = vor.u32 %v5238_v50, %v4685_v47  ;;  %v4511_v47 = vld [vmem:[#allocation2 + $0x5a4] sm:$0xf0]  ;;  %v4517_v50 = vld [vmem:[#allocation2 + $0x590] sm:$0xf] }
 0x44f   :  { %2771 = vmatpush.bf16.msra.mxu0 %v4534_v54  ;;  %2795 = vmatpush.bf16.msrb.mxu2 %v4654_v57  ;;  %v4514_v27 = vor.u32 %v5192_v39, %v4511_v47  ;;  %v4481_v54 = vld [vmem:[#allocation2 + $0x550] sm:$0xf]  ;;  %v4459_v57 = vld [vmem:[%s5967_s8 + $0x20] sm:$0xff] }
 0x450   :  { %2808 = vmatpush.bf16.msrb.mxu3 %v4686_v52  ;;  %v5196_v52 = vld [vmem:[#allocation2 + $0x5a8] sm:$0xf0]  ;;  %v4482_v62 = vor.u32 %v5188_v31, %v4481_v54  ;;  %v4932_v39 = vld [vmem:[#allocation6 + $0x1e0] sm:$0xf]  ;;  %v5301_v47 = vld [vmem:[#allocation6 + $0x1ec] sm:$0xf0] }
 0x451   :  { %2339 = vmatpush.bf16.msrb.mxu1 %v2308_v58  ;;  %v4657_v58 = vld [vmem:[#allocation2 + $0x6a8] sm:$0xf]  ;;  %v4518_v56 = vor.u32 %v5196_v52, %v4517_v50  ;;  %v4790_v54 = vld [vmem:[#allocation6 + $0xd0] sm:$0xf0] }
 0x452   :  { %v4658_v41 = vor.u32 %v5231_v43, %v4657_v58  ;;  %v4489_v43 = vld [vmem:[#allocation2 + $0x558] sm:$0xf] }
 0x453   :  { %2772 = vmatpush.bf16.msra.mxu0 %v4506_v42 }
 0x454   :  { %2809 = vmatpush.bf16.msrb.mxu3 %v4658_v41  ;;  %v5189_v41 = vld [vmem:[#allocation2 + $0x570] sm:$0xf0] }
 0x455   :  { %2340 = vmatpush.bf16.msrb.mxu1 %v2304_v2  ;;  %v5220_v2 = vld [vmem:[#allocation2 + $0x66c] sm:$0xf]  ;;  %v4490_v42 = vor.u32 %v5189_v41, %v4489_v43 }
 0x457   :  { %2773 = vmatpush.bf16.msra.mxu0 %v4478_v45 }
 0x458   :  { %4461 = vmatmul.msk.bf16.vlgmr.msrb.gmra.mxu1 %vm611_vm0, %v5861_v7 }
 0x459   :  { %2724 = vmatpush.bf16.msra.mxu1 %v4662_v1  ;;  %v5223_v1 = vld [vmem:[#allocation2 + $0x680] sm:$0xf0] }
 0x45a   :  { %v4622_v34 = vor.u32 %v5223_v1, %v4621_v46  ;;  %v1900_v1 = vperm.slane %v5848_v18, 6 }
 0x45d   :  { %2725 = vmatpush.bf16.msra.mxu1 %v4634_v4  ;;  %v4626_v4 = vor.u32 %v5220_v2, %v4623_v3  ;;  %v4460_v2 = vld [vmem:[%s5967_s8 + $0x28] sm:$0xff] }
 0x45f   :  { %2796 = vmatpush.bf16.msrb.mxu2 %v4626_v4 }
 0x461   :  { %2726 = vmatpush.bf16.msra.mxu1 %v4606_v44  ;;  %v4630_v44 = vor.u32 %v5224_v61, %v4629_v5  ;;  %v2290_v5 = vadd.f32 %v2289_v48, %v1900_v1 }
 0x463   :  { %2810 = vmatpush.bf16.msrb.mxu3 %v4630_v44 }
 0x465   :  { %2727 = vmatpush.bf16.msra.mxu1 %v4578_v9  ;;  %v4593_v9 = vld [vmem:[#allocation2 + $0x630] sm:$0xf] }
 0x466   :  { %v4594_v14 = vor.u32 %v5216_v15, %v4593_v9 }
 0x469   :  { %2728 = vmatpush.bf16.msra.mxu1 %v4550_v10  ;;  %v5213_v10 = vld [vmem:[#allocation2 + $0x634] sm:$0xf] }
 0x46d   :  { %2729 = vmatpush.bf16.msra.mxu1 %v4522_v16  ;;  %v4598_v16 = vor.u32 %v5213_v10, %v4595_v55 }
 0x46f   :  { %2797 = vmatpush.bf16.msrb.mxu2 %v4598_v16 }
 0x471   :  { %2730 = vmatpush.bf16.msra.mxu1 %v4494_v22  ;;  %v4602_v22 = vor.u32 %v5217_v21, %v4601_v19 }
 0x473   :  { %2811 = vmatpush.bf16.msrb.mxu3 %v4602_v22  ;;  %2798 = vmatpush.bf16.msrb.mxu2 %v4570_v28  ;;  %v5885_v22 = vld [vmem:[%s5966_s7 + $0x15] sm:$0xff] }
 0x474   :  { %v2427_v60 = vperm.slane %v5885_v22, 5  ;;  %v2426_v25 = vperm.slane %v5885_v22, 4  ;;  %v2424_v28 = vperm.slane %v5885_v22, 2  ;;  %v2425_v50 = vperm.slane %v5885_v22, 3 }
 0x475   :  { %2731 = vmatpush.bf16.msra.mxu1 %v4466_v13  ;;  %v4566_v13 = vor.u32 %v5209_v26, %v4565_v23 }
 0x477   :  { %2812 = vmatpush.bf16.msrb.mxu3 %v4574_v30  ;;  %2799 = vmatpush.bf16.msrb.mxu2 %v4542_v11  ;;  %v4934_v11 = vld [vmem:[#allocation6 + $0x1f0] sm:$0xf0] }
 0x479   :  { %2780 = vmatpush.bf16.msrb.mxu1 %v4678_v51  ;;  %v5195_v51 = vld [vmem:[#allocation2 + $0x5a0] sm:$0xf0] }
 0x47a   :  { %v4510_v53 = vor.u32 %v5195_v51, %v4509_v59 }
 0x47b   :  { %2813 = vmatpush.bf16.msrb.mxu3 %v4546_v6  ;;  %2800 = vmatpush.bf16.msrb.mxu2 %v4514_v27  ;;  %v4809_v6 = vor.u32 %v5267_v35, %v4806_v17  ;;  %v5263_v27 = vld [vmem:[#allocation6 + $0xc4] sm:$0xf] }
 0x47c   :  { %v4793_v31 = vor.u32 %v5263_v27, %v4790_v54  ;;  %v5247_v54 = vld [vmem:[#allocation6 + $0x44] sm:$0xf] }
 0x47d   :  { %2781 = vmatpush.bf16.msrb.mxu1 %v4650_v40  ;;  %v4483_v40 = vld [vmem:[#allocation2 + $0x56c] sm:$0xf0] }
 0x47e   :  { %v4486_v49 = vor.u32 %v5185_v32, %v4483_v40  ;;  %v5295_v32 = vld [vmem:[#allocation6 + $0x1c4] sm:$0xf]  ;;  %v4918_v40 = vld [vmem:[#allocation6 + $0x1d0] sm:$0xf0] }
 0x47f   :  { %2814 = vmatpush.bf16.msrb.mxu3 %v4518_v56 }
 0x480   :  { %2801 = vmatpush.bf16.msrb.mxu2 %v4486_v49  ;;  %v5297_v49 = vld [vmem:[#allocation6 + $0x1cc] sm:$0xf0] }
 0x481   :  { %2782 = vmatpush.bf16.msrb.mxu1 %v4622_v34  ;;  %v2291_v34 = vpop.f32.mrf.mxu0 }
 0x482   :  { %v2292_v44 = vadd.f32 %v2291_v34, %v1900_v1  ;;  %v4774_v1 = vld [vmem:[#allocation6 + $0xb0] sm:$0xf0] }
 0x483   :  { %2815 = vmatpush.bf16.msrb.mxu3 %v4490_v42  ;;  %v5259_v42 = vld [vmem:[#allocation6 + $0xa4] sm:$0xf] }
 0x485   :  { %2783 = vmatpush.bf16.msrb.mxu1 %v4594_v14 }
 0x489   :  { %2784 = vmatpush.bf16.msrb.mxu1 %v4566_v13 }
 0x48d   :  { %2785 = vmatpush.bf16.msrb.mxu1 %v4538_v38  ;;  %v5299_v38 = vld [vmem:[#allocation6 + $0x1e4] sm:$0xf] }
 0x48e   :  { %v4937_v51 = vor.u32 %v5299_v38, %v4934_v11  ;;  %v5251_v38 = vld [vmem:[#allocation6 + $0x64] sm:$0xf]  ;;  %v4742_v11 = vld [vmem:[#allocation6 + $0x70] sm:$0xf0] }
 0x491   :  { %2786 = vmatpush.bf16.msrb.mxu1 %v4510_v53  ;;  %v4933_v53 = vor.u32 %v5301_v47, %v4932_v39  ;;  %v4870_v47 = vld [vmem:[#allocation6 + $0x170] sm:$0xf0] }
 0x495   :  { %2787 = vmatpush.bf16.msrb.mxu1 %v4482_v62  ;;  %v4921_v62 = vor.u32 %v5295_v32, %v4918_v40  ;;  %v4854_v40 = vld [vmem:[#allocation6 + $0x150] sm:$0xf0] }
 0x4d5   :  { %v2342_v58 = vpop.f32.mrf.mxu1 }
 0x4d6   :  { %v2343_v46 = vadd.f32 %v4459_v57, %v2342_v58  ;;  %v4916_v57 = vld [vmem:[#allocation6 + $0x1c0] sm:$0xf] }
 0x4d8   :  { %v2347_v3 = vmul.f32 %v2343_v46, %v5589_v20  ;;  %v4917_v46 = vor.u32 %v5297_v49, %v4916_v57  ;;  %v4804_v49 = vld [vmem:[#allocation6 + $0xe0] sm:$0xf] }
 0x4da   :  { %v2349_v8 = vadd.f32 %v2347_v3, %v2290_v5 }
 0x4dc   :  { %v2351_v45 = vmax.f32 %v2349_v8, 0.0  ;;  %v5293_v8 = vld [vmem:[#allocation6 + $0x1ac] sm:$0xf0] }
 0x4dd   :  { %v2344_v4 = vpop.f32.mrf.mxu1 }
 0x4de   :  { %v2345_v61 = vadd.f32 %v4460_v2, %v2344_v4  ;;  %v5291_v2 = vld [vmem:[#allocation6 + $0x1a4] sm:$0xf] }
 0x4e0   :  { %v2348_v63 = vmul.f32 %v2345_v61, %v5599_v33  ;;  %v4902_v61 = vld [vmem:[#allocation6 + $0x1b0] sm:$0xf0] }
 0x4e2   :  { %v2350_v9 = vadd.f32 %v2348_v63, %v2292_v44  ;;  %v4900_v44 = vld [vmem:[#allocation6 + $0x1a0] sm:$0xf]  ;;  %v2422_v63 = vperm.slane %v5885_v22, 0 }
 0x4e4   :  { %v2352_v18 = vmax.f32 %v2350_v9, 0.0  ;;  %v4777_v9 = vor.u32 %v5259_v42, %v4774_v1 }
 0x4e6   :  { %v2353_v15 = vpack.c.bf16 %v2352_v18, %v2351_v45  ;;  %v4905_v45 = vor.u32 %v5291_v2, %v4902_v61  ;;  %v2423_v18 = vperm.slane %v5885_v22, 1  ;;  %v5261_v61 = vld [vmem:[#allocation6 + $0xac] sm:$0xf0] }
 0x4e8   :  { %2732 = vmatmul.bf16.vlgmr.msra.gmra.mxu1 %v2353_v15  ;;  %2746 = vmatmul.bf16.vlgmr.msra.gmra.mxu2 %v2353_v15 }
 0x4e9   :  { %2760 = vmatmul.bf16.vlgmr.msra.gmra.mxu3 %v2353_v15  ;;  %2774 = vmatmul.bf16.vlgmr.msra.gmra.mxu0 %v2353_v15 }
 0x4ea   :  { %3321 = vmatpush.bf16.msra.mxu2 %v4809_v6  ;;  %3335 = vmatpush.bf16.msra.mxu3 %v4937_v51 }
 0x4eb   :  { %3307 = vmatpush.bf16.msra.mxu1 %v4933_v53 }
 0x4ee   :  { %3322 = vmatpush.bf16.msra.mxu2 %v4793_v31  ;;  %3336 = vmatpush.bf16.msra.mxu3 %v4921_v62  ;;  %v5279_v31 = vld [vmem:[#allocation6 + $0x144] sm:$0xf] }
 0x4ef   :  { %3308 = vmatpush.bf16.msra.mxu1 %v4917_v46  ;;  %v5269_v46 = vld [vmem:[#allocation6 + $0xec] sm:$0xf0] }
 0x4f0   :  { %v4805_v1 = vor.u32 %v5269_v46, %v4804_v49  ;;  %v5264_v49 = vld [vmem:[#allocation6 + $0xcc] sm:$0xf]  ;;  %v4798_v46 = vld [vmem:[#allocation6 + $0xd8] sm:$0xf0] }
 0x4f2   :  { %3323 = vmatpush.bf16.msra.mxu2 %v4777_v9  ;;  %3337 = vmatpush.bf16.msra.mxu3 %v4905_v45  ;;  %v4740_v45 = vld [vmem:[#allocation6 + $0x60] sm:$0xf] }
 0x4f8   :  { %2788 = vmatmul.bf16.vlgmr.msrb.gmra.mxu1 %v2353_v15  ;;  %2802 = vmatmul.bf16.vlgmr.msrb.gmra.mxu2 %v2353_v15 }
 0x4f9   :  { %2816 = vmatmul.bf16.vlgmr.msrb.gmra.mxu3 %v2353_v15 }
 0x565   :  { %v5874_v10 = vpop.f32.mrf.mxu1 }
 0x566   :  { %v2775_v23 = vpop.f32.mrf.mxu0 }
 0x567   :  { %v2776_v3 = vadd.f32 %v2775_v23, %v2425_v50  ;;  %v5255_v23 = vld [vmem:[#allocation6 + $0x84] sm:$0xf] }
 0x56b   :  { %v5876_v55 = vpop.f32.mrf.mxu2 }
 0x56c   :  { %v2761_v21 = vpop.f32.mrf.mxu3 }
 0x56d   :  { %v5878_v14 = vpop.f32.mrf.mxu1  ;;  %v2762_v56 = vadd.f32 %v2761_v21, %v2424_v28  ;;  %v4901_v21 = vor.u32 %v5293_v8, %v4900_v44  ;;  %v4756_v8 = vld [vmem:[#allocation6 + $0x80] sm:$0xf] }
 0x56e   :  { %v2777_v59 = vpop.f32.mrf.mxu0 }
 0x56f   :  { %v2778_v58 = vadd.f32 %v2777_v59, %v2425_v50  ;;  %v2823_v15 = vpack.c.bf16 %v2776_v3, %v2762_v56  ;;  %3309 = vmatpush.bf16.msra.mxu1 %v4901_v21  ;;  %v2734_v59 = vadd.f32 %v5874_v10, %v2422_v63  ;;  %v4868_v50 = vld [vmem:[#allocation6 + $0x160] sm:$0xf]  ;;  %v4726_v56 = vld [vmem:[#allocation6 + $0x50] sm:$0xf0]  ;;  %v5249_v21 = vld [vmem:[#allocation6 + $0x4c] sm:$0xf0] }
 0x570   :  { %v4729_v57 = vor.u32 %v5247_v54, %v4726_v56  ;;  %v4788_v3 = vld [vmem:[#allocation6 + $0xc0] sm:$0xf]  ;;  %v4942_v56 = vld [vmem:[#allocation6 + $0x1f8] sm:$0xf0] }
 0x573   :  { %v5880_v16 = vpop.f32.mrf.mxu2 }
 0x574   :  { %v2763_v29 = vpop.f32.mrf.mxu3 }
 0x575   :  { %v2789_v19 = vpop.f32.mrf.mxu1  ;;  %v2764_v52 = vadd.f32 %v2763_v29, %v2424_v28  ;;  %v4884_v28 = vld [vmem:[#allocation6 + $0x180] sm:$0xf]  ;;  %v5289_v29 = vld [vmem:[#allocation6 + $0x18c] sm:$0xf0] }
 0x576   :  { %v2790_v13 = vadd.f32 %v2789_v19, %v2426_v25  ;;  %v4885_v17 = vor.u32 %v5289_v29, %v4884_v28  ;;  %v4710_v28 = vld [vmem:[#allocation6 + $0x30] sm:$0xf0]  ;;  %v5275_v29 = vld [vmem:[#allocation6 + $0x124] sm:$0xf] }
 0x577   :  { %v2826_v34 = vpack.c.bf16 %v2778_v58, %v2764_v52  ;;  %v5285_v52 = vld [vmem:[#allocation6 + $0x16c] sm:$0xf0]  ;;  %v4857_v58 = vor.u32 %v5279_v31, %v4854_v40  ;;  %v4820_v31 = vld [vmem:[#allocation6 + $0x100] sm:$0xf] }
 0x578   :  { %3310 = vmatpush.bf16.msra.mxu1 %v4885_v17  ;;  %v4869_v27 = vor.u32 %v5285_v52, %v4868_v50  ;;  %v4812_v52 = vld [vmem:[#allocation6 + $0xe8] sm:$0xf] }
 0x579   :  { %v2841_v51 = vunpack.c.l.b16 %v2826_v34 }
 0x57b   :  { %v2803_v26 = vpop.f32.mrf.mxu2 }
 0x57c   :  { %v2804_v24 = vadd.f32 %v2803_v26, %v2427_v60  ;;  %v4758_v26 = vld [vmem:[#allocation6 + $0x90] sm:$0xf0]  ;;  %3311 = vmatpush.bf16.msra.mxu1 %v4869_v27  ;;  %v5300_v27 = vld [vmem:[#allocation6 + $0x1ec] sm:$0xf] }
 0x57d   :  { %v2791_v12 = vpop.f32.mrf.mxu1 }
 0x57e   :  { %v2824_v36 = vpack.c.bf16 %v2804_v24, %v2790_v13  ;;  %v2792_v37 = vadd.f32 %v2791_v12, %v2426_v25  ;;  %v2750_v25 = vadd.f32 %v5880_v16, %v2423_v18  ;;  %v2845_v24 = vunpack.c.h.b16 %v2826_v34  ;;  %v4886_v13 = vld [vmem:[#allocation6 + $0x190] sm:$0xf0]  ;;  %v5283_v16 = vld [vmem:[#allocation6 + $0x164] sm:$0xf]  ;;  %v5265_v34 = vld [vmem:[#allocation6 + $0xcc] sm:$0xf0] }
 0x580   :  { %v2854_v43 = vunpack.c.h.b16 %v2824_v36  ;;  %v2850_v19 = vunpack.c.l.b16 %v2824_v36  ;;  %v2844_v36 = vunpack.c.h.b16 %v2823_v15 }
 0x582   :  { %v2846_v39 = vpack.c.b16 %v2845_v24, %v2844_v36  ;;  %v4708_v24 = vld [vmem:[#allocation6 + $0x20] sm:$0xf] }
 0x583   :  { %v2805_v30 = vpop.f32.mrf.mxu2  ;;  %v4836_v36 = vld [vmem:[#allocation6 + $0x120] sm:$0xf] }
 0x584   :  { %v2806_v0 = vadd.f32 %v2805_v30, %v2427_v60  ;;  %v5287_v60 = vld [vmem:[#allocation6 + $0x184] sm:$0xf]  ;;  %v4761_v30 = vor.u32 %v5255_v23, %v4758_v26  ;;  %v4852_v26 = vld [vmem:[#allocation6 + $0x140] sm:$0xf] }
 0x585   :  { %v4889_v35 = vor.u32 %v5287_v60, %v4886_v13  ;;  %v5281_v60 = vld [vmem:[#allocation6 + $0x14c] sm:$0xf0] }
 0x586   :  { %v2827_v48 = vpack.c.bf16 %v2806_v0, %v2792_v37  ;;  %v2748_v37 = vadd.f32 %v5876_v55, %v2423_v18  ;;  %v2736_v0 = vadd.f32 %v5878_v14, %v2422_v63  ;;  %3324 = vmatpush.bf16.msra.mxu2 %v4761_v30  ;;  %v4745_v55 = vor.u32 %v5251_v38, %v4742_v11  ;;  %v5257_v63 = vld [vmem:[#allocation6 + $0x8c] sm:$0xf0]  ;;  %v4838_v30 = vld [vmem:[#allocation6 + $0x130] sm:$0xf0]  ;;  %v4692_v38 = vld [vmem:[#allocation6] sm:$0xf] }
 0x587   :  { %3338 = vmatpush.bf16.msra.mxu3 %v4889_v35  ;;  %v2840_v14 = vunpack.c.l.b16 %v2823_v15  ;;  %v4757_v9 = vor.u32 %v5257_v63, %v4756_v8  ;;  %v5253_v18 = vld [vmem:[#allocation6 + $0x6c] sm:$0xf0]  ;;  %v4780_v63 = vld [vmem:[#allocation6 + $0xa8] sm:$0xf] }
 0x588   :  { %v2855_v41 = vunpack.c.h.b16 %v2827_v48  ;;  %v2851_v4 = vunpack.c.l.b16 %v2827_v48  ;;  %v2825_v6 = vpack.c.bf16 %v2750_v25, %v2736_v0  ;;  %v4873_v48 = vor.u32 %v5283_v16, %v4870_v47  ;;  %v5277_v0 = vld [vmem:[#allocation6 + $0x12c] sm:$0xf0]  ;;  %v5239_v16 = vld [vmem:[#allocation6 + $0x4] sm:$0xf] }
 0x589   :  { %v2822_v53 = vpack.c.bf16 %v2748_v37, %v2734_v59  ;;  %v2842_v10 = vpack.c.b16 %v2841_v51, %v2840_v14  ;;  %v4741_v15 = vor.u32 %v5253_v18, %v4740_v45  ;;  %v4853_v25 = vor.u32 %v5281_v60, %v4852_v26  ;;  %v5241_v11 = vld [vmem:[#allocation6 + $0xc] sm:$0xf0]  ;;  %v5271_v51 = vld [vmem:[#allocation6 + $0x104] sm:$0xf]  ;;  %v4814_v14 = vld [vmem:[#allocation6 + $0xf8] sm:$0xf0] }
 0x58a   :  { %v2856_v5 = vpack.c.b16 %v2855_v41, %v2854_v43  ;;  %v2852_v12 = vpack.c.b16 %v2851_v4, %v2850_v19  ;;  %v2835_v32 = vunpack.c.h.b16 %v2825_v6  ;;  %3325 = vmatpush.bf16.msra.mxu2 %v4745_v55  ;;  %v2831_v41 = vunpack.c.l.b16 %v2825_v6  ;;  %v4724_v19 = vld [vmem:[#allocation6 + $0x40] sm:$0xf]  ;;  %v4694_v6 = vld [vmem:[#allocation6 + $0x10] sm:$0xf0]  ;;  %v5270_v55 = vld [vmem:[#allocation6 + $0xf4] sm:$0xf0] }
 0x58b   :  { %3339 = vmatpush.bf16.msra.mxu3 %v4873_v48  ;;  %v2834_v43 = vunpack.c.h.b16 %v2822_v53  ;;  %v2830_v42 = vunpack.c.l.b16 %v2822_v53  ;;  %v4789_v4 = vor.u32 %v5265_v34, %v4788_v3  ;;  %v4725_v23 = vor.u32 %v5249_v21, %v4724_v19  ;;  %3312 = vmatpush.bf16.msra.mxu1 %v4853_v25  ;;  %v5268_v48 = vld [vmem:[#allocation6 + $0xec] sm:$0xf]  ;;  %v4926_v3 = vld [vmem:[#allocation6 + $0x1d8] sm:$0xf0]  ;;  %v4924_v34 = vld [vmem:[#allocation6 + $0x1c8] sm:$0xf] }
 0x58c   :  { %2863 = vmatpush.bf16.msrb.mxu0 %v2856_v5  ;;  %v4772_v5 = vld [vmem:[#allocation6 + $0xa0] sm:$0xf]  ;;  %v4841_v37 = vor.u32 %v5275_v29, %v4838_v30  ;;  %v4837_v17 = vor.u32 %v5277_v0, %v4836_v36  ;;  %v4693_v59 = vor.u32 %v5241_v11, %v4692_v38  ;;  %v4697_v47 = vor.u32 %v5239_v16, %v4694_v6  ;;  %v5260_v45 = vld [vmem:[#allocation6 + $0xac] sm:$0xf]  ;;  %v4782_v21 = vld [vmem:[#allocation6 + $0xb8] sm:$0xf0] }
 0x58d   :  { %v2836_v62 = vpack.c.b16 %v2835_v32, %v2834_v43  ;;  %v2832_v2 = vpack.c.b16 %v2831_v41, %v2830_v42  ;;  %v4773_v44 = vor.u32 %v5261_v61, %v4772_v5  ;;  %v4813_v53 = vor.u32 %v5270_v55, %v4812_v52  ;;  %v5273_v32 = vld [vmem:[#allocation6 + $0x10c] sm:$0xf0]  ;;  %v4796_v43 = vld [vmem:[#allocation6 + $0xc8] sm:$0xf]  ;;  %v5298_v5 = vld [vmem:[#allocation6 + $0x1d4] sm:$0xf0] }
 0x58e   :  { %3326 = vmatpush.bf16.msra.mxu2 %v4729_v57  ;;  %v4817_v54 = vor.u32 %v5268_v48, %v4814_v14  ;;  %v4821_v40 = vor.u32 %v5273_v32, %v4820_v31  ;;  %v4940_v57 = vld [vmem:[#allocation6 + $0x1e8] sm:$0xf]  ;;  %v5902_v61 = vld [vmem:[%s5960_s1] sm:$0xff]  ;;  %v4925_v8 = vor.u32 %v5298_v5, %v4924_v34  ;;  %v4910_v26 = vld [vmem:[#allocation6 + $0x1b8] sm:$0xf0]  ;;  %v4785_v60 = vor.u32 %v5260_v45, %v4782_v21 }
 0x58f   :  { %3340 = vmatpush.bf16.msra.mxu3 %v4857_v58  ;;  %3313 = vmatpush.bf16.msra.mxu1 %v4837_v17  ;;  %v5302_v58 = vld [vmem:[#allocation6 + $0x1f4] sm:$0xf0]  ;;  %v2885_v18 = vpack.c.bf16 %v5902_v61, %v5902_v61  ;;  %v5288_v17 = vld [vmem:[#allocation6 + $0x18c] sm:$0xf]  ;;  %v4894_v38 = vld [vmem:[#allocation6 + $0x198] sm:$0xf0] }
 0x590   :  { %2864 = vmatpush.bf16.msrb.mxu0 %v2852_v12  ;;  %v5243_v12 = vld [vmem:[#allocation6 + $0x24] sm:$0xf]  ;;  %v4941_v41 = vor.u32 %v5302_v58, %v4940_v57  ;;  %v5258_v30 = vld [vmem:[#allocation6 + $0x94] sm:$0xf0]  ;;  %v4892_v11 = vld [vmem:[#allocation6 + $0x188] sm:$0xf]  ;;  %v4897_v6 = vor.u32 %v5288_v17, %v4894_v38 }
 0x591   :  { %v4713_v35 = vor.u32 %v5243_v12, %v4710_v28  ;;  %v4908_v12 = vld [vmem:[#allocation6 + $0x1a8] sm:$0xf]  ;;  %v4750_v52 = vld [vmem:[#allocation6 + $0x78] sm:$0xf0]  ;;  %v5284_v55 = vld [vmem:[#allocation6 + $0x16c] sm:$0xf] }
 0x592   :  { %v4764_v28 = vld [vmem:[#allocation6 + $0x88] sm:$0xf]  ;;  %v4878_v48 = vld [vmem:[#allocation6 + $0x178] sm:$0xf0]  ;;  %v5250_v31 = vld [vmem:[#allocation6 + $0x54] sm:$0xf0] }
 0x593   :  { %3327 = vmatpush.bf16.msra.mxu2 %v4713_v35  ;;  %3341 = vmatpush.bf16.msra.mxu3 %v4841_v37  ;;  %v5256_v35 = vld [vmem:[#allocation6 + $0x8c] sm:$0xf]  ;;  %v4766_v37 = vld [vmem:[#allocation6 + $0x98] sm:$0xf0]  ;;  %v4765_v0 = vor.u32 %v5258_v30, %v4764_v28  ;;  %v4876_v14 = vld [vmem:[#allocation6 + $0x168] sm:$0xf]  ;;  %v4881_v32 = vor.u32 %v5284_v55, %v4878_v48 }
 0x594   :  { %2865 = vmatpush.bf16.msrb.mxu0 %v2846_v39  ;;  %v4822_v39 = vld [vmem:[#allocation6 + $0x110] sm:$0xf0]  ;;  %3314 = vmatpush.bf16.msra.mxu1 %v4821_v40  ;;  %v4769_v16 = vor.u32 %v5256_v35, %v4766_v37  ;;  %v4734_v40 = vld [vmem:[#allocation6 + $0x58] sm:$0xf0]  ;;  %v5280_v58 = vld [vmem:[#allocation6 + $0x14c] sm:$0xf] }
 0x595   :  { %v4825_v50 = vor.u32 %v5271_v51, %v4822_v39  ;;  %v4748_v51 = vld [vmem:[#allocation6 + $0x68] sm:$0xf]  ;;  %v5254_v39 = vld [vmem:[#allocation6 + $0x74] sm:$0xf0]  ;;  %v4718_v5 = vld [vmem:[#allocation6 + $0x38] sm:$0xf0] }
 0x596   :  { %v4846_v45 = vld [vmem:[#allocation6 + $0x138] sm:$0xf0]  ;;  %v4844_v21 = vld [vmem:[#allocation6 + $0x128] sm:$0xf] }
 0x597   :  { %3328 = vmatpush.bf16.msra.mxu2 %v4697_v47  ;;  %3342 = vmatpush.bf16.msra.mxu3 %v4825_v50  ;;  %v5252_v47 = vld [vmem:[#allocation6 + $0x6c] sm:$0xf]  ;;  %v4830_v30 = vld [vmem:[#allocation6 + $0x118] sm:$0xf0]  ;;  %v4828_v37 = vld [vmem:[#allocation6 + $0x108] sm:$0xf] }
 0x598   :  { %2866 = vmatpush.bf16.msrb.mxu0 %v2842_v10  ;;  %v4945_v10 = vor.u32 %v5300_v27, %v4942_v56  ;;  %3363 = vmatpush.bf16.msrb.mxu1 %v4941_v41  ;;  %v5286_v27 = vld [vmem:[#allocation6 + $0x174] sm:$0xf0]  ;;  %v4732_v56 = vld [vmem:[#allocation6 + $0x48] sm:$0xf] }
 0x599   :  { %v4877_v57 = vor.u32 %v5286_v27, %v4876_v14  ;;  %v4733_v41 = vor.u32 %v5250_v31, %v4732_v56  ;;  %v4688_v17 = vld [vmem:[%s5967_s8 + $0x38] sm:$0xff] }
 0x59b   :  { %3377 = vmatpush.bf16.msrb.mxu2 %v4817_v54  ;;  %3391 = vmatpush.bf16.msrb.mxu3 %v4945_v10  ;;  %v4753_v54 = vor.u32 %v5252_v47, %v4750_v52  ;;  %v5248_v10 = vld [vmem:[#allocation6 + $0x4c] sm:$0xf] }
 0x59c   :  { %2867 = vmatpush.bf16.msrb.mxu0 %v2836_v62  ;;  %v5266_v62 = vld [vmem:[#allocation6 + $0xd4] sm:$0xf0]  ;;  %3364 = vmatpush.bf16.msrb.mxu1 %v4925_v8 }
 0x59d   :  { %v4797_v42 = vor.u32 %v5266_v62, %v4796_v43  ;;  %v4862_v43 = vld [vmem:[#allocation6 + $0x158] sm:$0xf0]  ;;  %v4860_v62 = vld [vmem:[#allocation6 + $0x148] sm:$0xf] }
 0x59e   :  { %v4865_v34 = vor.u32 %v5280_v58, %v4862_v43 }
 0x5a0   :  { %2868 = vmatpush.bf16.msrb.mxu0 %v2832_v2  ;;  %v5296_v2 = vld [vmem:[#allocation6 + $0x1cc] sm:$0xf] }
 0x5a3   :  { %4689 = vmatmul.msk.bf16.vlgmr.msrb.gmra.mxu0 %vm611_vm0, %v5861_v7  ;;  %v5245_v7 = vld [vmem:[#allocation6 + $0x2c] sm:$0xf0] }
 0x5a4   :  { %3293 = vmatpush.bf16.msra.mxu0 %v4805_v1  ;;  %v4709_v13 = vor.u32 %v5245_v7, %v4708_v24  ;;  %v4801_v1 = vor.u32 %v5264_v49, %v4798_v46  ;;  %v2895_v24 = vunpack.c.l.b16 %v2885_v18  ;;  %v5282_v49 = vld [vmem:[#allocation6 + $0x154] sm:$0xf0]  ;;  %v2817_v46 = vpop.f32.mrf.mxu3  ;;  %v2428_v18 = vperm.slane %v5885_v22, 6 }
 0x5a6   :  { %3378 = vmatpush.bf16.msrb.mxu2 %v4801_v1  ;;  %v4737_v1 = vor.u32 %v5248_v10, %v4734_v40  ;;  %v2818_v22 = vadd.f32 %v2817_v46, %v2428_v18 }
 0x5a8   :  { %3294 = vmatpush.bf16.msra.mxu0 %v4789_v4  ;;  %v4929_v4 = vor.u32 %v5296_v2, %v4926_v3  ;;  %v4716_v2 = vld [vmem:[#allocation6 + $0x28] sm:$0xf]  ;;  %v5246_v3 = vld [vmem:[#allocation6 + $0x34] sm:$0xf0] }
 0x5aa   :  { %3392 = vmatpush.bf16.msrb.mxu3 %v4929_v4  ;;  %3379 = vmatpush.bf16.msrb.mxu2 %v4785_v60  ;;  %v5244_v4 = vld [vmem:[#allocation6 + $0x2c] sm:$0xf]  ;;  %v4700_v60 = vld [vmem:[#allocation6 + $0x8] sm:$0xf] }
 0x5ac   :  { %3295 = vmatpush.bf16.msra.mxu0 %v4773_v44  ;;  %v5907_v44 = vld [vmem:[%s5960_s1 + $0x8] sm:$0xff] }
 0x5ae   :  { %3380 = vmatpush.bf16.msrb.mxu2 %v4769_v16  ;;  %v2819_v16 = vpop.f32.mrf.mxu3 }
 0x5b0   :  { %3296 = vmatpush.bf16.msra.mxu0 %v4757_v9  ;;  %v5262_v9 = vld [vmem:[#allocation6 + $0xb4] sm:$0xf0] }
 0x5b1   :  { %v4781_v19 = vor.u32 %v5262_v9, %v4780_v63  ;;  %v4861_v63 = vor.u32 %v5282_v49, %v4860_v62  ;;  %v5276_v9 = vld [vmem:[#allocation6 + $0x12c] sm:$0xf] }
 0x5b2   :  { %3381 = vmatpush.bf16.msrb.mxu2 %v4753_v54 }
 0x5b4   :  { %3297 = vmatpush.bf16.msra.mxu0 %v4741_v15  ;;  %v2886_v15 = vpack.c.bf16 %v5907_v44, %v5907_v44 }
 0x5b6   :  { %v2896_v7 = vunpack.c.l.b16 %v2886_v15  ;;  %3382 = vmatpush.bf16.msrb.mxu2 %v4737_v1 }
 0x5b8   :  { %3298 = vmatpush.bf16.msra.mxu0 %v4725_v23  ;;  %v5292_v23 = vld [vmem:[#allocation6 + $0x1ac] sm:$0xf]  ;;  %v5913_v36 = vpack.c.b16 %v2896_v7, %v2895_v24  ;;  %v4849_v7 = vor.u32 %v5276_v9, %v4846_v45 }
 0x5b9   :  { %v4913_v25 = vor.u32 %v5292_v23, %v4910_v26  ;;  %v5278_v23 = vld [vmem:[#allocation6 + $0x134] sm:$0xf0]  ;;  %v4721_v26 = vor.u32 %v5244_v4, %v4718_v5 }
 0x5ba   :  { %3315 = vmatmul.bf16.vlgmr.msra.gmra.mxu1 %v5913_v36  ;;  %3343 = vmatmul.bf16.vlgmr.msra.gmra.mxu3 %v5913_v36  ;;  %v4845_v28 = vor.u32 %v5278_v23, %v4844_v21 }
 0x5bb   :  { %3393 = vmatpush.bf16.msrb.mxu3 %v4913_v25  ;;  %v5242_v25 = vld [vmem:[#allocation6 + $0x14] sm:$0xf0]  ;;  %3383 = vmatpush.bf16.msrb.mxu2 %v4721_v26 }
 0x5bc   :  { %3299 = vmatpush.bf16.msra.mxu0 %v4709_v13  ;;  %v5294_v13 = vld [vmem:[#allocation6 + $0x1b4] sm:$0xf0]  ;;  %v4701_v35 = vor.u32 %v5242_v25, %v4700_v60 }
 0x5bd   :  { %v4909_v29 = vor.u32 %v5294_v13, %v4908_v12  ;;  %v5240_v12 = vld [vmem:[#allocation6 + $0xc] sm:$0xf]  ;;  %v4702_v13 = vld [vmem:[#allocation6 + $0x18] sm:$0xf0] }
 0x5be   :  { %v4705_v38 = vor.u32 %v5240_v12, %v4702_v13 }
 0x5bf   :  { %3365 = vmatpush.bf16.msrb.mxu1 %v4909_v29  ;;  %3394 = vmatpush.bf16.msrb.mxu3 %v4897_v6  ;;  %v5272_v29 = vld [vmem:[#allocation6 + $0x10c] sm:$0xf] }
 0x5c0   :  { %3300 = vmatpush.bf16.msra.mxu0 %v4693_v59  ;;  %v5290_v59 = vld [vmem:[#allocation6 + $0x194] sm:$0xf0]  ;;  %3384 = vmatpush.bf16.msrb.mxu2 %v4705_v38 }
 0x5c1   :  { %v4893_v50 = vor.u32 %v5290_v59, %v4892_v11  ;;  %v4833_v11 = vor.u32 %v5272_v29, %v4830_v30 }
 0x5c3   :  { %3366 = vmatpush.bf16.msrb.mxu1 %v4893_v50  ;;  %3395 = vmatpush.bf16.msrb.mxu3 %v4881_v32 }
 0x5c4   :  { %3349 = vmatpush.bf16.msrb.mxu0 %v4813_v53  ;;  %v4749_v53 = vor.u32 %v5254_v39, %v4748_v51  ;;  %v2820_v39 = vadd.f32 %v2819_v16, %v2428_v18 }
 0x5c7   :  { %3367 = vmatpush.bf16.msrb.mxu1 %v4877_v57  ;;  %3396 = vmatpush.bf16.msrb.mxu3 %v4865_v34 }
 0x5c8   :  { %3350 = vmatpush.bf16.msrb.mxu0 %v4797_v42  ;;  %v4687_v42 = vld [vmem:[%s5967_s8 + $0x30] sm:$0xff] }
 0x5cb   :  { %3368 = vmatpush.bf16.msrb.mxu1 %v4861_v63  ;;  %3397 = vmatpush.bf16.msrb.mxu3 %v4849_v7 }
 0x5cc   :  { %3351 = vmatpush.bf16.msrb.mxu0 %v4781_v19  ;;  %v4717_v19 = vor.u32 %v5246_v3, %v4716_v2 }
 0x5cf   :  { %3369 = vmatpush.bf16.msrb.mxu1 %v4845_v28  ;;  %3398 = vmatpush.bf16.msrb.mxu3 %v4833_v11 }
 0x5d0   :  { %3352 = vmatpush.bf16.msrb.mxu0 %v4765_v0  ;;  %v5274_v0 = vld [vmem:[#allocation6 + $0x114] sm:$0xf0] }
 0x5d1   :  { %v4829_v6 = vor.u32 %v5274_v0, %v4828_v37 }
 0x5d2   :  { %3399 = vmatmul.bf16.vlgmr.msrb.gmra.mxu3 %v5913_v36 }
 0x5d3   :  { %3370 = vmatpush.bf16.msrb.mxu1 %v4829_v6 }
 0x5d4   :  { %3353 = vmatpush.bf16.msrb.mxu0 %v4749_v53 }
 0x5d6   :  { %3371 = vmatmul.bf16.vlgmr.msrb.gmra.mxu1 %v5913_v36 }
 0x5d8   :  { %3354 = vmatpush.bf16.msrb.mxu0 %v4733_v41 }
 0x5dc   :  { %3355 = vmatpush.bf16.msrb.mxu0 %v4717_v19 }
 0x5e0   :  { %3356 = vmatpush.bf16.msrb.mxu0 %v4701_v35 }
 0x620   :  { %v2870_v8 = vpop.f32.mrf.mxu0 }
 0x621   :  { %v2871_v15 = vadd.f32 %v4687_v42, %v2870_v8 }
 0x623   :  { %v2875_v24 = vmul.f32 %v2871_v15, %v5589_v20 }
 0x625   :  { %v2877_v20 = vadd.f32 %v2875_v24, %v2818_v22 }
 0x627   :  { %v2879_v47 = vmax.f32 %v2877_v20, 0.0 }
 0x628   :  { %v2872_v59 = vpop.f32.mrf.mxu0 }
 0x629   :  { %v2873_v51 = vadd.f32 %v4688_v17, %v2872_v59  ;;  %v2883_v55 = vpack.c.bf16 %v2879_v47, %v2879_v47 }
 0x62b   :  { %v2876_v50 = vmul.f32 %v2873_v51, %v5599_v33  ;;  %v2889_v14 = vunpack.c.l.b16 %v2883_v55  ;;  %v5931_v33 = vld [vmem:[%s5971_s12] sm:$0xf] }
 0x62c   :  { %v2965_v56 = vperm.slane %v5931_v33, 0  ;;  %v2966_v36 = vperm.slane %v5931_v33, 1  ;;  %v2968_v26 = vperm.slane %v5931_v33, 3  ;;  %v2967_v24 = vperm.slane %v5931_v33, 2 }
 0x62d   :  { %v2878_v52 = vadd.f32 %v2876_v50, %v2820_v39 }
 0x62f   :  { %v2880_v48 = vmax.f32 %v2878_v52, 0.0 }
 0x631   :  { %v2884_v53 = vpack.c.bf16 %v2880_v48, %v2880_v48 }
 0x633   :  { %v2890_v27 = vunpack.c.l.b16 %v2884_v53 }
 0x635   :  { %v2891_v54 = vpack.c.b16 %v2890_v27, %v2889_v14 }
 0x637   :  { %3301 = vmatmul.bf16.vlgmr.msra.gmra.mxu0 %v2891_v54  ;;  %3329 = vmatmul.bf16.vlgmr.msra.gmra.mxu2 %v2891_v54  ;;  %v3316_v31 = vpop.f32.mrf.mxu1 }
 0x63d   :  { %v3344_v58 = vpop.f32.mrf.mxu3 }
 0x63f   :  { %v3318_v42 = vpop.f32.mrf.mxu1 }
 0x645   :  { %v3346_v63 = vpop.f32.mrf.mxu3 }
 0x647   :  { %3357 = vmatmul.bf16.vlgmr.msrb.gmra.mxu0 %v2891_v54  ;;  %3385 = vmatmul.bf16.vlgmr.msrb.gmra.mxu2 %v2891_v54 }
 0x653   :  { %v3372_v38 = vpop.f32.mrf.mxu1 }
 0x655   :  { %v3400_v20 = vpop.f32.mrf.mxu3 }
 0x6b4   :  { %v3302_v32 = vpop.f32.mrf.mxu0 }
 0x6b5   :  { %v3303_v10 = vadd.f32 %v3302_v32, %v2965_v56 }
 0x6b7   :  { %v3317_v40 = vadd.f32 %v3316_v31, %v3303_v10 }
 0x6b9   :  { %v4946_v57 = vmul.f32 -1.442695, %v3317_v40 }
 0x6ba   :  { %v3330_v43 = vpop.f32.mrf.mxu2 }
 0x6bb   :  { %5344 = vpow2.f32 %v4946_v57  ;;  %v3331_v41 = vadd.f32 %v3330_v43, %v2966_v36 }
 0x6bc   :  { %v3304_v62 = vpop.f32.mrf.mxu0 }
 0x6bd   :  { %v3345_v49 = vadd.f32 %v3344_v58, %v3331_v41  ;;  %v3305_v46 = vadd.f32 %v3304_v62, %v2965_v56 }
 0x6bf   :  { %v4948_v1 = vmul.f32 -1.442695, %v3345_v49  ;;  %v3319_v2 = vadd.f32 %v3318_v42, %v3305_v46 }
 0x6c1   :  { %v5345_v3 = vpop.eup %5344  ;;  %5346 = vpow2.f32 %v4948_v1  ;;  %v4947_v34 = vmul.f32 -1.442695, %v3319_v2  ;;  %v3374_v1 = vpop.f32.mrf.mxu1 }
 0x6c2   :  { %v3411_v4 = vadd.f32 1.0, %v5345_v3  ;;  %v3332_v5 = vpop.f32.mrf.mxu2  ;;  %v3402_v2 = vpop.f32.mrf.mxu3 }
 0x6c3   :  { %5348 = vpow2.f32 %v4947_v34  ;;  %v3333_v8 = vadd.f32 %v3332_v5, %v2966_v36 }
 0x6c4   :  { %5350 = vrcp.f32 %v3411_v4  ;;  %v3358_v7 = vpop.f32.mrf.mxu0  ;;  %v3422_v13 = vand.u32 2147483647, %v3411_v4  ;;  %v3424_v28 = vand.u32 2147483648, %v3411_v4  ;;  %vm3418_vm10 = vweird.f32 %v3411_v4 }
 0x6c5   :  { %v3347_v9 = vadd.f32 %v3346_v63, %v3333_v8  ;;  %v3359_v0 = vadd.f32 %v3358_v7, %v2967_v24 }
 0x6c6   :  { %vm3423_vm12 = vcmp.eq.f32.partialorder %v3422_v13, 8.507059e+37  ;;  %v3425_v59 = vor.u32 1.1754944e-38, %v3424_v28 }
 0x6c7   :  { %v5347_v45 = vpop.eup %5346  ;;  %v4949_v18 = vmul.f32 -1.442695, %v3347_v9  ;;  %v3373_v52 = vadd.f32 %v3372_v38, %v3359_v0 }
 0x6c8   :  { %v3449_v15 = vadd.f32 1.0, %v5347_v45 }
 0x6c9   :  { %v5349_v19 = vpop.eup %5348  ;;  %5352 = vpow2.f32 %v4949_v18 }
 0x6ca   :  { %v5351_v21 = vpop.eup %5350  ;;  %5354 = vrcp.f32 %v3449_v15  ;;  %v5935_v23 = vadd.f32 1.0, %v5349_v19  ;;  %v3386_v60 = vpop.f32.mrf.mxu2  ;;  %v3462_v50 = vand.u32 2147483648, %v3449_v15  ;;  %vm3456_vm14 = vweird.f32 %v3449_v15 }
 0x6cb   :  { %v3414_v25 = vmul.f32 %v5351_v21, %v3411_v4  ;;  %v3387_v30 = vadd.f32 %v3386_v60, %v2968_v26  ;;  %vm3419_vm0 = vweird.f32 %v5351_v21  ;;  %v3460_v54 = vand.u32 2147483647, %v3449_v15 }
 0x6cc   :  { %5356 = vrcp.f32 %v5935_v23  ;;  %vm3420_vm11 = vmor %vm3418_vm10, %vm3419_vm0  ;;  %v3360_v31 = vpop.f32.mrf.mxu0  ;;  %v3439_v10 = vand.u32 2147483648, %v5935_v23  ;;  %v3437_v57 = vand.u32 2147483647, %v5935_v23  ;;  %v3463_v58 = vor.u32 1.1754944e-38, %v3462_v50 }
 0x6cd   :  { %v3415_v12 = vsub.f32 1.0, %v3414_v25  ;;  %v3401_v51 = vadd.f32 %v3400_v20, %v3387_v30  ;;  %vm3461_vm2 = vcmp.eq.f32.partialorder %v3460_v54, 8.507059e+37  ;;  %v3361_v62 = vadd.f32 %v3360_v31, %v2967_v24 }
 0x6ce   :  { %vm3433_vm3 = vweird.f32 %v5935_v23  ;;  %v3440_v3 = vor.u32 1.1754944e-38, %v3439_v10  ;;  %vm3438_vm5 = vcmp.eq.f32.partialorder %v3437_v57, 8.507059e+37 }
 0x6cf   :  { %v5353_v29 = vpop.eup %5352  ;;  %v3416_v22 = vmul.f32 %v5351_v21, %v3415_v12  ;;  %v3375_v45 = vadd.f32 %v3374_v1, %v3361_v62 }
 0x6d0   :  { %v5355_v35 = vpop.eup %5354  ;;  %v5940_v37 = vadd.f32 1.0, %v5353_v29 }
 0x6d1   :  { %v3452_v17 = vmul.f32 %v5355_v35, %v3449_v15  ;;  %v3417_v11 = vadd.f32 %v5351_v21, %v3416_v22  ;;  %vm3457_vm13 = vweird.f32 %v5355_v35 }
 0x6d2   :  { %v5357_v16 = vpop.eup %5356  ;;  %5358 = vrcp.f32 %v5940_v37  ;;  %v3388_v14 = vpop.f32.mrf.mxu2  ;;  %vm3458_vm15 = vmor %vm3456_vm14, %vm3457_vm13  ;;  %v3477_v63 = vand.u32 2147483648, %v5940_v37  ;;  %vm3471_vm7 = vweird.f32 %v5940_v37 }
 0x6d3   :  { %v3453_v6 = vsub.f32 1.0, %v3452_v17  ;;  %v3421_v39 = vsel %vm3420_vm11, %v5351_v21, %v3417_v11  ;;  %v3429_v47 = vmul.f32 %v5357_v16, %v5935_v23  ;;  %v3389_v36 = vadd.f32 %v3388_v14, %v2968_v26 }
 0x6d4   :  { %v3426_v55 = vsel %vm3423_vm12, %v3425_v59, %v3421_v39  ;;  %vm3434_vm1 = vweird.f32 %v5357_v16  ;;  %v3475_v21 = vand.u32 2147483647, %v5940_v37  ;;  %v3478_v24 = vor.u32 1.1754944e-38, %v3477_v63 }
 0x6d5   :  { %v3454_v48 = vmul.f32 %v5355_v35, %v3453_v6  ;;  %v3481_v53 = vmul.f32 %v3426_v55, %v3401_v51  ;;  %v3430_v27 = vsub.f32 1.0, %v3429_v47  ;;  %vm3435_vm4 = vmor %vm3433_vm3, %vm3434_vm1  ;;  %v3403_v34 = vadd.f32 %v3402_v2, %v3389_v36 }
 0x6d6   :  { %vm3476_vm9 = vcmp.eq.f32.partialorder %v3475_v21, 8.507059e+37 }
 0x6d7   :  { %v3455_v33 = vadd.f32 %v5355_v35, %v3454_v48  ;;  %v3483_v56 = vadd.f32 %v3481_v53, %v3373_v52  ;;  %v3431_v32 = vmul.f32 %v5357_v16, %v3430_v27 }
 0x6d8   :  { %v5359_v40 = vpop.eup %5358 }
 0x6d9   :  { %v3467_v43 = vmul.f32 %v5359_v40, %v5940_v37  ;;  %v3459_v41 = vsel %vm3458_vm15, %v5355_v35, %v3455_v33  ;;  %5360 = vtanh.f32 %v3483_v56  ;;  %v3432_v49 = vadd.f32 %v5357_v16, %v3431_v32 }
 0x6da   :  { %v3464_v42 = vsel %vm3461_vm2, %v3463_v58, %v3459_v41  ;;  %vm3472_vm6 = vweird.f32 %v5359_v40 }
 0x6db   :  { %v3468_v46 = vsub.f32 1.0, %v3467_v43  ;;  %v3436_v4 = vsel %vm3435_vm4, %v5357_v16, %v3432_v49  ;;  %v3487_v9 = vsub.f32 1.0, %v3464_v42  ;;  %vm3473_vm8 = vmor %vm3471_vm7, %vm3472_vm6  ;;  %v3491_v26 = vmul.f32 %v3464_v42, %v5902_v61 }
 0x6dc   :  { %v3441_v8 = vsel %vm3438_vm5, %v3440_v3, %v3436_v4 }
 0x6dd   :  { %v3469_v5 = vmul.f32 %v5359_v40, %v3468_v46  ;;  %v3482_v18 = vmul.f32 %v3441_v8, %v3403_v34 }
 0x6df   :  { %v5361_v15 = vpop.eup %5360  ;;  %v3470_v19 = vadd.f32 %v5359_v40, %v3469_v5  ;;  %v3484_v60 = vadd.f32 %v3482_v18, %v3375_v45 }
 0x6e0   :  { %v3489_v23 = vmul.f32 %v5361_v15, %v3487_v9 }
 0x6e1   :  { %v3474_v25 = vsel %vm3473_vm8, %v5359_v40, %v3470_v19  ;;  %5362 = vtanh.f32 %v3484_v60 }
 0x6e2   :  { %v3493_v7 = vadd.f32 %v3491_v26, %v3489_v23  ;;  %v3479_v12 = vsel %vm3476_vm9, %v3478_v24, %v3474_v25 }
 0x6e3   :  { %v3488_v13 = vsub.f32 1.0, %v3479_v12  ;;  %v3492_v30 = vmul.f32 %v3479_v12, %v5907_v44 }
 0x6e4   :  { %3495 = vst [vmem:[%s5972_s13] sm:$0xff] %v3493_v7 }
 0x6e7   :  { %v5363_v28 = vpop.eup %5362 }
 0x6e8   :  { %v3490_v29 = vmul.f32 %v5363_v28, %v3488_v13 }
 0x6ea   :  { %v3494_v22 = vadd.f32 %v3492_v30, %v3490_v29 }
 0x6ec   :  { %3496 = vst [vmem:[%s5972_s13 + $0x8] sm:$0xff] %v3494_v22 }
 0x6ed   :  { %3513 = vsyncpa [#allocation3], 1 }
 0x6ee   :  { %3514 = vsyncpa [#allocation5], 1 }

</bundles_post_ra>
